<compile_context>
chip_gen: v7x
topology: tpu7x:2x2x1
jax: 0.10.0
libtpu: 0.0.40
codegen_flags: <defaults>
</compile_context>

<pallas_src>
import functools

import jax
import jax.numpy as jnp
import numpy as np
from jax.experimental import pallas as pl
from jax.experimental.pallas import tpu as pltpu


# ----------------------------------------------------------------------------
# Kernel: one batch block per grid step; emits (3, K, bB) = [ctrl, state, pd].
# Batch-minor layout: lanes = batch.
# ----------------------------------------------------------------------------
def _loss_kernel(pred_ref, inp_ref, tgt_ref, scale_ref, mean_ref, upt_ref,
                 out_ref, pred_s, acc_s, *, T, U):
    K, UT, bB = pred_ref.shape
    TS = upt_ref.shape[0]

    # ---- inverse_transform (scale/mean vary along the U*T rows) -------------
    pred = (pred_ref[...] * scale_ref[...][None, :, :]
            + mean_ref[...][None, :, :])                        # (K, UT, bB)
    pred_s[...] = pred                                          # scratch copy

    # ---- ctrl loss: mean over (T,U) of squared error (VPU, lanes = batch) ---
    dc = pred - inp_ref[...][None, :, :]
    out_ref[0, :, :] = jnp.sum(dc * dc, axis=1) * (1.0 / UT)    # (K, bB)

    # ---- state loss: linear rollout folded into one (TS,UT)@(UT,bB) per mode
    upt = upt_ref[...]                                          # (TS, UT)
    tgt = tgt_ref[...]                                          # (TS, bB)
    for k in range(K):                                          # K small, static
        drive = jnp.dot(upt, pred_s[k],
                        preferred_element_type=jnp.float32)     # (TS, bB)
        dsd = drive - tgt                                       # state_diff = a - b
        out_ref[1, k:k + 1, :] = (jnp.sum(dsd * dsd, axis=0, keepdims=True)
                                  * (1.0 / TS))                 # (1, bB)

    # ---- pairwise diversity: symmetric upper triangle, no micro-matmuls -----
    acc_s[...] = jnp.zeros_like(acc_s)                          # (K, bB)
    for k in range(K):
        pk = pred_s[k]                                          # (UT, bB)
        for l in range(k + 1, K):                               # upper triangle
            d = pk - pred_s[l]
            sq = d * d                                          # (UT, bB)
            # per-timestep ||.||^2: rows are u-major so each u-block is an
            # aligned (T, bB) tile -> U-1 plain VPU adds, no shuffles/matmuls.
            per_t = sq[0:T, :]
            for u in range(1, U):
                per_t = per_t + sq[u * T:(u + 1) * T, :]        # (T, bB)
            dist = jnp.sqrt(per_t)                              # (T, bB)
            dmean = jnp.sum(dist, axis=0, keepdims=True) * (1.0 / T)   # (1, bB)
            term = jnp.tanh(-0.1 * dmean)                       # (1, bB)
            acc_s[k:k + 1, :] = acc_s[k:k + 1, :] + term
            acc_s[l:l + 1, :] = acc_s[l:l + 1, :] + term
    # diagonal (l == k) contributes tanh(0) = 0, so /K matches the reference.
    out_ref[2, :, :] = acc_s[...] * (1.0 / K)


# ----------------------------------------------------------------------------
# Host-side propagator construction, cached across calls.
# ----------------------------------------------------------------------------
_PROP_CACHE = {}


def _propagators(T, At, Bt):
    At_np = np.asarray(At, dtype=np.float32)
    Bt_np = np.asarray(Bt, dtype=np.float32)
    key = (int(T), At_np.tobytes(), Bt_np.tobytes())
    hit = _PROP_CACHE.get(key)
    if hit is not None:
        return hit
    S = At_np.shape[0]
    U = Bt_np.shape[0]
    powers = [np.eye(S, dtype=np.float32)]
    for _ in range(T):
        powers.append(powers[-1] @ At_np)                      # powers[n] = At^n
    X0P = np.concatenate(powers[1:T + 1], axis=1)              # (S, T*S)
    rows = []
    for t in range(T):
        blocks = [Bt_np @ powers[n - 1 - t] if t <= n - 1
                  else np.zeros((U, S), np.float32)
                  for n in range(1, T + 1)]
        rows.append(np.concatenate(blocks, axis=1))            # (U, T*S)
    UP_tu = np.concatenate(rows, axis=0)                       # (T*U, T*S)  t-major rows
    UP_ut = UP_tu.reshape(T, U, T * S).transpose(1, 0, 2).reshape(U * T, T * S)
    UPT = np.ascontiguousarray(UP_ut.T)                        # (T*S, U*T)  u-major cols
    result = (jnp.asarray(X0P), jnp.asarray(UPT))
    _PROP_CACHE[key] = result
    return result


# ----------------------------------------------------------------------------
# Wrapper: layout plumbing + batch blocking + pallas_call.
# ----------------------------------------------------------------------------
def pallas_mode_losses(pred_raw, inp, st, scale, mean, At, Bt, *, block_b=1024):
    B, T, K, U = pred_raw.shape
    S = st.shape[-1]
    UT, TS = U * T, T * S

    X0P, UPT = _propagators(T, At, Bt)

    # --- batch blocking: lane-dense bB (multiple of 128), >=2 grid steps when
    #     the padded batch allows it (v7x dual-TensorCore sharding). ----------
    B128 = ((B + 127) // 128) * 128
    target = max(128, (block_b // 128) * 128)
    if B128 > target:
        bB = target                                # large blocks, >=2 steps
    elif B128 >= 256:
        bB = ((B128 // 2 + 127) // 128) * 128      # split into ~2 steps
    else:
        bB = B128                                  # tiny batch: single 128 block
    Bp = ((B + bB - 1) // bB) * bB
    padB = Bp - B

    # --- batch-minor slabs (lanes = batch); rows of controls are u-major -----
    # TODO(synk): optionally ship these as bfloat16 on HBM-poor v5e and upcast
    # in-kernel; kept f32 here for bit-comparable accuracy.
    pred_kb = pred_raw.transpose(2, 3, 1, 0).reshape(K, UT, B)   # (K, U*T, B)
    inp_b = inp.transpose(2, 1, 0).reshape(UT, B)                # (U*T, B)
    st0 = st[:, 0, :]                                            # (B, S)
    strest = st[:, 1:, :].reshape(B, TS)                         # (B, T*S)
    target_b = (strest - st0 @ X0P).T                            # (T*S, B)
    if padB:
        pred_kb = jnp.pad(pred_kb, ((0, 0), (0, 0), (0, padB)))
        inp_b = jnp.pad(inp_b, ((0, 0), (0, padB)))
        target_b = jnp.pad(target_b, ((0, 0), (0, padB)))
    scale_col = jnp.repeat(scale.astype(jnp.float32), T)[:, None]   # (U*T, 1)
    mean_col = jnp.repeat(mean.astype(jnp.float32), T)[:, None]     # (U*T, 1)

    kernel = functools.partial(_loss_kernel, T=T, U=U)
    out = pl.pallas_call(
        kernel,
        out_shape=jax.ShapeDtypeStruct((3, K, Bp), jnp.float32),
        grid_spec=pltpu.PrefetchScalarGridSpec(
            num_scalar_prefetch=0,
            grid=(Bp // bB,),
            in_specs=[
                pl.BlockSpec((K, UT, bB), lambda b: (0, 0, b)),   # pred (raw)
                pl.BlockSpec((UT, bB), lambda b: (0, b)),         # ref controls
                pl.BlockSpec((TS, bB), lambda b: (0, b)),         # state target
                pl.BlockSpec((UT, 1), lambda b: (0, 0)),          # scale (resident)
                pl.BlockSpec((UT, 1), lambda b: (0, 0)),          # mean  (resident)
                pl.BlockSpec((TS, UT), lambda b: (0, 0)),         # propagator^T
            ],
            out_specs=pl.BlockSpec((3, K, bB), lambda b: (0, 0, b)),
            scratch_shapes=[
                pltpu.VMEM((K, UT, bB), jnp.float32),             # scaled controls
                pltpu.VMEM((K, bB), jnp.float32),                 # diversity acc
            ],
        ),
        compiler_params=pltpu.CompilerParams(
            dimension_semantics=("parallel",)),
    )(pred_kb, inp_b, target_b, scale_col, mean_col, UPT)

    ctrl = out[0, :, :B].T
    state = out[1, :, :B].T
    pd = out[2, :, :B].T
    return ctrl, state, pd


# ----------------------------------------------------------------------------
# Full forward (per-mode weighting, WTA gather, scalar means) — tiny glue.
# ----------------------------------------------------------------------------
def loss_forward(pred_raw, inp, st, *, ctrl_weight, state_weight,
                 pairwise_weight, miso_method, scale, mean, At, Bt):
    ctrl, state, pd = pallas_mode_losses(pred_raw, inp, st, scale, mean, At, Bt)
    if not state_weight:
        state = jnp.zeros_like(ctrl)
    if miso_method not in ('miso-pd', 'miso-mix'):
        pd = jnp.zeros_like(ctrl)
    weighted = ctrl_weight * ctrl + state_weight * state + pairwise_weight * pd
    if miso_method in ('miso-wta', 'miso-mix'):
        best = jnp.argmin(weighted, axis=1)[:, None]
        weighted = jnp.take_along_axis(weighted, best, axis=1)
        ctrl = jnp.take_along_axis(ctrl, best, axis=1)
        state = jnp.take_along_axis(state, best, axis=1)
        pd = jnp.take_along_axis(pd, best, axis=1)
    return weighted.mean(), ctrl.mean(), state.mean(), pd.mean()


# ----------------------------------------------------------------------------
# Pure-JAX reference mirroring the PyTorch forward (per-mode losses).
# ----------------------------------------------------------------------------
def ref_mode_losses(pred_raw, inp, st, scale, mean, At, Bt):
    B, T, K, U = pred_raw.shape
    S = st.shape[-1]
    pred = pred_raw * scale + mean
    ctrl = jnp.mean((pred - inp[:, :, None, :]) ** 2, axis=(1, 3))
    x = jnp.broadcast_to(st[:, 0, None, :], (B, K, S))
    states = []
    for t in range(T):                                    # sequential rollout
        x = x @ At + pred[:, t] @ Bt
        states.append(x)
    ps = jnp.stack(states, axis=1)                        # (B, T, K, S)
    state_loss = jnp.mean((ps - st[:, 1:, None, :]) ** 2, axis=(1, 3))
    d = pred[:, :, :, None, :] - pred[:, :, None, :, :]
    dist = jnp.sqrt(jnp.sum(d * d, axis=-1)).mean(axis=1)
    pd = jnp.tanh(-0.1 * dist).mean(axis=2)
    return ctrl, state_loss, pd


if __name__ == "__main__":
    B, T, K, U, S = 2, 8, 8, 4, 4

    key = jax.random.PRNGKey(0)
    k1, k2, k3 = jax.random.split(key, 3)
    pred_raw = jax.random.normal(k1, (B, T, K, U), jnp.float32)
    inp = jax.random.normal(k2, (B, T, U), jnp.float32)
    st = jax.random.normal(k3, (B, T + 1, S), jnp.float32)

    # Deterministic "parameters": scaler and synthetic linear dynamics.
    scale = jnp.array([0.5, 1.0, 1.5, 2.0], jnp.float32)
    mean = jnp.array([0.1, -0.2, 0.3, 0.0], jnp.float32)
    At = (0.9 * jnp.eye(S, dtype=jnp.float32)
          + 0.05 * jnp.ones((S, S), jnp.float32))             # A^T
    Bt = (0.1 * (jnp.arange(U * S, dtype=jnp.float32).reshape(U, S)
                 / (U * S) + 0.1))                            # Bm^T

    out = loss_forward(pred_raw, inp, st,
                       ctrl_weight=1.0, state_weight=0.5, pairwise_weight=0.2,
                       miso_method='miso-mix',
                       scale=scale, mean=mean, At=At, Bt=Bt)
    out = jax.block_until_ready(out)

    # ---- correctness: tiny single-block path (B=2 -> bB=128, 1 step) --------
    c_k, s_k, p_k = pallas_mode_losses(pred_raw, inp, st, scale, mean, At, Bt)
    c_r, s_r, p_r = ref_mode_losses(pred_raw, inp, st, scale, mean, At, Bt)
    for a, b in ((c_k, c_r), (s_k, s_r), (p_k, p_r)):
        np.testing.assert_allclose(np.asarray(a), np.asarray(b),
                                   rtol=2e-3, atol=2e-3)

    # ---- correctness: 2-step grid + batch padding (B=130 -> bB=128, 2 steps) -
    B2 = 130
    kk = jax.random.split(jax.random.PRNGKey(1), 3)
    pr2 = jax.random.normal(kk[0], (B2, T, K, U), jnp.float32)
    in2 = jax.random.normal(kk[1], (B2, T, U), jnp.float32)
    st2 = jax.random.normal(kk[2], (B2, T + 1, S), jnp.float32)
    c_k2, s_k2, p_k2 = pallas_mode_losses(pr2, in2, st2, scale, mean, At, Bt)
    c_r2, s_r2, p_r2 = ref_mode_losses(pr2, in2, st2, scale, mean, At, Bt)
    for a, b in ((c_k2, c_r2), (s_k2, s_r2), (p_k2, p_r2)):
        np.testing.assert_allclose(np.asarray(a), np.asarray(b),
                                   rtol=2e-3, atol=2e-3)

    # ---- correctness: large-block perf path (B=1300 -> bB=1024, 2 steps) ----
    B3 = 1300
    kk3 = jax.random.split(jax.random.PRNGKey(2), 3)
    pr3 = jax.random.normal(kk3[0], (B3, T, K, U), jnp.float32)
    in3 = jax.random.normal(kk3[1], (B3, T, U), jnp.float32)
    st3 = jax.random.normal(kk3[2], (B3, T + 1, S), jnp.float32)
    c_k3, s_k3, p_k3 = pallas_mode_losses(pr3, in3, st3, scale, mean, At, Bt)
    c_r3, s_r3, p_r3 = ref_mode_losses(pr3, in3, st3, scale, mean, At, Bt)
    for a, b in ((c_k3, c_r3), (s_k3, s_r3), (p_k3, p_r3)):
        np.testing.assert_allclose(np.asarray(a), np.asarray(b),
                                   rtol=2e-3, atol=2e-3)

    print("KERNEL_OK")
</pallas_src>

<mosaic_0001>
module attributes {stable_mosaic.version = 11 : i64} {
  func.func @_loss_kernel(%arg0: i32, %arg1: memref<8x32x128xf32, #tpu.memory_space<vmem>>, %arg2: memref<32x128xf32, #tpu.memory_space<vmem>>, %arg3: memref<32x128xf32, #tpu.memory_space<vmem>>, %arg4: memref<32x1xf32, #tpu.memory_space<vmem>>, %arg5: memref<32x1xf32, #tpu.memory_space<vmem>>, %arg6: memref<32x32xf32, #tpu.memory_space<vmem>>, %arg7: memref<3x8x128xf32, #tpu.memory_space<vmem>>, %arg8: memref<8x32x128xf32, #tpu.memory_space<vmem>>, %arg9: memref<8x128xf32, #tpu.memory_space<vmem>>) attributes {dimension_semantics = [#tpu.dimension_semantics<parallel>], iteration_bounds = array<i64: 1>, scalar_prefetch = 0 : i64, scratch_operands = 2 : i64, tpu.core_type = #tpu.core_type<tc>, window_params = [{transform_indices = @transform_0, window_bounds = array<i64: 8, 32, 128>}, {transform_indices = @transform_1, window_bounds = array<i64: 32, 128>}, {transform_indices = @transform_2, window_bounds = array<i64: 32, 128>}, {pipeline_mode = #tpu.pipeline_mode<synchronous>, transform_indices = @transform_3, window_bounds = array<i64: 32, 1>}, {pipeline_mode = #tpu.pipeline_mode<synchronous>, transform_indices = @transform_4, window_bounds = array<i64: 32, 1>}, {pipeline_mode = #tpu.pipeline_mode<synchronous>, transform_indices = @transform_5, window_bounds = array<i64: 32, 32>}, {transform_indices = @transform_6, window_bounds = array<i64: 3, 8, 128>}]} {
    %c0 = arith.constant 0 : index
    %c0_0 = arith.constant 0 : index
    %c0_1 = arith.constant 0 : index
    %0 = vector.load %arg1[%c0, %c0_0, %c0_1] : memref<8x32x128xf32, #tpu.memory_space<vmem>>, vector<8x32x128xf32>
    %c0_2 = arith.constant 0 : index
    %c0_3 = arith.constant 0 : index
    %1 = vector.load %arg4[%c0_2, %c0_3] : memref<32x1xf32, #tpu.memory_space<vmem>>, vector<32x1xf32>
    %2 = vector.shape_cast %1 : vector<32x1xf32> to vector<1x32x1xf32>
    %3 = vector.broadcast %2 : vector<1x32x1xf32> to vector<8x32x128xf32>
    %4 = arith.mulf %0, %3 : vector<8x32x128xf32>
    %c0_4 = arith.constant 0 : index
    %c0_5 = arith.constant 0 : index
    %5 = vector.load %arg5[%c0_4, %c0_5] : memref<32x1xf32, #tpu.memory_space<vmem>>, vector<32x1xf32>
    %6 = vector.shape_cast %5 : vector<32x1xf32> to vector<1x32x1xf32>
    %7 = vector.broadcast %6 : vector<1x32x1xf32> to vector<8x32x128xf32>
    %8 = arith.addf %4, %7 : vector<8x32x128xf32>
    %c0_6 = arith.constant 0 : index
    %c0_7 = arith.constant 0 : index
    %c0_8 = arith.constant 0 : index
    %9 = vector.load %arg8[%c0_6, %c0_7, %c0_8] : memref<8x32x128xf32, #tpu.memory_space<vmem>>, vector<8x32x128xf32>
    tpu.vector_store %arg8[%c0_6, %c0_7, %c0_8], %8 {strides = array<i32>} : memref<8x32x128xf32, #tpu.memory_space<vmem>>, vector<8x32x128xf32>,
    %c0_9 = arith.constant 0 : index
    %c0_10 = arith.constant 0 : index
    %10 = vector.load %arg2[%c0_9, %c0_10] : memref<32x128xf32, #tpu.memory_space<vmem>>, vector<32x128xf32>
    %11 = vector.shape_cast %10 : vector<32x128xf32> to vector<1x32x128xf32>
    %12 = vector.broadcast %11 : vector<1x32x128xf32> to vector<8x32x128xf32>
    %13 = arith.subf %8, %12 : vector<8x32x128xf32>
    %14 = arith.mulf %13, %13 : vector<8x32x128xf32>
    %cst = arith.constant dense<0.000000e+00> : vector<8x128xf32>
    %15 = vector.multi_reduction <add>, %14, %cst [1] : vector<8x32x128xf32> to vector<8x128xf32>
    %cst_11 = arith.constant 3.125000e-02 : f32
    %16 = vector.broadcast %cst_11 : f32 to vector<8x128xf32>
    %17 = arith.mulf %15, %16 : vector<8x128xf32>
    %c0_12 = arith.constant 0 : index
    %c0_13 = arith.constant 0 : index
    %c0_14 = arith.constant 0 : index
    %18 = vector.load %arg7[%c0_12, %c0_13, %c0_14] : memref<3x8x128xf32, #tpu.memory_space<vmem>>, vector<1x8x128xf32>
    %19 = vector.shape_cast %18 : vector<1x8x128xf32> to vector<8x128xf32>
    %20 = vector.shape_cast %17 : vector<8x128xf32> to vector<1x8x128xf32>
    tpu.vector_store %arg7[%c0_12, %c0_13, %c0_14], %20 {strides = array<i32>} : memref<3x8x128xf32, #tpu.memory_space<vmem>>, vector<1x8x128xf32>,
    %c0_15 = arith.constant 0 : index
    %c0_16 = arith.constant 0 : index
    %21 = vector.load %arg6[%c0_15, %c0_16] : memref<32x32xf32, #tpu.memory_space<vmem>>, vector<32x32xf32>
    %c0_17 = arith.constant 0 : index
    %c0_18 = arith.constant 0 : index
    %22 = vector.load %arg3[%c0_17, %c0_18] : memref<32x128xf32, #tpu.memory_space<vmem>>, vector<32x128xf32>
    %c0_19 = arith.constant 0 : index
    %c0_20 = arith.constant 0 : index
    %c0_21 = arith.constant 0 : index
    %23 = vector.load %arg8[%c0_19, %c0_20, %c0_21] : memref<8x32x128xf32, #tpu.memory_space<vmem>>, vector<1x32x128xf32>
    %24 = vector.shape_cast %23 : vector<1x32x128xf32> to vector<32x128xf32>
    %cst_22 = arith.constant dense<0.000000e+00> : vector<32x128xf32>
    %25 = tpu.matmul %21, %24, %cst_22 {dimension_numbers = #tpu.dot_dimension_numbers<[1], [0], [0], [1], [0, 0, 1, 1], [], []>} : vector<32x32xf32>, vector<32x128xf32>, vector<32x128xf32> -> vector<32x128xf32>
    %26 = arith.subf %25, %22 : vector<32x128xf32>
    %27 = arith.mulf %26, %26 : vector<32x128xf32>
    %cst_23 = arith.constant dense<0.000000e+00> : vector<128xf32>
    %28 = vector.multi_reduction <add>, %27, %cst_23 [0] : vector<32x128xf32> to vector<128xf32>
    %29 = vector.shape_cast %28 : vector<128xf32> to vector<1x128xf32>
    %cst_24 = arith.constant 3.125000e-02 : f32
    %30 = vector.broadcast %cst_24 : f32 to vector<1x128xf32>
    %31 = arith.mulf %29, %30 : vector<1x128xf32>
    %c1 = arith.constant 1 : index
    %c0_25 = arith.constant 0 : index
    %c0_26 = arith.constant 0 : index
    %32 = vector.load %arg7[%c1, %c0_25, %c0_26] : memref<3x8x128xf32, #tpu.memory_space<vmem>>, vector<1x1x128xf32>
    %33 = vector.shape_cast %32 : vector<1x1x128xf32> to vector<1x128xf32>
    %34 = vector.shape_cast %31 : vector<1x128xf32> to vector<1x1x128xf32>
    tpu.vector_store %arg7[%c1, %c0_25, %c0_26], %34 {strides = array<i32>} : memref<3x8x128xf32, #tpu.memory_space<vmem>>, vector<1x1x128xf32>,
    %c1_27 = arith.constant 1 : index
    %c0_28 = arith.constant 0 : index
    %c0_29 = arith.constant 0 : index
    %35 = vector.load %arg8[%c1_27, %c0_28, %c0_29] : memref<8x32x128xf32, #tpu.memory_space<vmem>>, vector<1x32x128xf32>
    %36 = vector.shape_cast %35 : vector<1x32x128xf32> to vector<32x128xf32>
    %cst_30 = arith.constant dense<0.000000e+00> : vector<32x128xf32>
    %37 = tpu.matmul %21, %36, %cst_30 {dimension_numbers = #tpu.dot_dimension_numbers<[1], [0], [0], [1], [0, 0, 1, 1], [], []>} : vector<32x32xf32>, vector<32x128xf32>, vector<32x128xf32> -> vector<32x128xf32>
    %38 = arith.subf %37, %22 : vector<32x128xf32>
    %39 = arith.mulf %38, %38 : vector<32x128xf32>
    %cst_31 = arith.constant dense<0.000000e+00> : vector<128xf32>
    %40 = vector.multi_reduction <add>, %39, %cst_31 [0] : vector<32x128xf32> to vector<128xf32>
    %41 = vector.shape_cast %40 : vector<128xf32> to vector<1x128xf32>
    %cst_32 = arith.constant 3.125000e-02 : f32
    %42 = vector.broadcast %cst_32 : f32 to vector<1x128xf32>
    %43 = arith.mulf %41, %42 : vector<1x128xf32>
    %c1_33 = arith.constant 1 : index
    %c1_34 = arith.constant 1 : index
    %c0_35 = arith.constant 0 : index
    %44 = vector.load %arg7[%c1_33, %c1_34, %c0_35] : memref<3x8x128xf32, #tpu.memory_space<vmem>>, vector<1x1x128xf32>
    %45 = vector.shape_cast %44 : vector<1x1x128xf32> to vector<1x128xf32>
    %46 = vector.shape_cast %43 : vector<1x128xf32> to vector<1x1x128xf32>
    tpu.vector_store %arg7[%c1_33, %c1_34, %c0_35], %46 {strides = array<i32>} : memref<3x8x128xf32, #tpu.memory_space<vmem>>, vector<1x1x128xf32>,
    %c2 = arith.constant 2 : index
    %c0_36 = arith.constant 0 : index
    %c0_37 = arith.constant 0 : index
    %47 = vector.load %arg8[%c2, %c0_36, %c0_37] : memref<8x32x128xf32, #tpu.memory_space<vmem>>, vector<1x32x128xf32>
    %48 = vector.shape_cast %47 : vector<1x32x128xf32> to vector<32x128xf32>
    %cst_38 = arith.constant dense<0.000000e+00> : vector<32x128xf32>
    %49 = tpu.matmul %21, %48, %cst_38 {dimension_numbers = #tpu.dot_dimension_numbers<[1], [0], [0], [1], [0, 0, 1, 1], [], []>} : vector<32x32xf32>, vector<32x128xf32>, vector<32x128xf32> -> vector<32x128xf32>
    %50 = arith.subf %49, %22 : vector<32x128xf32>
    %51 = arith.mulf %50, %50 : vector<32x128xf32>
    %cst_39 = arith.constant dense<0.000000e+00> : vector<128xf32>
    %52 = vector.multi_reduction <add>, %51, %cst_39 [0] : vector<32x128xf32> to vector<128xf32>
    %53 = vector.shape_cast %52 : vector<128xf32> to vector<1x128xf32>
    %cst_40 = arith.constant 3.125000e-02 : f32
    %54 = vector.broadcast %cst_40 : f32 to vector<1x128xf32>
    %55 = arith.mulf %53, %54 : vector<1x128xf32>
    %c1_41 = arith.constant 1 : index
    %c2_42 = arith.constant 2 : index
    %c0_43 = arith.constant 0 : index
    %56 = vector.load %arg7[%c1_41, %c2_42, %c0_43] : memref<3x8x128xf32, #tpu.memory_space<vmem>>, vector<1x1x128xf32>
    %57 = vector.shape_cast %56 : vector<1x1x128xf32> to vector<1x128xf32>
    %58 = vector.shape_cast %55 : vector<1x128xf32> to vector<1x1x128xf32>
    tpu.vector_store %arg7[%c1_41, %c2_42, %c0_43], %58 {strides = array<i32>} : memref<3x8x128xf32, #tpu.memory_space<vmem>>, vector<1x1x128xf32>,
    %c3 = arith.constant 3 : index
    %c0_44 = arith.constant 0 : index
    %c0_45 = arith.constant 0 : index
    %59 = vector.load %arg8[%c3, %c0_44, %c0_45] : memref<8x32x128xf32, #tpu.memory_space<vmem>>, vector<1x32x128xf32>
    %60 = vector.shape_cast %59 : vector<1x32x128xf32> to vector<32x128xf32>
    %cst_46 = arith.constant dense<0.000000e+00> : vector<32x128xf32>
    %61 = tpu.matmul %21, %60, %cst_46 {dimension_numbers = #tpu.dot_dimension_numbers<[1], [0], [0], [1], [0, 0, 1, 1], [], []>} : vector<32x32xf32>, vector<32x128xf32>, vector<32x128xf32> -> vector<32x128xf32>
    %62 = arith.subf %61, %22 : vector<32x128xf32>
    %63 = arith.mulf %62, %62 : vector<32x128xf32>
    %cst_47 = arith.constant dense<0.000000e+00> : vector<128xf32>
    %64 = vector.multi_reduction <add>, %63, %cst_47 [0] : vector<32x128xf32> to vector<128xf32>
    %65 = vector.shape_cast %64 : vector<128xf32> to vector<1x128xf32>
    %cst_48 = arith.constant 3.125000e-02 : f32
    %66 = vector.broadcast %cst_48 : f32 to vector<1x128xf32>
    %67 = arith.mulf %65, %66 : vector<1x128xf32>
    %c1_49 = arith.constant 1 : index
    %c3_50 = arith.constant 3 : index
    %c0_51 = arith.constant 0 : index
    %68 = vector.load %arg7[%c1_49, %c3_50, %c0_51] : memref<3x8x128xf32, #tpu.memory_space<vmem>>, vector<1x1x128xf32>
    %69 = vector.shape_cast %68 : vector<1x1x128xf32> to vector<1x128xf32>
    %70 = vector.shape_cast %67 : vector<1x128xf32> to vector<1x1x128xf32>
    tpu.vector_store %arg7[%c1_49, %c3_50, %c0_51], %70 {strides = array<i32>} : memref<3x8x128xf32, #tpu.memory_space<vmem>>, vector<1x1x128xf32>,
    %c4 = arith.constant 4 : index
    %c0_52 = arith.constant 0 : index
    %c0_53 = arith.constant 0 : index
    %71 = vector.load %arg8[%c4, %c0_52, %c0_53] : memref<8x32x128xf32, #tpu.memory_space<vmem>>, vector<1x32x128xf32>
    %72 = vector.shape_cast %71 : vector<1x32x128xf32> to vector<32x128xf32>
    %cst_54 = arith.constant dense<0.000000e+00> : vector<32x128xf32>
    %73 = tpu.matmul %21, %72, %cst_54 {dimension_numbers = #tpu.dot_dimension_numbers<[1], [0], [0], [1], [0, 0, 1, 1], [], []>} : vector<32x32xf32>, vector<32x128xf32>, vector<32x128xf32> -> vector<32x128xf32>
    %74 = arith.subf %73, %22 : vector<32x128xf32>
    %75 = arith.mulf %74, %74 : vector<32x128xf32>
    %cst_55 = arith.constant dense<0.000000e+00> : vector<128xf32>
    %76 = vector.multi_reduction <add>, %75, %cst_55 [0] : vector<32x128xf32> to vector<128xf32>
    %77 = vector.shape_cast %76 : vector<128xf32> to vector<1x128xf32>
    %cst_56 = arith.constant 3.125000e-02 : f32
    %78 = vector.broadcast %cst_56 : f32 to vector<1x128xf32>
    %79 = arith.mulf %77, %78 : vector<1x128xf32>
    %c1_57 = arith.constant 1 : index
    %c4_58 = arith.constant 4 : index
    %c0_59 = arith.constant 0 : index
    %80 = vector.load %arg7[%c1_57, %c4_58, %c0_59] : memref<3x8x128xf32, #tpu.memory_space<vmem>>, vector<1x1x128xf32>
    %81 = vector.shape_cast %80 : vector<1x1x128xf32> to vector<1x128xf32>
    %82 = vector.shape_cast %79 : vector<1x128xf32> to vector<1x1x128xf32>
    tpu.vector_store %arg7[%c1_57, %c4_58, %c0_59], %82 {strides = array<i32>} : memref<3x8x128xf32, #tpu.memory_space<vmem>>, vector<1x1x128xf32>,
    %c5 = arith.constant 5 : index
    %c0_60 = arith.constant 0 : index
    %c0_61 = arith.constant 0 : index
    %83 = vector.load %arg8[%c5, %c0_60, %c0_61] : memref<8x32x128xf32, #tpu.memory_space<vmem>>, vector<1x32x128xf32>
    %84 = vector.shape_cast %83 : vector<1x32x128xf32> to vector<32x128xf32>
    %cst_62 = arith.constant dense<0.000000e+00> : vector<32x128xf32>
    %85 = tpu.matmul %21, %84, %cst_62 {dimension_numbers = #tpu.dot_dimension_numbers<[1], [0], [0], [1], [0, 0, 1, 1], [], []>} : vector<32x32xf32>, vector<32x128xf32>, vector<32x128xf32> -> vector<32x128xf32>
    %86 = arith.subf %85, %22 : vector<32x128xf32>
    %87 = arith.mulf %86, %86 : vector<32x128xf32>
    %cst_63 = arith.constant dense<0.000000e+00> : vector<128xf32>
    %88 = vector.multi_reduction <add>, %87, %cst_63 [0] : vector<32x128xf32> to vector<128xf32>
    %89 = vector.shape_cast %88 : vector<128xf32> to vector<1x128xf32>
    %cst_64 = arith.constant 3.125000e-02 : f32
    %90 = vector.broadcast %cst_64 : f32 to vector<1x128xf32>
    %91 = arith.mulf %89, %90 : vector<1x128xf32>
    %c1_65 = arith.constant 1 : index
    %c5_66 = arith.constant 5 : index
    %c0_67 = arith.constant 0 : index
    %92 = vector.load %arg7[%c1_65, %c5_66, %c0_67] : memref<3x8x128xf32, #tpu.memory_space<vmem>>, vector<1x1x128xf32>
    %93 = vector.shape_cast %92 : vector<1x1x128xf32> to vector<1x128xf32>
    %94 = vector.shape_cast %91 : vector<1x128xf32> to vector<1x1x128xf32>
    tpu.vector_store %arg7[%c1_65, %c5_66, %c0_67], %94 {strides = array<i32>} : memref<3x8x128xf32, #tpu.memory_space<vmem>>, vector<1x1x128xf32>,
    %c6 = arith.constant 6 : index
    %c0_68 = arith.constant 0 : index
    %c0_69 = arith.constant 0 : index
    %95 = vector.load %arg8[%c6, %c0_68, %c0_69] : memref<8x32x128xf32, #tpu.memory_space<vmem>>, vector<1x32x128xf32>
    %96 = vector.shape_cast %95 : vector<1x32x128xf32> to vector<32x128xf32>
    %cst_70 = arith.constant dense<0.000000e+00> : vector<32x128xf32>
    %97 = tpu.matmul %21, %96, %cst_70 {dimension_numbers = #tpu.dot_dimension_numbers<[1], [0], [0], [1], [0, 0, 1, 1], [], []>} : vector<32x32xf32>, vector<32x128xf32>, vector<32x128xf32> -> vector<32x128xf32>
    %98 = arith.subf %97, %22 : vector<32x128xf32>
    %99 = arith.mulf %98, %98 : vector<32x128xf32>
    %cst_71 = arith.constant dense<0.000000e+00> : vector<128xf32>
    %100 = vector.multi_reduction <add>, %99, %cst_71 [0] : vector<32x128xf32> to vector<128xf32>
    %101 = vector.shape_cast %100 : vector<128xf32> to vector<1x128xf32>
    %cst_72 = arith.constant 3.125000e-02 : f32
    %102 = vector.broadcast %cst_72 : f32 to vector<1x128xf32>
    %103 = arith.mulf %101, %102 : vector<1x128xf32>
    %c1_73 = arith.constant 1 : index
    %c6_74 = arith.constant 6 : index
    %c0_75 = arith.constant 0 : index
    %104 = vector.load %arg7[%c1_73, %c6_74, %c0_75] : memref<3x8x128xf32, #tpu.memory_space<vmem>>, vector<1x1x128xf32>
    %105 = vector.shape_cast %104 : vector<1x1x128xf32> to vector<1x128xf32>
    %106 = vector.shape_cast %103 : vector<1x128xf32> to vector<1x1x128xf32>
    tpu.vector_store %arg7[%c1_73, %c6_74, %c0_75], %106 {strides = array<i32>} : memref<3x8x128xf32, #tpu.memory_space<vmem>>, vector<1x1x128xf32>,
    %c7 = arith.constant 7 : index
    %c0_76 = arith.constant 0 : index
    %c0_77 = arith.constant 0 : index
    %107 = vector.load %arg8[%c7, %c0_76, %c0_77] : memref<8x32x128xf32, #tpu.memory_space<vmem>>, vector<1x32x128xf32>
    %108 = vector.shape_cast %107 : vector<1x32x128xf32> to vector<32x128xf32>
    %cst_78 = arith.constant dense<0.000000e+00> : vector<32x128xf32>
    %109 = tpu.matmul %21, %108, %cst_78 {dimension_numbers = #tpu.dot_dimension_numbers<[1], [0], [0], [1], [0, 0, 1, 1], [], []>} : vector<32x32xf32>, vector<32x128xf32>, vector<32x128xf32> -> vector<32x128xf32>
    %110 = arith.subf %109, %22 : vector<32x128xf32>
    %111 = arith.mulf %110, %110 : vector<32x128xf32>
    %cst_79 = arith.constant dense<0.000000e+00> : vector<128xf32>
    %112 = vector.multi_reduction <add>, %111, %cst_79 [0] : vector<32x128xf32> to vector<128xf32>
    %113 = vector.shape_cast %112 : vector<128xf32> to vector<1x128xf32>
    %cst_80 = arith.constant 3.125000e-02 : f32
    %114 = vector.broadcast %cst_80 : f32 to vector<1x128xf32>
    %115 = arith.mulf %113, %114 : vector<1x128xf32>
    %c1_81 = arith.constant 1 : index
    %c7_82 = arith.constant 7 : index
    %c0_83 = arith.constant 0 : index
    %116 = vector.load %arg7[%c1_81, %c7_82, %c0_83] : memref<3x8x128xf32, #tpu.memory_space<vmem>>, vector<1x1x128xf32>
    %117 = vector.shape_cast %116 : vector<1x1x128xf32> to vector<1x128xf32>
    %118 = vector.shape_cast %115 : vector<1x128xf32> to vector<1x1x128xf32>
    tpu.vector_store %arg7[%c1_81, %c7_82, %c0_83], %118 {strides = array<i32>} : memref<3x8x128xf32, #tpu.memory_space<vmem>>, vector<1x1x128xf32>,
    %cst_84 = arith.constant 0.000000e+00 : f32
    %119 = vector.broadcast %cst_84 : f32 to vector<8x128xf32>
    %c0_85 = arith.constant 0 : index
    %c0_86 = arith.constant 0 : index
    %120 = vector.load %arg9[%c0_85, %c0_86] : memref<8x128xf32, #tpu.memory_space<vmem>>, vector<8x128xf32>
    tpu.vector_store %arg9[%c0_85, %c0_86], %119 {strides = array<i32>} : memref<8x128xf32, #tpu.memory_space<vmem>>, vector<8x128xf32>,
    %c0_87 = arith.constant 0 : index
    %c0_88 = arith.constant 0 : index
    %c0_89 = arith.constant 0 : index
    %121 = vector.load %arg8[%c0_87, %c0_88, %c0_89] : memref<8x32x128xf32, #tpu.memory_space<vmem>>, vector<1x32x128xf32>
    %122 = vector.shape_cast %121 : vector<1x32x128xf32> to vector<32x128xf32>
    %c1_90 = arith.constant 1 : index
    %c0_91 = arith.constant 0 : index
    %c0_92 = arith.constant 0 : index
    %123 = vector.load %arg8[%c1_90, %c0_91, %c0_92] : memref<8x32x128xf32, #tpu.memory_space<vmem>>, vector<1x32x128xf32>
    %124 = vector.shape_cast %123 : vector<1x32x128xf32> to vector<32x128xf32>
    %125 = arith.subf %122, %124 : vector<32x128xf32>
    %126 = arith.mulf %125, %125 : vector<32x128xf32>
    %127 = vector.extract_strided_slice %126 {offsets = [0, 0], sizes = [8, 128], strides = [1, 1]} : vector<32x128xf32> to vector<8x128xf32>
    %128 = vector.extract_strided_slice %126 {offsets = [8, 0], sizes = [8, 128], strides = [1, 1]} : vector<32x128xf32> to vector<8x128xf32>
    %129 = arith.addf %127, %128 : vector<8x128xf32>
    %130 = vector.extract_strided_slice %126 {offsets = [16, 0], sizes = [8, 128], strides = [1, 1]} : vector<32x128xf32> to vector<8x128xf32>
    %131 = arith.addf %129, %130 : vector<8x128xf32>
    %132 = vector.extract_strided_slice %126 {offsets = [24, 0], sizes = [8, 128], strides = [1, 1]} : vector<32x128xf32> to vector<8x128xf32>
    %133 = arith.addf %131, %132 : vector<8x128xf32>
    %134 = math.sqrt %133 : vector<8x128xf32>
    %cst_93 = arith.constant dense<0.000000e+00> : vector<128xf32>
    %135 = vector.multi_reduction <add>, %134, %cst_93 [0] : vector<8x128xf32> to vector<128xf32>
    %136 = vector.shape_cast %135 : vector<128xf32> to vector<1x128xf32>
    %cst_94 = arith.constant 1.250000e-01 : f32
    %137 = vector.broadcast %cst_94 : f32 to vector<1x128xf32>
    %138 = arith.mulf %136, %137 : vector<1x128xf32>
    %cst_95 = arith.constant -1.000000e-01 : f32
    %139 = vector.broadcast %cst_95 : f32 to vector<1x128xf32>
    %140 = arith.mulf %139, %138 : vector<1x128xf32>
    %141 = math.tanh %140 : vector<1x128xf32>
    %c0_96 = arith.constant 0 : index
    %c0_97 = arith.constant 0 : index
    %142 = vector.load %arg9[%c0_96, %c0_97] : memref<8x128xf32, #tpu.memory_space<vmem>>, vector<1x128xf32>
    %143 = arith.addf %142, %141 : vector<1x128xf32>
    %c0_98 = arith.constant 0 : index
    %c0_99 = arith.constant 0 : index
    %144 = vector.load %arg9[%c0_98, %c0_99] : memref<8x128xf32, #tpu.memory_space<vmem>>, vector<1x128xf32>
    tpu.vector_store %arg9[%c0_98, %c0_99], %143 {strides = array<i32>} : memref<8x128xf32, #tpu.memory_space<vmem>>, vector<1x128xf32>,
    %c1_100 = arith.constant 1 : index
    %c0_101 = arith.constant 0 : index
    %145 = vector.load %arg9[%c1_100, %c0_101] : memref<8x128xf32, #tpu.memory_space<vmem>>, vector<1x128xf32>
    %146 = arith.addf %145, %141 : vector<1x128xf32>
    %c1_102 = arith.constant 1 : index
    %c0_103 = arith.constant 0 : index
    %147 = vector.load %arg9[%c1_102, %c0_103] : memref<8x128xf32, #tpu.memory_space<vmem>>, vector<1x128xf32>
    tpu.vector_store %arg9[%c1_102, %c0_103], %146 {strides = array<i32>} : memref<8x128xf32, #tpu.memory_space<vmem>>, vector<1x128xf32>,
    %c2_104 = arith.constant 2 : index
    %c0_105 = arith.constant 0 : index
    %c0_106 = arith.constant 0 : index
    %148 = vector.load %arg8[%c2_104, %c0_105, %c0_106] : memref<8x32x128xf32, #tpu.memory_space<vmem>>, vector<1x32x128xf32>
    %149 = vector.shape_cast %148 : vector<1x32x128xf32> to vector<32x128xf32>
    %150 = arith.subf %122, %149 : vector<32x128xf32>
    %151 = arith.mulf %150, %150 : vector<32x128xf32>
    %152 = vector.extract_strided_slice %151 {offsets = [0, 0], sizes = [8, 128], strides = [1, 1]} : vector<32x128xf32> to vector<8x128xf32>
    %153 = vector.extract_strided_slice %151 {offsets = [8, 0], sizes = [8, 128], strides = [1, 1]} : vector<32x128xf32> to vector<8x128xf32>
    %154 = arith.addf %152, %153 : vector<8x128xf32>
    %155 = vector.extract_strided_slice %151 {offsets = [16, 0], sizes = [8, 128], strides = [1, 1]} : vector<32x128xf32> to vector<8x128xf32>
    %156 = arith.addf %154, %155 : vector<8x128xf32>
    %157 = vector.extract_strided_slice %151 {offsets = [24, 0], sizes = [8, 128], strides = [1, 1]} : vector<32x128xf32> to vector<8x128xf32>
    %158 = arith.addf %156, %157 : vector<8x128xf32>
    %159 = math.sqrt %158 : vector<8x128xf32>
    %cst_107 = arith.constant dense<0.000000e+00> : vector<128xf32>
    %160 = vector.multi_reduction <add>, %159, %cst_107 [0] : vector<8x128xf32> to vector<128xf32>
    %161 = vector.shape_cast %160 : vector<128xf32> to vector<1x128xf32>
    %cst_108 = arith.constant 1.250000e-01 : f32
    %162 = vector.broadcast %cst_108 : f32 to vector<1x128xf32>
    %163 = arith.mulf %161, %162 : vector<1x128xf32>
    %cst_109 = arith.constant -1.000000e-01 : f32
    %164 = vector.broadcast %cst_109 : f32 to vector<1x128xf32>
    %165 = arith.mulf %164, %163 : vector<1x128xf32>
    %166 = math.tanh %165 : vector<1x128xf32>
    %c0_110 = arith.constant 0 : index
    %c0_111 = arith.constant 0 : index
    %167 = vector.load %arg9[%c0_110, %c0_111] : memref<8x128xf32, #tpu.memory_space<vmem>>, vector<1x128xf32>
    %168 = arith.addf %167, %166 : vector<1x128xf32>
    %c0_112 = arith.constant 0 : index
    %c0_113 = arith.constant 0 : index
    %169 = vector.load %arg9[%c0_112, %c0_113] : memref<8x128xf32, #tpu.memory_space<vmem>>, vector<1x128xf32>
    tpu.vector_store %arg9[%c0_112, %c0_113], %168 {strides = array<i32>} : memref<8x128xf32, #tpu.memory_space<vmem>>, vector<1x128xf32>,
    %c2_114 = arith.constant 2 : index
    %c0_115 = arith.constant 0 : index
    %170 = vector.load %arg9[%c2_114, %c0_115] : memref<8x128xf32, #tpu.memory_space<vmem>>, vector<1x128xf32>
    %171 = arith.addf %170, %166 : vector<1x128xf32>
    %c2_116 = arith.constant 2 : index
    %c0_117 = arith.constant 0 : index
    %172 = vector.load %arg9[%c2_116, %c0_117] : memref<8x128xf32, #tpu.memory_space<vmem>>, vector<1x128xf32>
    tpu.vector_store %arg9[%c2_116, %c0_117], %171 {strides = array<i32>} : memref<8x128xf32, #tpu.memory_space<vmem>>, vector<1x128xf32>,
    %c3_118 = arith.constant 3 : index
    %c0_119 = arith.constant 0 : index
    %c0_120 = arith.constant 0 : index
    %173 = vector.load %arg8[%c3_118, %c0_119, %c0_120] : memref<8x32x128xf32, #tpu.memory_space<vmem>>, vector<1x32x128xf32>
    %174 = vector.shape_cast %173 : vector<1x32x128xf32> to vector<32x128xf32>
    %175 = arith.subf %122, %174 : vector<32x128xf32>
    %176 = arith.mulf %175, %175 : vector<32x128xf32>
    %177 = vector.extract_strided_slice %176 {offsets = [0, 0], sizes = [8, 128], strides = [1, 1]} : vector<32x128xf32> to vector<8x128xf32>
    %178 = vector.extract_strided_slice %176 {offsets = [8, 0], sizes = [8, 128], strides = [1, 1]} : vector<32x128xf32> to vector<8x128xf32>
    %179 = arith.addf %177, %178 : vector<8x128xf32>
    %180 = vector.extract_strided_slice %176 {offsets = [16, 0], sizes = [8, 128], strides = [1, 1]} : vector<32x128xf32> to vector<8x128xf32>
    %181 = arith.addf %179, %180 : vector<8x128xf32>
    %182 = vector.extract_strided_slice %176 {offsets = [24, 0], sizes = [8, 128], strides = [1, 1]} : vector<32x128xf32> to vector<8x128xf32>
    %183 = arith.addf %181, %182 : vector<8x128xf32>
    %184 = math.sqrt %183 : vector<8x128xf32>
    %cst_121 = arith.constant dense<0.000000e+00> : vector<128xf32>
    %185 = vector.multi_reduction <add>, %184, %cst_121 [0] : vector<8x128xf32> to vector<128xf32>
    %186 = vector.shape_cast %185 : vector<128xf32> to vector<1x128xf32>
    %cst_122 = arith.constant 1.250000e-01 : f32
    %187 = vector.broadcast %cst_122 : f32 to vector<1x128xf32>
    %188 = arith.mulf %186, %187 : vector<1x128xf32>
    %cst_123 = arith.constant -1.000000e-01 : f32
    %189 = vector.broadcast %cst_123 : f32 to vector<1x128xf32>
    %190 = arith.mulf %189, %188 : vector<1x128xf32>
    %191 = math.tanh %190 : vector<1x128xf32>
    %c0_124 = arith.constant 0 : index
    %c0_125 = arith.constant 0 : index
    %192 = vector.load %arg9[%c0_124, %c0_125] : memref<8x128xf32, #tpu.memory_space<vmem>>, vector<1x128xf32>
    %193 = arith.addf %192, %191 : vector<1x128xf32>
    %c0_126 = arith.constant 0 : index
    %c0_127 = arith.constant 0 : index
    %194 = vector.load %arg9[%c0_126, %c0_127] : memref<8x128xf32, #tpu.memory_space<vmem>>, vector<1x128xf32>
    tpu.vector_store %arg9[%c0_126, %c0_127], %193 {strides = array<i32>} : memref<8x128xf32, #tpu.memory_space<vmem>>, vector<1x128xf32>,
    %c3_128 = arith.constant 3 : index
    %c0_129 = arith.constant 0 : index
    %195 = vector.load %arg9[%c3_128, %c0_129] : memref<8x128xf32, #tpu.memory_space<vmem>>, vector<1x128xf32>
    %196 = arith.addf %195, %191 : vector<1x128xf32>
    %c3_130 = arith.constant 3 : index
    %c0_131 = arith.constant 0 : index
    %197 = vector.load %arg9[%c3_130, %c0_131] : memref<8x128xf32, #tpu.memory_space<vmem>>, vector<1x128xf32>
    tpu.vector_store %arg9[%c3_130, %c0_131], %196 {strides = array<i32>} : memref<8x128xf32, #tpu.memory_space<vmem>>, vector<1x128xf32>,
    %c4_132 = arith.constant 4 : index
    %c0_133 = arith.constant 0 : index
    %c0_134 = arith.constant 0 : index
    %198 = vector.load %arg8[%c4_132, %c0_133, %c0_134] : memref<8x32x128xf32, #tpu.memory_space<vmem>>, vector<1x32x128xf32>
    %199 = vector.shape_cast %198 : vector<1x32x128xf32> to vector<32x128xf32>
    %200 = arith.subf %122, %199 : vector<32x128xf32>
    %201 = arith.mulf %200, %200 : vector<32x128xf32>
    %202 = vector.extract_strided_slice %201 {offsets = [0, 0], sizes = [8, 128], strides = [1, 1]} : vector<32x128xf32> to vector<8x128xf32>
    %203 = vector.extract_strided_slice %201 {offsets = [8, 0], sizes = [8, 128], strides = [1, 1]} : vector<32x128xf32> to vector<8x128xf32>
    %204 = arith.addf %202, %203 : vector<8x128xf32>
    %205 = vector.extract_strided_slice %201 {offsets = [16, 0], sizes = [8, 128], strides = [1, 1]} : vector<32x128xf32> to vector<8x128xf32>
    %206 = arith.addf %204, %205 : vector<8x128xf32>
    %207 = vector.extract_strided_slice %201 {offsets = [24, 0], sizes = [8, 128], strides = [1, 1]} : vector<32x128xf32> to vector<8x128xf32>
    %208 = arith.addf %206, %207 : vector<8x128xf32>
    %209 = math.sqrt %208 : vector<8x128xf32>
    %cst_135 = arith.constant dense<0.000000e+00> : vector<128xf32>
    %210 = vector.multi_reduction <add>, %209, %cst_135 [0] : vector<8x128xf32> to vector<128xf32>
    %211 = vector.shape_cast %210 : vector<128xf32> to vector<1x128xf32>
    %cst_136 = arith.constant 1.250000e-01 : f32
    %212 = vector.broadcast %cst_136 : f32 to vector<1x128xf32>
    %213 = arith.mulf %211, %212 : vector<1x128xf32>
    %cst_137 = arith.constant -1.000000e-01 : f32
    %214 = vector.broadcast %cst_137 : f32 to vector<1x128xf32>
    %215 = arith.mulf %214, %213 : vector<1x128xf32>
    %216 = math.tanh %215 : vector<1x128xf32>
    %c0_138 = arith.constant 0 : index
    %c0_139 = arith.constant 0 : index
    %217 = vector.load %arg9[%c0_138, %c0_139] : memref<8x128xf32, #tpu.memory_space<vmem>>, vector<1x128xf32>
    %218 = arith.addf %217, %216 : vector<1x128xf32>
    %c0_140 = arith.constant 0 : index
    %c0_141 = arith.constant 0 : index
    %219 = vector.load %arg9[%c0_140, %c0_141] : memref<8x128xf32, #tpu.memory_space<vmem>>, vector<1x128xf32>
    tpu.vector_store %arg9[%c0_140, %c0_141], %218 {strides = array<i32>} : memref<8x128xf32, #tpu.memory_space<vmem>>, vector<1x128xf32>,
    %c4_142 = arith.constant 4 : index
    %c0_143 = arith.constant 0 : index
    %220 = vector.load %arg9[%c4_142, %c0_143] : memref<8x128xf32, #tpu.memory_space<vmem>>, vector<1x128xf32>
    %221 = arith.addf %220, %216 : vector<1x128xf32>
    %c4_144 = arith.constant 4 : index
    %c0_145 = arith.constant 0 : index
    %222 = vector.load %arg9[%c4_144, %c0_145] : memref<8x128xf32, #tpu.memory_space<vmem>>, vector<1x128xf32>
    tpu.vector_store %arg9[%c4_144, %c0_145], %221 {strides = array<i32>} : memref<8x128xf32, #tpu.memory_space<vmem>>, vector<1x128xf32>,
    %c5_146 = arith.constant 5 : index
    %c0_147 = arith.constant 0 : index
    %c0_148 = arith.constant 0 : index
    %223 = vector.load %arg8[%c5_146, %c0_147, %c0_148] : memref<8x32x128xf32, #tpu.memory_space<vmem>>, vector<1x32x128xf32>
    %224 = vector.shape_cast %223 : vector<1x32x128xf32> to vector<32x128xf32>
    %225 = arith.subf %122, %224 : vector<32x128xf32>
    %226 = arith.mulf %225, %225 : vector<32x128xf32>
    %227 = vector.extract_strided_slice %226 {offsets = [0, 0], sizes = [8, 128], strides = [1, 1]} : vector<32x128xf32> to vector<8x128xf32>
    %228 = vector.extract_strided_slice %226 {offsets = [8, 0], sizes = [8, 128], strides = [1, 1]} : vector<32x128xf32> to vector<8x128xf32>
    %229 = arith.addf %227, %228 : vector<8x128xf32>
    %230 = vector.extract_strided_slice %226 {offsets = [16, 0], sizes = [8, 128], strides = [1, 1]} : vector<32x128xf32> to vector<8x128xf32>
    %231 = arith.addf %229, %230 : vector<8x128xf32>
    %232 = vector.extract_strided_slice %226 {offsets = [24, 0], sizes = [8, 128], strides = [1, 1]} : vector<32x128xf32> to vector<8x128xf32>
    %233 = arith.addf %231, %232 : vector<8x128xf32>
    %234 = math.sqrt %233 : vector<8x128xf32>
    %cst_149 = arith.constant dense<0.000000e+00> : vector<128xf32>
    %235 = vector.multi_reduction <add>, %234, %cst_149 [0] : vector<8x128xf32> to vector<128xf32>
    %236 = vector.shape_cast %235 : vector<128xf32> to vector<1x128xf32>
    %cst_150 = arith.constant 1.250000e-01 : f32
    %237 = vector.broadcast %cst_150 : f32 to vector<1x128xf32>
    %238 = arith.mulf %236, %237 : vector<1x128xf32>
    %cst_151 = arith.constant -1.000000e-01 : f32
    %239 = vector.broadcast %cst_151 : f32 to vector<1x128xf32>
    %240 = arith.mulf %239, %238 : vector<1x128xf32>
    %241 = math.tanh %240 : vector<1x128xf32>
    %c0_152 = arith.constant 0 : index
    %c0_153 = arith.constant 0 : index
    %242 = vector.load %arg9[%c0_152, %c0_153] : memref<8x128xf32, #tpu.memory_space<vmem>>, vector<1x128xf32>
    %243 = arith.addf %242, %241 : vector<1x128xf32>
    %c0_154 = arith.constant 0 : index
    %c0_155 = arith.constant 0 : index
    %244 = vector.load %arg9[%c0_154, %c0_155] : memref<8x128xf32, #tpu.memory_space<vmem>>, vector<1x128xf32>
    tpu.vector_store %arg9[%c0_154, %c0_155], %243 {strides = array<i32>} : memref<8x128xf32, #tpu.memory_space<vmem>>, vector<1x128xf32>,
    %c5_156 = arith.constant 5 : index
    %c0_157 = arith.constant 0 : index
    %245 = vector.load %arg9[%c5_156, %c0_157] : memref<8x128xf32, #tpu.memory_space<vmem>>, vector<1x128xf32>
    %246 = arith.addf %245, %241 : vector<1x128xf32>
    %c5_158 = arith.constant 5 : index
    %c0_159 = arith.constant 0 : index
    %247 = vector.load %arg9[%c5_158, %c0_159] : memref<8x128xf32, #tpu.memory_space<vmem>>, vector<1x128xf32>
    tpu.vector_store %arg9[%c5_158, %c0_159], %246 {strides = array<i32>} : memref<8x128xf32, #tpu.memory_space<vmem>>, vector<1x128xf32>,
    %c6_160 = arith.constant 6 : index
    %c0_161 = arith.constant 0 : index
    %c0_162 = arith.constant 0 : index
    %248 = vector.load %arg8[%c6_160, %c0_161, %c0_162] : memref<8x32x128xf32, #tpu.memory_space<vmem>>, vector<1x32x128xf32>
    %249 = vector.shape_cast %248 : vector<1x32x128xf32> to vector<32x128xf32>
    %250 = arith.subf %122, %249 : vector<32x128xf32>
    %251 = arith.mulf %250, %250 : vector<32x128xf32>
    %252 = vector.extract_strided_slice %251 {offsets = [0, 0], sizes = [8, 128], strides = [1, 1]} : vector<32x128xf32> to vector<8x128xf32>
    %253 = vector.extract_strided_slice %251 {offsets = [8, 0], sizes = [8, 128], strides = [1, 1]} : vector<32x128xf32> to vector<8x128xf32>
    %254 = arith.addf %252, %253 : vector<8x128xf32>
    %255 = vector.extract_strided_slice %251 {offsets = [16, 0], sizes = [8, 128], strides = [1, 1]} : vector<32x128xf32> to vector<8x128xf32>
    %256 = arith.addf %254, %255 : vector<8x128xf32>
    %257 = vector.extract_strided_slice %251 {offsets = [24, 0], sizes = [8, 128], strides = [1, 1]} : vector<32x128xf32> to vector<8x128xf32>
    %258 = arith.addf %256, %257 : vector<8x128xf32>
    %259 = math.sqrt %258 : vector<8x128xf32>
    %cst_163 = arith.constant dense<0.000000e+00> : vector<128xf32>
    %260 = vector.multi_reduction <add>, %259, %cst_163 [0] : vector<8x128xf32> to vector<128xf32>
    %261 = vector.shape_cast %260 : vector<128xf32> to vector<1x128xf32>
    %cst_164 = arith.constant 1.250000e-01 : f32
    %262 = vector.broadcast %cst_164 : f32 to vector<1x128xf32>
    %263 = arith.mulf %261, %262 : vector<1x128xf32>
    %cst_165 = arith.constant -1.000000e-01 : f32
    %264 = vector.broadcast %cst_165 : f32 to vector<1x128xf32>
    %265 = arith.mulf %264, %263 : vector<1x128xf32>
    %266 = math.tanh %265 : vector<1x128xf32>
    %c0_166 = arith.constant 0 : index
    %c0_167 = arith.constant 0 : index
    %267 = vector.load %arg9[%c0_166, %c0_167] : memref<8x128xf32, #tpu.memory_space<vmem>>, vector<1x128xf32>
    %268 = arith.addf %267, %266 : vector<1x128xf32>
    %c0_168 = arith.constant 0 : index
    %c0_169 = arith.constant 0 : index
    %269 = vector.load %arg9[%c0_168, %c0_169] : memref<8x128xf32, #tpu.memory_space<vmem>>, vector<1x128xf32>
    tpu.vector_store %arg9[%c0_168, %c0_169], %268 {strides = array<i32>} : memref<8x128xf32, #tpu.memory_space<vmem>>, vector<1x128xf32>,
    %c6_170 = arith.constant 6 : index
    %c0_171 = arith.constant 0 : index
    %270 = vector.load %arg9[%c6_170, %c0_171] : memref<8x128xf32, #tpu.memory_space<vmem>>, vector<1x128xf32>
    %271 = arith.addf %270, %266 : vector<1x128xf32>
    %c6_172 = arith.constant 6 : index
    %c0_173 = arith.constant 0 : index
    %272 = vector.load %arg9[%c6_172, %c0_173] : memref<8x128xf32, #tpu.memory_space<vmem>>, vector<1x128xf32>
    tpu.vector_store %arg9[%c6_172, %c0_173], %271 {strides = array<i32>} : memref<8x128xf32, #tpu.memory_space<vmem>>, vector<1x128xf32>,
    %c7_174 = arith.constant 7 : index
    %c0_175 = arith.constant 0 : index
    %c0_176 = arith.constant 0 : index
    %273 = vector.load %arg8[%c7_174, %c0_175, %c0_176] : memref<8x32x128xf32, #tpu.memory_space<vmem>>, vector<1x32x128xf32>
    %274 = vector.shape_cast %273 : vector<1x32x128xf32> to vector<32x128xf32>
    %275 = arith.subf %122, %274 : vector<32x128xf32>
    %276 = arith.mulf %275, %275 : vector<32x128xf32>
    %277 = vector.extract_strided_slice %276 {offsets = [0, 0], sizes = [8, 128], strides = [1, 1]} : vector<32x128xf32> to vector<8x128xf32>
    %278 = vector.extract_strided_slice %276 {offsets = [8, 0], sizes = [8, 128], strides = [1, 1]} : vector<32x128xf32> to vector<8x128xf32>
    %279 = arith.addf %277, %278 : vector<8x128xf32>
    %280 = vector.extract_strided_slice %276 {offsets = [16, 0], sizes = [8, 128], strides = [1, 1]} : vector<32x128xf32> to vector<8x128xf32>
    %281 = arith.addf %279, %280 : vector<8x128xf32>
    %282 = vector.extract_strided_slice %276 {offsets = [24, 0], sizes = [8, 128], strides = [1, 1]} : vector<32x128xf32> to vector<8x128xf32>
    %283 = arith.addf %281, %282 : vector<8x128xf32>
    %284 = math.sqrt %283 : vector<8x128xf32>
    %cst_177 = arith.constant dense<0.000000e+00> : vector<128xf32>
    %285 = vector.multi_reduction <add>, %284, %cst_177 [0] : vector<8x128xf32> to vector<128xf32>
    %286 = vector.shape_cast %285 : vector<128xf32> to vector<1x128xf32>
    %cst_178 = arith.constant 1.250000e-01 : f32
    %287 = vector.broadcast %cst_178 : f32 to vector<1x128xf32>
    %288 = arith.mulf %286, %287 : vector<1x128xf32>
    %cst_179 = arith.constant -1.000000e-01 : f32
    %289 = vector.broadcast %cst_179 : f32 to vector<1x128xf32>
    %290 = arith.mulf %289, %288 : vector<1x128xf32>
    %291 = math.tanh %290 : vector<1x128xf32>
    %c0_180 = arith.constant 0 : index
    %c0_181 = arith.constant 0 : index
    %292 = vector.load %arg9[%c0_180, %c0_181] : memref<8x128xf32, #tpu.memory_space<vmem>>, vector<1x128xf32>
    %293 = arith.addf %292, %291 : vector<1x128xf32>
    %c0_182 = arith.constant 0 : index
    %c0_183 = arith.constant 0 : index
    %294 = vector.load %arg9[%c0_182, %c0_183] : memref<8x128xf32, #tpu.memory_space<vmem>>, vector<1x128xf32>
    tpu.vector_store %arg9[%c0_182, %c0_183], %293 {strides = array<i32>} : memref<8x128xf32, #tpu.memory_space<vmem>>, vector<1x128xf32>,
    %c7_184 = arith.constant 7 : index
    %c0_185 = arith.constant 0 : index
    %295 = vector.load %arg9[%c7_184, %c0_185] : memref<8x128xf32, #tpu.memory_space<vmem>>, vector<1x128xf32>
    %296 = arith.addf %295, %291 : vector<1x128xf32>
    %c7_186 = arith.constant 7 : index
    %c0_187 = arith.constant 0 : index
    %297 = vector.load %arg9[%c7_186, %c0_187] : memref<8x128xf32, #tpu.memory_space<vmem>>, vector<1x128xf32>
    tpu.vector_store %arg9[%c7_186, %c0_187], %296 {strides = array<i32>} : memref<8x128xf32, #tpu.memory_space<vmem>>, vector<1x128xf32>,
    %c1_188 = arith.constant 1 : index
    %c0_189 = arith.constant 0 : index
    %c0_190 = arith.constant 0 : index
    %298 = vector.load %arg8[%c1_188, %c0_189, %c0_190] : memref<8x32x128xf32, #tpu.memory_space<vmem>>, vector<1x32x128xf32>
    %299 = vector.shape_cast %298 : vector<1x32x128xf32> to vector<32x128xf32>
    %c2_191 = arith.constant 2 : index
    %c0_192 = arith.constant 0 : index
    %c0_193 = arith.constant 0 : index
    %300 = vector.load %arg8[%c2_191, %c0_192, %c0_193] : memref<8x32x128xf32, #tpu.memory_space<vmem>>, vector<1x32x128xf32>
    %301 = vector.shape_cast %300 : vector<1x32x128xf32> to vector<32x128xf32>
    %302 = arith.subf %299, %301 : vector<32x128xf32>
    %303 = arith.mulf %302, %302 : vector<32x128xf32>
    %304 = vector.extract_strided_slice %303 {offsets = [0, 0], sizes = [8, 128], strides = [1, 1]} : vector<32x128xf32> to vector<8x128xf32>
    %305 = vector.extract_strided_slice %303 {offsets = [8, 0], sizes = [8, 128], strides = [1, 1]} : vector<32x128xf32> to vector<8x128xf32>
    %306 = arith.addf %304, %305 : vector<8x128xf32>
    %307 = vector.extract_strided_slice %303 {offsets = [16, 0], sizes = [8, 128], strides = [1, 1]} : vector<32x128xf32> to vector<8x128xf32>
    %308 = arith.addf %306, %307 : vector<8x128xf32>
    %309 = vector.extract_strided_slice %303 {offsets = [24, 0], sizes = [8, 128], strides = [1, 1]} : vector<32x128xf32> to vector<8x128xf32>
    %310 = arith.addf %308, %309 : vector<8x128xf32>
    %311 = math.sqrt %310 : vector<8x128xf32>
    %cst_194 = arith.constant dense<0.000000e+00> : vector<128xf32>
    %312 = vector.multi_reduction <add>, %311, %cst_194 [0] : vector<8x128xf32> to vector<128xf32>
    %313 = vector.shape_cast %312 : vector<128xf32> to vector<1x128xf32>
    %cst_195 = arith.constant 1.250000e-01 : f32
    %314 = vector.broadcast %cst_195 : f32 to vector<1x128xf32>
    %315 = arith.mulf %313, %314 : vector<1x128xf32>
    %cst_196 = arith.constant -1.000000e-01 : f32
    %316 = vector.broadcast %cst_196 : f32 to vector<1x128xf32>
    %317 = arith.mulf %316, %315 : vector<1x128xf32>
    %318 = math.tanh %317 : vector<1x128xf32>
    %c1_197 = arith.constant 1 : index
    %c0_198 = arith.constant 0 : index
    %319 = vector.load %arg9[%c1_197, %c0_198] : memref<8x128xf32, #tpu.memory_space<vmem>>, vector<1x128xf32>
    %320 = arith.addf %319, %318 : vector<1x128xf32>
    %c1_199 = arith.constant 1 : index
    %c0_200 = arith.constant 0 : index
    %321 = vector.load %arg9[%c1_199, %c0_200] : memref<8x128xf32, #tpu.memory_space<vmem>>, vector<1x128xf32>
    tpu.vector_store %arg9[%c1_199, %c0_200], %320 {strides = array<i32>} : memref<8x128xf32, #tpu.memory_space<vmem>>, vector<1x128xf32>,
    %c2_201 = arith.constant 2 : index
    %c0_202 = arith.constant 0 : index
    %322 = vector.load %arg9[%c2_201, %c0_202] : memref<8x128xf32, #tpu.memory_space<vmem>>, vector<1x128xf32>
    %323 = arith.addf %322, %318 : vector<1x128xf32>
    %c2_203 = arith.constant 2 : index
    %c0_204 = arith.constant 0 : index
    %324 = vector.load %arg9[%c2_203, %c0_204] : memref<8x128xf32, #tpu.memory_space<vmem>>, vector<1x128xf32>
    tpu.vector_store %arg9[%c2_203, %c0_204], %323 {strides = array<i32>} : memref<8x128xf32, #tpu.memory_space<vmem>>, vector<1x128xf32>,
    %c3_205 = arith.constant 3 : index
    %c0_206 = arith.constant 0 : index
    %c0_207 = arith.constant 0 : index
    %325 = vector.load %arg8[%c3_205, %c0_206, %c0_207] : memref<8x32x128xf32, #tpu.memory_space<vmem>>, vector<1x32x128xf32>
    %326 = vector.shape_cast %325 : vector<1x32x128xf32> to vector<32x128xf32>
    %327 = arith.subf %299, %326 : vector<32x128xf32>
    %328 = arith.mulf %327, %327 : vector<32x128xf32>
    %329 = vector.extract_strided_slice %328 {offsets = [0, 0], sizes = [8, 128], strides = [1, 1]} : vector<32x128xf32> to vector<8x128xf32>
    %330 = vector.extract_strided_slice %328 {offsets = [8, 0], sizes = [8, 128], strides = [1, 1]} : vector<32x128xf32> to vector<8x128xf32>
    %331 = arith.addf %329, %330 : vector<8x128xf32>
    %332 = vector.extract_strided_slice %328 {offsets = [16, 0], sizes = [8, 128], strides = [1, 1]} : vector<32x128xf32> to vector<8x128xf32>
    %333 = arith.addf %331, %332 : vector<8x128xf32>
    %334 = vector.extract_strided_slice %328 {offsets = [24, 0], sizes = [8, 128], strides = [1, 1]} : vector<32x128xf32> to vector<8x128xf32>
    %335 = arith.addf %333, %334 : vector<8x128xf32>
    %336 = math.sqrt %335 : vector<8x128xf32>
    %cst_208 = arith.constant dense<0.000000e+00> : vector<128xf32>
    %337 = vector.multi_reduction <add>, %336, %cst_208 [0] : vector<8x128xf32> to vector<128xf32>
    %338 = vector.shape_cast %337 : vector<128xf32> to vector<1x128xf32>
    %cst_209 = arith.constant 1.250000e-01 : f32
    %339 = vector.broadcast %cst_209 : f32 to vector<1x128xf32>
    %340 = arith.mulf %338, %339 : vector<1x128xf32>
    %cst_210 = arith.constant -1.000000e-01 : f32
    %341 = vector.broadcast %cst_210 : f32 to vector<1x128xf32>
    %342 = arith.mulf %341, %340 : vector<1x128xf32>
    %343 = math.tanh %342 : vector<1x128xf32>
    %c1_211 = arith.constant 1 : index
    %c0_212 = arith.constant 0 : index
    %344 = vector.load %arg9[%c1_211, %c0_212] : memref<8x128xf32, #tpu.memory_space<vmem>>, vector<1x128xf32>
    %345 = arith.addf %344, %343 : vector<1x128xf32>
    %c1_213 = arith.constant 1 : index
    %c0_214 = arith.constant 0 : index
    %346 = vector.load %arg9[%c1_213, %c0_214] : memref<8x128xf32, #tpu.memory_space<vmem>>, vector<1x128xf32>
    tpu.vector_store %arg9[%c1_213, %c0_214], %345 {strides = array<i32>} : memref<8x128xf32, #tpu.memory_space<vmem>>, vector<1x128xf32>,
    %c3_215 = arith.constant 3 : index
    %c0_216 = arith.constant 0 : index
    %347 = vector.load %arg9[%c3_215, %c0_216] : memref<8x128xf32, #tpu.memory_space<vmem>>, vector<1x128xf32>
    %348 = arith.addf %347, %343 : vector<1x128xf32>
    %c3_217 = arith.constant 3 : index
    %c0_218 = arith.constant 0 : index
    %349 = vector.load %arg9[%c3_217, %c0_218] : memref<8x128xf32, #tpu.memory_space<vmem>>, vector<1x128xf32>
    tpu.vector_store %arg9[%c3_217, %c0_218], %348 {strides = array<i32>} : memref<8x128xf32, #tpu.memory_space<vmem>>, vector<1x128xf32>,
    %c4_219 = arith.constant 4 : index
    %c0_220 = arith.constant 0 : index
    %c0_221 = arith.constant 0 : index
    %350 = vector.load %arg8[%c4_219, %c0_220, %c0_221] : memref<8x32x128xf32, #tpu.memory_space<vmem>>, vector<1x32x128xf32>
    %351 = vector.shape_cast %350 : vector<1x32x128xf32> to vector<32x128xf32>
    %352 = arith.subf %299, %351 : vector<32x128xf32>
    %353 = arith.mulf %352, %352 : vector<32x128xf32>
    %354 = vector.extract_strided_slice %353 {offsets = [0, 0], sizes = [8, 128], strides = [1, 1]} : vector<32x128xf32> to vector<8x128xf32>
    %355 = vector.extract_strided_slice %353 {offsets = [8, 0], sizes = [8, 128], strides = [1, 1]} : vector<32x128xf32> to vector<8x128xf32>
    %356 = arith.addf %354, %355 : vector<8x128xf32>
    %357 = vector.extract_strided_slice %353 {offsets = [16, 0], sizes = [8, 128], strides = [1, 1]} : vector<32x128xf32> to vector<8x128xf32>
    %358 = arith.addf %356, %357 : vector<8x128xf32>
    %359 = vector.extract_strided_slice %353 {offsets = [24, 0], sizes = [8, 128], strides = [1, 1]} : vector<32x128xf32> to vector<8x128xf32>
    %360 = arith.addf %358, %359 : vector<8x128xf32>
    %361 = math.sqrt %360 : vector<8x128xf32>
    %cst_222 = arith.constant dense<0.000000e+00> : vector<128xf32>
    %362 = vector.multi_reduction <add>, %361, %cst_222 [0] : vector<8x128xf32> to vector<128xf32>
    %363 = vector.shape_cast %362 : vector<128xf32> to vector<1x128xf32>
    %cst_223 = arith.constant 1.250000e-01 : f32
    %364 = vector.broadcast %cst_223 : f32 to vector<1x128xf32>
    %365 = arith.mulf %363, %364 : vector<1x128xf32>
    %cst_224 = arith.constant -1.000000e-01 : f32
    %366 = vector.broadcast %cst_224 : f32 to vector<1x128xf32>
    %367 = arith.mulf %366, %365 : vector<1x128xf32>
    %368 = math.tanh %367 : vector<1x128xf32>
    %c1_225 = arith.constant 1 : index
    %c0_226 = arith.constant 0 : index
    %369 = vector.load %arg9[%c1_225, %c0_226] : memref<8x128xf32, #tpu.memory_space<vmem>>, vector<1x128xf32>
    %370 = arith.addf %369, %368 : vector<1x128xf32>
    %c1_227 = arith.constant 1 : index
    %c0_228 = arith.constant 0 : index
    %371 = vector.load %arg9[%c1_227, %c0_228] : memref<8x128xf32, #tpu.memory_space<vmem>>, vector<1x128xf32>
    tpu.vector_store %arg9[%c1_227, %c0_228], %370 {strides = array<i32>} : memref<8x128xf32, #tpu.memory_space<vmem>>, vector<1x128xf32>,
    %c4_229 = arith.constant 4 : index
    %c0_230 = arith.constant 0 : index
    %372 = vector.load %arg9[%c4_229, %c0_230] : memref<8x128xf32, #tpu.memory_space<vmem>>, vector<1x128xf32>
    %373 = arith.addf %372, %368 : vector<1x128xf32>
    %c4_231 = arith.constant 4 : index
    %c0_232 = arith.constant 0 : index
    %374 = vector.load %arg9[%c4_231, %c0_232] : memref<8x128xf32, #tpu.memory_space<vmem>>, vector<1x128xf32>
    tpu.vector_store %arg9[%c4_231, %c0_232], %373 {strides = array<i32>} : memref<8x128xf32, #tpu.memory_space<vmem>>, vector<1x128xf32>,
    %c5_233 = arith.constant 5 : index
    %c0_234 = arith.constant 0 : index
    %c0_235 = arith.constant 0 : index
    %375 = vector.load %arg8[%c5_233, %c0_234, %c0_235] : memref<8x32x128xf32, #tpu.memory_space<vmem>>, vector<1x32x128xf32>
    %376 = vector.shape_cast %375 : vector<1x32x128xf32> to vector<32x128xf32>
    %377 = arith.subf %299, %376 : vector<32x128xf32>
    %378 = arith.mulf %377, %377 : vector<32x128xf32>
    %379 = vector.extract_strided_slice %378 {offsets = [0, 0], sizes = [8, 128], strides = [1, 1]} : vector<32x128xf32> to vector<8x128xf32>
    %380 = vector.extract_strided_slice %378 {offsets = [8, 0], sizes = [8, 128], strides = [1, 1]} : vector<32x128xf32> to vector<8x128xf32>
    %381 = arith.addf %379, %380 : vector<8x128xf32>
    %382 = vector.extract_strided_slice %378 {offsets = [16, 0], sizes = [8, 128], strides = [1, 1]} : vector<32x128xf32> to vector<8x128xf32>
    %383 = arith.addf %381, %382 : vector<8x128xf32>
    %384 = vector.extract_strided_slice %378 {offsets = [24, 0], sizes = [8, 128], strides = [1, 1]} : vector<32x128xf32> to vector<8x128xf32>
    %385 = arith.addf %383, %384 : vector<8x128xf32>
    %386 = math.sqrt %385 : vector<8x128xf32>
    %cst_236 = arith.constant dense<0.000000e+00> : vector<128xf32>
    %387 = vector.multi_reduction <add>, %386, %cst_236 [0] : vector<8x128xf32> to vector<128xf32>
    %388 = vector.shape_cast %387 : vector<128xf32> to vector<1x128xf32>
    %cst_237 = arith.constant 1.250000e-01 : f32
    %389 = vector.broadcast %cst_237 : f32 to vector<1x128xf32>
    %390 = arith.mulf %388, %389 : vector<1x128xf32>
    %cst_238 = arith.constant -1.000000e-01 : f32
    %391 = vector.broadcast %cst_238 : f32 to vector<1x128xf32>
    %392 = arith.mulf %391, %390 : vector<1x128xf32>
    %393 = math.tanh %392 : vector<1x128xf32>
    %c1_239 = arith.constant 1 : index
    %c0_240 = arith.constant 0 : index
    %394 = vector.load %arg9[%c1_239, %c0_240] : memref<8x128xf32, #tpu.memory_space<vmem>>, vector<1x128xf32>
    %395 = arith.addf %394, %393 : vector<1x128xf32>
    %c1_241 = arith.constant 1 : index
    %c0_242 = arith.constant 0 : index
    %396 = vector.load %arg9[%c1_241, %c0_242] : memref<8x128xf32, #tpu.memory_space<vmem>>, vector<1x128xf32>
    tpu.vector_store %arg9[%c1_241, %c0_242], %395 {strides = array<i32>} : memref<8x128xf32, #tpu.memory_space<vmem>>, vector<1x128xf32>,
    %c5_243 = arith.constant 5 : index
    %c0_244 = arith.constant 0 : index
    %397 = vector.load %arg9[%c5_243, %c0_244] : memref<8x128xf32, #tpu.memory_space<vmem>>, vector<1x128xf32>
    %398 = arith.addf %397, %393 : vector<1x128xf32>
    %c5_245 = arith.constant 5 : index
    %c0_246 = arith.constant 0 : index
    %399 = vector.load %arg9[%c5_245, %c0_246] : memref<8x128xf32, #tpu.memory_space<vmem>>, vector<1x128xf32>
    tpu.vector_store %arg9[%c5_245, %c0_246], %398 {strides = array<i32>} : memref<8x128xf32, #tpu.memory_space<vmem>>, vector<1x128xf32>,
    %c6_247 = arith.constant 6 : index
    %c0_248 = arith.constant 0 : index
    %c0_249 = arith.constant 0 : index
    %400 = vector.load %arg8[%c6_247, %c0_248, %c0_249] : memref<8x32x128xf32, #tpu.memory_space<vmem>>, vector<1x32x128xf32>
    %401 = vector.shape_cast %400 : vector<1x32x128xf32> to vector<32x128xf32>
    %402 = arith.subf %299, %401 : vector<32x128xf32>
    %403 = arith.mulf %402, %402 : vector<32x128xf32>
    %404 = vector.extract_strided_slice %403 {offsets = [0, 0], sizes = [8, 128], strides = [1, 1]} : vector<32x128xf32> to vector<8x128xf32>
    %405 = vector.extract_strided_slice %403 {offsets = [8, 0], sizes = [8, 128], strides = [1, 1]} : vector<32x128xf32> to vector<8x128xf32>
    %406 = arith.addf %404, %405 : vector<8x128xf32>
    %407 = vector.extract_strided_slice %403 {offsets = [16, 0], sizes = [8, 128], strides = [1, 1]} : vector<32x128xf32> to vector<8x128xf32>
    %408 = arith.addf %406, %407 : vector<8x128xf32>
    %409 = vector.extract_strided_slice %403 {offsets = [24, 0], sizes = [8, 128], strides = [1, 1]} : vector<32x128xf32> to vector<8x128xf32>
    %410 = arith.addf %408, %409 : vector<8x128xf32>
    %411 = math.sqrt %410 : vector<8x128xf32>
    %cst_250 = arith.constant dense<0.000000e+00> : vector<128xf32>
    %412 = vector.multi_reduction <add>, %411, %cst_250 [0] : vector<8x128xf32> to vector<128xf32>
    %413 = vector.shape_cast %412 : vector<128xf32> to vector<1x128xf32>
    %cst_251 = arith.constant 1.250000e-01 : f32
    %414 = vector.broadcast %cst_251 : f32 to vector<1x128xf32>
    %415 = arith.mulf %413, %414 : vector<1x128xf32>
    %cst_252 = arith.constant -1.000000e-01 : f32
    %416 = vector.broadcast %cst_252 : f32 to vector<1x128xf32>
    %417 = arith.mulf %416, %415 : vector<1x128xf32>
    %418 = math.tanh %417 : vector<1x128xf32>
    %c1_253 = arith.constant 1 : index
    %c0_254 = arith.constant 0 : index
    %419 = vector.load %arg9[%c1_253, %c0_254] : memref<8x128xf32, #tpu.memory_space<vmem>>, vector<1x128xf32>
    %420 = arith.addf %419, %418 : vector<1x128xf32>
    %c1_255 = arith.constant 1 : index
    %c0_256 = arith.constant 0 : index
    %421 = vector.load %arg9[%c1_255, %c0_256] : memref<8x128xf32, #tpu.memory_space<vmem>>, vector<1x128xf32>
    tpu.vector_store %arg9[%c1_255, %c0_256], %420 {strides = array<i32>} : memref<8x128xf32, #tpu.memory_space<vmem>>, vector<1x128xf32>,
    %c6_257 = arith.constant 6 : index
    %c0_258 = arith.constant 0 : index
    %422 = vector.load %arg9[%c6_257, %c0_258] : memref<8x128xf32, #tpu.memory_space<vmem>>, vector<1x128xf32>
    %423 = arith.addf %422, %418 : vector<1x128xf32>
    %c6_259 = arith.constant 6 : index
    %c0_260 = arith.constant 0 : index
    %424 = vector.load %arg9[%c6_259, %c0_260] : memref<8x128xf32, #tpu.memory_space<vmem>>, vector<1x128xf32>
    tpu.vector_store %arg9[%c6_259, %c0_260], %423 {strides = array<i32>} : memref<8x128xf32, #tpu.memory_space<vmem>>, vector<1x128xf32>,
    %c7_261 = arith.constant 7 : index
    %c0_262 = arith.constant 0 : index
    %c0_263 = arith.constant 0 : index
    %425 = vector.load %arg8[%c7_261, %c0_262, %c0_263] : memref<8x32x128xf32, #tpu.memory_space<vmem>>, vector<1x32x128xf32>
    %426 = vector.shape_cast %425 : vector<1x32x128xf32> to vector<32x128xf32>
    %427 = arith.subf %299, %426 : vector<32x128xf32>
    %428 = arith.mulf %427, %427 : vector<32x128xf32>
    %429 = vector.extract_strided_slice %428 {offsets = [0, 0], sizes = [8, 128], strides = [1, 1]} : vector<32x128xf32> to vector<8x128xf32>
    %430 = vector.extract_strided_slice %428 {offsets = [8, 0], sizes = [8, 128], strides = [1, 1]} : vector<32x128xf32> to vector<8x128xf32>
    %431 = arith.addf %429, %430 : vector<8x128xf32>
    %432 = vector.extract_strided_slice %428 {offsets = [16, 0], sizes = [8, 128], strides = [1, 1]} : vector<32x128xf32> to vector<8x128xf32>
    %433 = arith.addf %431, %432 : vector<8x128xf32>
    %434 = vector.extract_strided_slice %428 {offsets = [24, 0], sizes = [8, 128], strides = [1, 1]} : vector<32x128xf32> to vector<8x128xf32>
    %435 = arith.addf %433, %434 : vector<8x128xf32>
    %436 = math.sqrt %435 : vector<8x128xf32>
    %cst_264 = arith.constant dense<0.000000e+00> : vector<128xf32>
    %437 = vector.multi_reduction <add>, %436, %cst_264 [0] : vector<8x128xf32> to vector<128xf32>
    %438 = vector.shape_cast %437 : vector<128xf32> to vector<1x128xf32>
    %cst_265 = arith.constant 1.250000e-01 : f32
    %439 = vector.broadcast %cst_265 : f32 to vector<1x128xf32>
    %440 = arith.mulf %438, %439 : vector<1x128xf32>
    %cst_266 = arith.constant -1.000000e-01 : f32
    %441 = vector.broadcast %cst_266 : f32 to vector<1x128xf32>
    %442 = arith.mulf %441, %440 : vector<1x128xf32>
    %443 = math.tanh %442 : vector<1x128xf32>
    %c1_267 = arith.constant 1 : index
    %c0_268 = arith.constant 0 : index
    %444 = vector.load %arg9[%c1_267, %c0_268] : memref<8x128xf32, #tpu.memory_space<vmem>>, vector<1x128xf32>
    %445 = arith.addf %444, %443 : vector<1x128xf32>
    %c1_269 = arith.constant 1 : index
    %c0_270 = arith.constant 0 : index
    %446 = vector.load %arg9[%c1_269, %c0_270] : memref<8x128xf32, #tpu.memory_space<vmem>>, vector<1x128xf32>
    tpu.vector_store %arg9[%c1_269, %c0_270], %445 {strides = array<i32>} : memref<8x128xf32, #tpu.memory_space<vmem>>, vector<1x128xf32>,
    %c7_271 = arith.constant 7 : index
    %c0_272 = arith.constant 0 : index
    %447 = vector.load %arg9[%c7_271, %c0_272] : memref<8x128xf32, #tpu.memory_space<vmem>>, vector<1x128xf32>
    %448 = arith.addf %447, %443 : vector<1x128xf32>
    %c7_273 = arith.constant 7 : index
    %c0_274 = arith.constant 0 : index
    %449 = vector.load %arg9[%c7_273, %c0_274] : memref<8x128xf32, #tpu.memory_space<vmem>>, vector<1x128xf32>
    tpu.vector_store %arg9[%c7_273, %c0_274], %448 {strides = array<i32>} : memref<8x128xf32, #tpu.memory_space<vmem>>, vector<1x128xf32>,
    %c2_275 = arith.constant 2 : index
    %c0_276 = arith.constant 0 : index
    %c0_277 = arith.constant 0 : index
    %450 = vector.load %arg8[%c2_275, %c0_276, %c0_277] : memref<8x32x128xf32, #tpu.memory_space<vmem>>, vector<1x32x128xf32>
    %451 = vector.shape_cast %450 : vector<1x32x128xf32> to vector<32x128xf32>
    %c3_278 = arith.constant 3 : index
    %c0_279 = arith.constant 0 : index
    %c0_280 = arith.constant 0 : index
    %452 = vector.load %arg8[%c3_278, %c0_279, %c0_280] : memref<8x32x128xf32, #tpu.memory_space<vmem>>, vector<1x32x128xf32>
    %453 = vector.shape_cast %452 : vector<1x32x128xf32> to vector<32x128xf32>
    %454 = arith.subf %451, %453 : vector<32x128xf32>
    %455 = arith.mulf %454, %454 : vector<32x128xf32>
    %456 = vector.extract_strided_slice %455 {offsets = [0, 0], sizes = [8, 128], strides = [1, 1]} : vector<32x128xf32> to vector<8x128xf32>
    %457 = vector.extract_strided_slice %455 {offsets = [8, 0], sizes = [8, 128], strides = [1, 1]} : vector<32x128xf32> to vector<8x128xf32>
    %458 = arith.addf %456, %457 : vector<8x128xf32>
    %459 = vector.extract_strided_slice %455 {offsets = [16, 0], sizes = [8, 128], strides = [1, 1]} : vector<32x128xf32> to vector<8x128xf32>
    %460 = arith.addf %458, %459 : vector<8x128xf32>
    %461 = vector.extract_strided_slice %455 {offsets = [24, 0], sizes = [8, 128], strides = [1, 1]} : vector<32x128xf32> to vector<8x128xf32>
    %462 = arith.addf %460, %461 : vector<8x128xf32>
    %463 = math.sqrt %462 : vector<8x128xf32>
    %cst_281 = arith.constant dense<0.000000e+00> : vector<128xf32>
    %464 = vector.multi_reduction <add>, %463, %cst_281 [0] : vector<8x128xf32> to vector<128xf32>
    %465 = vector.shape_cast %464 : vector<128xf32> to vector<1x128xf32>
    %cst_282 = arith.constant 1.250000e-01 : f32
    %466 = vector.broadcast %cst_282 : f32 to vector<1x128xf32>
    %467 = arith.mulf %465, %466 : vector<1x128xf32>
    %cst_283 = arith.constant -1.000000e-01 : f32
    %468 = vector.broadcast %cst_283 : f32 to vector<1x128xf32>
    %469 = arith.mulf %468, %467 : vector<1x128xf32>
    %470 = math.tanh %469 : vector<1x128xf32>
    %c2_284 = arith.constant 2 : index
    %c0_285 = arith.constant 0 : index
    %471 = vector.load %arg9[%c2_284, %c0_285] : memref<8x128xf32, #tpu.memory_space<vmem>>, vector<1x128xf32>
    %472 = arith.addf %471, %470 : vector<1x128xf32>
    %c2_286 = arith.constant 2 : index
    %c0_287 = arith.constant 0 : index
    %473 = vector.load %arg9[%c2_286, %c0_287] : memref<8x128xf32, #tpu.memory_space<vmem>>, vector<1x128xf32>
    tpu.vector_store %arg9[%c2_286, %c0_287], %472 {strides = array<i32>} : memref<8x128xf32, #tpu.memory_space<vmem>>, vector<1x128xf32>,
    %c3_288 = arith.constant 3 : index
    %c0_289 = arith.constant 0 : index
    %474 = vector.load %arg9[%c3_288, %c0_289] : memref<8x128xf32, #tpu.memory_space<vmem>>, vector<1x128xf32>
    %475 = arith.addf %474, %470 : vector<1x128xf32>
    %c3_290 = arith.constant 3 : index
    %c0_291 = arith.constant 0 : index
    %476 = vector.load %arg9[%c3_290, %c0_291] : memref<8x128xf32, #tpu.memory_space<vmem>>, vector<1x128xf32>
    tpu.vector_store %arg9[%c3_290, %c0_291], %475 {strides = array<i32>} : memref<8x128xf32, #tpu.memory_space<vmem>>, vector<1x128xf32>,
    %c4_292 = arith.constant 4 : index
    %c0_293 = arith.constant 0 : index
    %c0_294 = arith.constant 0 : index
    %477 = vector.load %arg8[%c4_292, %c0_293, %c0_294] : memref<8x32x128xf32, #tpu.memory_space<vmem>>, vector<1x32x128xf32>
    %478 = vector.shape_cast %477 : vector<1x32x128xf32> to vector<32x128xf32>
    %479 = arith.subf %451, %478 : vector<32x128xf32>
    %480 = arith.mulf %479, %479 : vector<32x128xf32>
    %481 = vector.extract_strided_slice %480 {offsets = [0, 0], sizes = [8, 128], strides = [1, 1]} : vector<32x128xf32> to vector<8x128xf32>
    %482 = vector.extract_strided_slice %480 {offsets = [8, 0], sizes = [8, 128], strides = [1, 1]} : vector<32x128xf32> to vector<8x128xf32>
    %483 = arith.addf %481, %482 : vector<8x128xf32>
    %484 = vector.extract_strided_slice %480 {offsets = [16, 0], sizes = [8, 128], strides = [1, 1]} : vector<32x128xf32> to vector<8x128xf32>
    %485 = arith.addf %483, %484 : vector<8x128xf32>
    %486 = vector.extract_strided_slice %480 {offsets = [24, 0], sizes = [8, 128], strides = [1, 1]} : vector<32x128xf32> to vector<8x128xf32>
    %487 = arith.addf %485, %486 : vector<8x128xf32>
    %488 = math.sqrt %487 : vector<8x128xf32>
    %cst_295 = arith.constant dense<0.000000e+00> : vector<128xf32>
    %489 = vector.multi_reduction <add>, %488, %cst_295 [0] : vector<8x128xf32> to vector<128xf32>
    %490 = vector.shape_cast %489 : vector<128xf32> to vector<1x128xf32>
    %cst_296 = arith.constant 1.250000e-01 : f32
    %491 = vector.broadcast %cst_296 : f32 to vector<1x128xf32>
    %492 = arith.mulf %490, %491 : vector<1x128xf32>
    %cst_297 = arith.constant -1.000000e-01 : f32
    %493 = vector.broadcast %cst_297 : f32 to vector<1x128xf32>
    %494 = arith.mulf %493, %492 : vector<1x128xf32>
    %495 = math.tanh %494 : vector<1x128xf32>
    %c2_298 = arith.constant 2 : index
    %c0_299 = arith.constant 0 : index
    %496 = vector.load %arg9[%c2_298, %c0_299] : memref<8x128xf32, #tpu.memory_space<vmem>>, vector<1x128xf32>
    %497 = arith.addf %496, %495 : vector<1x128xf32>
    %c2_300 = arith.constant 2 : index
    %c0_301 = arith.constant 0 : index
    %498 = vector.load %arg9[%c2_300, %c0_301] : memref<8x128xf32, #tpu.memory_space<vmem>>, vector<1x128xf32>
    tpu.vector_store %arg9[%c2_300, %c0_301], %497 {strides = array<i32>} : memref<8x128xf32, #tpu.memory_space<vmem>>, vector<1x128xf32>,
    %c4_302 = arith.constant 4 : index
    %c0_303 = arith.constant 0 : index
    %499 = vector.load %arg9[%c4_302, %c0_303] : memref<8x128xf32, #tpu.memory_space<vmem>>, vector<1x128xf32>
    %500 = arith.addf %499, %495 : vector<1x128xf32>
    %c4_304 = arith.constant 4 : index
    %c0_305 = arith.constant 0 : index
    %501 = vector.load %arg9[%c4_304, %c0_305] : memref<8x128xf32, #tpu.memory_space<vmem>>, vector<1x128xf32>
    tpu.vector_store %arg9[%c4_304, %c0_305], %500 {strides = array<i32>} : memref<8x128xf32, #tpu.memory_space<vmem>>, vector<1x128xf32>,
    %c5_306 = arith.constant 5 : index
    %c0_307 = arith.constant 0 : index
    %c0_308 = arith.constant 0 : index
    %502 = vector.load %arg8[%c5_306, %c0_307, %c0_308] : memref<8x32x128xf32, #tpu.memory_space<vmem>>, vector<1x32x128xf32>
    %503 = vector.shape_cast %502 : vector<1x32x128xf32> to vector<32x128xf32>
    %504 = arith.subf %451, %503 : vector<32x128xf32>
    %505 = arith.mulf %504, %504 : vector<32x128xf32>
    %506 = vector.extract_strided_slice %505 {offsets = [0, 0], sizes = [8, 128], strides = [1, 1]} : vector<32x128xf32> to vector<8x128xf32>
    %507 = vector.extract_strided_slice %505 {offsets = [8, 0], sizes = [8, 128], strides = [1, 1]} : vector<32x128xf32> to vector<8x128xf32>
    %508 = arith.addf %506, %507 : vector<8x128xf32>
    %509 = vector.extract_strided_slice %505 {offsets = [16, 0], sizes = [8, 128], strides = [1, 1]} : vector<32x128xf32> to vector<8x128xf32>
    %510 = arith.addf %508, %509 : vector<8x128xf32>
    %511 = vector.extract_strided_slice %505 {offsets = [24, 0], sizes = [8, 128], strides = [1, 1]} : vector<32x128xf32> to vector<8x128xf32>
    %512 = arith.addf %510, %511 : vector<8x128xf32>
    %513 = math.sqrt %512 : vector<8x128xf32>
    %cst_309 = arith.constant dense<0.000000e+00> : vector<128xf32>
    %514 = vector.multi_reduction <add>, %513, %cst_309 [0] : vector<8x128xf32> to vector<128xf32>
    %515 = vector.shape_cast %514 : vector<128xf32> to vector<1x128xf32>
    %cst_310 = arith.constant 1.250000e-01 : f32
    %516 = vector.broadcast %cst_310 : f32 to vector<1x128xf32>
    %517 = arith.mulf %515, %516 : vector<1x128xf32>
    %cst_311 = arith.constant -1.000000e-01 : f32
    %518 = vector.broadcast %cst_311 : f32 to vector<1x128xf32>
    %519 = arith.mulf %518, %517 : vector<1x128xf32>
    %520 = math.tanh %519 : vector<1x128xf32>
    %c2_312 = arith.constant 2 : index
    %c0_313 = arith.constant 0 : index
    %521 = vector.load %arg9[%c2_312, %c0_313] : memref<8x128xf32, #tpu.memory_space<vmem>>, vector<1x128xf32>
    %522 = arith.addf %521, %520 : vector<1x128xf32>
    %c2_314 = arith.constant 2 : index
    %c0_315 = arith.constant 0 : index
    %523 = vector.load %arg9[%c2_314, %c0_315] : memref<8x128xf32, #tpu.memory_space<vmem>>, vector<1x128xf32>
    tpu.vector_store %arg9[%c2_314, %c0_315], %522 {strides = array<i32>} : memref<8x128xf32, #tpu.memory_space<vmem>>, vector<1x128xf32>,
    %c5_316 = arith.constant 5 : index
    %c0_317 = arith.constant 0 : index
    %524 = vector.load %arg9[%c5_316, %c0_317] : memref<8x128xf32, #tpu.memory_space<vmem>>, vector<1x128xf32>
    %525 = arith.addf %524, %520 : vector<1x128xf32>
    %c5_318 = arith.constant 5 : index
    %c0_319 = arith.constant 0 : index
    %526 = vector.load %arg9[%c5_318, %c0_319] : memref<8x128xf32, #tpu.memory_space<vmem>>, vector<1x128xf32>
    tpu.vector_store %arg9[%c5_318, %c0_319], %525 {strides = array<i32>} : memref<8x128xf32, #tpu.memory_space<vmem>>, vector<1x128xf32>,
    %c6_320 = arith.constant 6 : index
    %c0_321 = arith.constant 0 : index
    %c0_322 = arith.constant 0 : index
    %527 = vector.load %arg8[%c6_320, %c0_321, %c0_322] : memref<8x32x128xf32, #tpu.memory_space<vmem>>, vector<1x32x128xf32>
    %528 = vector.shape_cast %527 : vector<1x32x128xf32> to vector<32x128xf32>
    %529 = arith.subf %451, %528 : vector<32x128xf32>
    %530 = arith.mulf %529, %529 : vector<32x128xf32>
    %531 = vector.extract_strided_slice %530 {offsets = [0, 0], sizes = [8, 128], strides = [1, 1]} : vector<32x128xf32> to vector<8x128xf32>
    %532 = vector.extract_strided_slice %530 {offsets = [8, 0], sizes = [8, 128], strides = [1, 1]} : vector<32x128xf32> to vector<8x128xf32>
    %533 = arith.addf %531, %532 : vector<8x128xf32>
    %534 = vector.extract_strided_slice %530 {offsets = [16, 0], sizes = [8, 128], strides = [1, 1]} : vector<32x128xf32> to vector<8x128xf32>
    %535 = arith.addf %533, %534 : vector<8x128xf32>
    %536 = vector.extract_strided_slice %530 {offsets = [24, 0], sizes = [8, 128], strides = [1, 1]} : vector<32x128xf32> to vector<8x128xf32>
    %537 = arith.addf %535, %536 : vector<8x128xf32>
    %538 = math.sqrt %537 : vector<8x128xf32>
    %cst_323 = arith.constant dense<0.000000e+00> : vector<128xf32>
    %539 = vector.multi_reduction <add>, %538, %cst_323 [0] : vector<8x128xf32> to vector<128xf32>
    %540 = vector.shape_cast %539 : vector<128xf32> to vector<1x128xf32>
    %cst_324 = arith.constant 1.250000e-01 : f32
    %541 = vector.broadcast %cst_324 : f32 to vector<1x128xf32>
    %542 = arith.mulf %540, %541 : vector<1x128xf32>
    %cst_325 = arith.constant -1.000000e-01 : f32
    %543 = vector.broadcast %cst_325 : f32 to vector<1x128xf32>
    %544 = arith.mulf %543, %542 : vector<1x128xf32>
    %545 = math.tanh %544 : vector<1x128xf32>
    %c2_326 = arith.constant 2 : index
    %c0_327 = arith.constant 0 : index
    %546 = vector.load %arg9[%c2_326, %c0_327] : memref<8x128xf32, #tpu.memory_space<vmem>>, vector<1x128xf32>
    %547 = arith.addf %546, %545 : vector<1x128xf32>
    %c2_328 = arith.constant 2 : index
    %c0_329 = arith.constant 0 : index
    %548 = vector.load %arg9[%c2_328, %c0_329] : memref<8x128xf32, #tpu.memory_space<vmem>>, vector<1x128xf32>
    tpu.vector_store %arg9[%c2_328, %c0_329], %547 {strides = array<i32>} : memref<8x128xf32, #tpu.memory_space<vmem>>, vector<1x128xf32>,
    %c6_330 = arith.constant 6 : index
    %c0_331 = arith.constant 0 : index
    %549 = vector.load %arg9[%c6_330, %c0_331] : memref<8x128xf32, #tpu.memory_space<vmem>>, vector<1x128xf32>
    %550 = arith.addf %549, %545 : vector<1x128xf32>
    %c6_332 = arith.constant 6 : index
    %c0_333 = arith.constant 0 : index
    %551 = vector.load %arg9[%c6_332, %c0_333] : memref<8x128xf32, #tpu.memory_space<vmem>>, vector<1x128xf32>
    tpu.vector_store %arg9[%c6_332, %c0_333], %550 {strides = array<i32>} : memref<8x128xf32, #tpu.memory_space<vmem>>, vector<1x128xf32>,
    %c7_334 = arith.constant 7 : index
    %c0_335 = arith.constant 0 : index
    %c0_336 = arith.constant 0 : index
    %552 = vector.load %arg8[%c7_334, %c0_335, %c0_336] : memref<8x32x128xf32, #tpu.memory_space<vmem>>, vector<1x32x128xf32>
    %553 = vector.shape_cast %552 : vector<1x32x128xf32> to vector<32x128xf32>
    %554 = arith.subf %451, %553 : vector<32x128xf32>
    %555 = arith.mulf %554, %554 : vector<32x128xf32>
    %556 = vector.extract_strided_slice %555 {offsets = [0, 0], sizes = [8, 128], strides = [1, 1]} : vector<32x128xf32> to vector<8x128xf32>
    %557 = vector.extract_strided_slice %555 {offsets = [8, 0], sizes = [8, 128], strides = [1, 1]} : vector<32x128xf32> to vector<8x128xf32>
    %558 = arith.addf %556, %557 : vector<8x128xf32>
    %559 = vector.extract_strided_slice %555 {offsets = [16, 0], sizes = [8, 128], strides = [1, 1]} : vector<32x128xf32> to vector<8x128xf32>
    %560 = arith.addf %558, %559 : vector<8x128xf32>
    %561 = vector.extract_strided_slice %555 {offsets = [24, 0], sizes = [8, 128], strides = [1, 1]} : vector<32x128xf32> to vector<8x128xf32>
    %562 = arith.addf %560, %561 : vector<8x128xf32>
    %563 = math.sqrt %562 : vector<8x128xf32>
    %cst_337 = arith.constant dense<0.000000e+00> : vector<128xf32>
    %564 = vector.multi_reduction <add>, %563, %cst_337 [0] : vector<8x128xf32> to vector<128xf32>
    %565 = vector.shape_cast %564 : vector<128xf32> to vector<1x128xf32>
    %cst_338 = arith.constant 1.250000e-01 : f32
    %566 = vector.broadcast %cst_338 : f32 to vector<1x128xf32>
    %567 = arith.mulf %565, %566 : vector<1x128xf32>
    %cst_339 = arith.constant -1.000000e-01 : f32
    %568 = vector.broadcast %cst_339 : f32 to vector<1x128xf32>
    %569 = arith.mulf %568, %567 : vector<1x128xf32>
    %570 = math.tanh %569 : vector<1x128xf32>
    %c2_340 = arith.constant 2 : index
    %c0_341 = arith.constant 0 : index
    %571 = vector.load %arg9[%c2_340, %c0_341] : memref<8x128xf32, #tpu.memory_space<vmem>>, vector<1x128xf32>
    %572 = arith.addf %571, %570 : vector<1x128xf32>
    %c2_342 = arith.constant 2 : index
    %c0_343 = arith.constant 0 : index
    %573 = vector.load %arg9[%c2_342, %c0_343] : memref<8x128xf32, #tpu.memory_space<vmem>>, vector<1x128xf32>
    tpu.vector_store %arg9[%c2_342, %c0_343], %572 {strides = array<i32>} : memref<8x128xf32, #tpu.memory_space<vmem>>, vector<1x128xf32>,
    %c7_344 = arith.constant 7 : index
    %c0_345 = arith.constant 0 : index
    %574 = vector.load %arg9[%c7_344, %c0_345] : memref<8x128xf32, #tpu.memory_space<vmem>>, vector<1x128xf32>
    %575 = arith.addf %574, %570 : vector<1x128xf32>
    %c7_346 = arith.constant 7 : index
    %c0_347 = arith.constant 0 : index
    %576 = vector.load %arg9[%c7_346, %c0_347] : memref<8x128xf32, #tpu.memory_space<vmem>>, vector<1x128xf32>
    tpu.vector_store %arg9[%c7_346, %c0_347], %575 {strides = array<i32>} : memref<8x128xf32, #tpu.memory_space<vmem>>, vector<1x128xf32>,
    %c3_348 = arith.constant 3 : index
    %c0_349 = arith.constant 0 : index
    %c0_350 = arith.constant 0 : index
    %577 = vector.load %arg8[%c3_348, %c0_349, %c0_350] : memref<8x32x128xf32, #tpu.memory_space<vmem>>, vector<1x32x128xf32>
    %578 = vector.shape_cast %577 : vector<1x32x128xf32> to vector<32x128xf32>
    %c4_351 = arith.constant 4 : index
    %c0_352 = arith.constant 0 : index
    %c0_353 = arith.constant 0 : index
    %579 = vector.load %arg8[%c4_351, %c0_352, %c0_353] : memref<8x32x128xf32, #tpu.memory_space<vmem>>, vector<1x32x128xf32>
    %580 = vector.shape_cast %579 : vector<1x32x128xf32> to vector<32x128xf32>
    %581 = arith.subf %578, %580 : vector<32x128xf32>
    %582 = arith.mulf %581, %581 : vector<32x128xf32>
    %583 = vector.extract_strided_slice %582 {offsets = [0, 0], sizes = [8, 128], strides = [1, 1]} : vector<32x128xf32> to vector<8x128xf32>
    %584 = vector.extract_strided_slice %582 {offsets = [8, 0], sizes = [8, 128], strides = [1, 1]} : vector<32x128xf32> to vector<8x128xf32>
    %585 = arith.addf %583, %584 : vector<8x128xf32>
    %586 = vector.extract_strided_slice %582 {offsets = [16, 0], sizes = [8, 128], strides = [1, 1]} : vector<32x128xf32> to vector<8x128xf32>
    %587 = arith.addf %585, %586 : vector<8x128xf32>
    %588 = vector.extract_strided_slice %582 {offsets = [24, 0], sizes = [8, 128], strides = [1, 1]} : vector<32x128xf32> to vector<8x128xf32>
    %589 = arith.addf %587, %588 : vector<8x128xf32>
    %590 = math.sqrt %589 : vector<8x128xf32>
    %cst_354 = arith.constant dense<0.000000e+00> : vector<128xf32>
    %591 = vector.multi_reduction <add>, %590, %cst_354 [0] : vector<8x128xf32> to vector<128xf32>
    %592 = vector.shape_cast %591 : vector<128xf32> to vector<1x128xf32>
    %cst_355 = arith.constant 1.250000e-01 : f32
    %593 = vector.broadcast %cst_355 : f32 to vector<1x128xf32>
    %594 = arith.mulf %592, %593 : vector<1x128xf32>
    %cst_356 = arith.constant -1.000000e-01 : f32
    %595 = vector.broadcast %cst_356 : f32 to vector<1x128xf32>
    %596 = arith.mulf %595, %594 : vector<1x128xf32>
    %597 = math.tanh %596 : vector<1x128xf32>
    %c3_357 = arith.constant 3 : index
    %c0_358 = arith.constant 0 : index
    %598 = vector.load %arg9[%c3_357, %c0_358] : memref<8x128xf32, #tpu.memory_space<vmem>>, vector<1x128xf32>
    %599 = arith.addf %598, %597 : vector<1x128xf32>
    %c3_359 = arith.constant 3 : index
    %c0_360 = arith.constant 0 : index
    %600 = vector.load %arg9[%c3_359, %c0_360] : memref<8x128xf32, #tpu.memory_space<vmem>>, vector<1x128xf32>
    tpu.vector_store %arg9[%c3_359, %c0_360], %599 {strides = array<i32>} : memref<8x128xf32, #tpu.memory_space<vmem>>, vector<1x128xf32>,
    %c4_361 = arith.constant 4 : index
    %c0_362 = arith.constant 0 : index
    %601 = vector.load %arg9[%c4_361, %c0_362] : memref<8x128xf32, #tpu.memory_space<vmem>>, vector<1x128xf32>
    %602 = arith.addf %601, %597 : vector<1x128xf32>
    %c4_363 = arith.constant 4 : index
    %c0_364 = arith.constant 0 : index
    %603 = vector.load %arg9[%c4_363, %c0_364] : memref<8x128xf32, #tpu.memory_space<vmem>>, vector<1x128xf32>
    tpu.vector_store %arg9[%c4_363, %c0_364], %602 {strides = array<i32>} : memref<8x128xf32, #tpu.memory_space<vmem>>, vector<1x128xf32>,
    %c5_365 = arith.constant 5 : index
    %c0_366 = arith.constant 0 : index
    %c0_367 = arith.constant 0 : index
    %604 = vector.load %arg8[%c5_365, %c0_366, %c0_367] : memref<8x32x128xf32, #tpu.memory_space<vmem>>, vector<1x32x128xf32>
    %605 = vector.shape_cast %604 : vector<1x32x128xf32> to vector<32x128xf32>
    %606 = arith.subf %578, %605 : vector<32x128xf32>
    %607 = arith.mulf %606, %606 : vector<32x128xf32>
    %608 = vector.extract_strided_slice %607 {offsets = [0, 0], sizes = [8, 128], strides = [1, 1]} : vector<32x128xf32> to vector<8x128xf32>
    %609 = vector.extract_strided_slice %607 {offsets = [8, 0], sizes = [8, 128], strides = [1, 1]} : vector<32x128xf32> to vector<8x128xf32>
    %610 = arith.addf %608, %609 : vector<8x128xf32>
    %611 = vector.extract_strided_slice %607 {offsets = [16, 0], sizes = [8, 128], strides = [1, 1]} : vector<32x128xf32> to vector<8x128xf32>
    %612 = arith.addf %610, %611 : vector<8x128xf32>
    %613 = vector.extract_strided_slice %607 {offsets = [24, 0], sizes = [8, 128], strides = [1, 1]} : vector<32x128xf32> to vector<8x128xf32>
    %614 = arith.addf %612, %613 : vector<8x128xf32>
    %615 = math.sqrt %614 : vector<8x128xf32>
    %cst_368 = arith.constant dense<0.000000e+00> : vector<128xf32>
    %616 = vector.multi_reduction <add>, %615, %cst_368 [0] : vector<8x128xf32> to vector<128xf32>
    %617 = vector.shape_cast %616 : vector<128xf32> to vector<1x128xf32>
    %cst_369 = arith.constant 1.250000e-01 : f32
    %618 = vector.broadcast %cst_369 : f32 to vector<1x128xf32>
    %619 = arith.mulf %617, %618 : vector<1x128xf32>
    %cst_370 = arith.constant -1.000000e-01 : f32
    %620 = vector.broadcast %cst_370 : f32 to vector<1x128xf32>
    %621 = arith.mulf %620, %619 : vector<1x128xf32>
    %622 = math.tanh %621 : vector<1x128xf32>
    %c3_371 = arith.constant 3 : index
    %c0_372 = arith.constant 0 : index
    %623 = vector.load %arg9[%c3_371, %c0_372] : memref<8x128xf32, #tpu.memory_space<vmem>>, vector<1x128xf32>
    %624 = arith.addf %623, %622 : vector<1x128xf32>
    %c3_373 = arith.constant 3 : index
    %c0_374 = arith.constant 0 : index
    %625 = vector.load %arg9[%c3_373, %c0_374] : memref<8x128xf32, #tpu.memory_space<vmem>>, vector<1x128xf32>
    tpu.vector_store %arg9[%c3_373, %c0_374], %624 {strides = array<i32>} : memref<8x128xf32, #tpu.memory_space<vmem>>, vector<1x128xf32>,
    %c5_375 = arith.constant 5 : index
    %c0_376 = arith.constant 0 : index
    %626 = vector.load %arg9[%c5_375, %c0_376] : memref<8x128xf32, #tpu.memory_space<vmem>>, vector<1x128xf32>
    %627 = arith.addf %626, %622 : vector<1x128xf32>
    %c5_377 = arith.constant 5 : index
    %c0_378 = arith.constant 0 : index
    %628 = vector.load %arg9[%c5_377, %c0_378] : memref<8x128xf32, #tpu.memory_space<vmem>>, vector<1x128xf32>
    tpu.vector_store %arg9[%c5_377, %c0_378], %627 {strides = array<i32>} : memref<8x128xf32, #tpu.memory_space<vmem>>, vector<1x128xf32>,
    %c6_379 = arith.constant 6 : index
    %c0_380 = arith.constant 0 : index
    %c0_381 = arith.constant 0 : index
    %629 = vector.load %arg8[%c6_379, %c0_380, %c0_381] : memref<8x32x128xf32, #tpu.memory_space<vmem>>, vector<1x32x128xf32>
    %630 = vector.shape_cast %629 : vector<1x32x128xf32> to vector<32x128xf32>
    %631 = arith.subf %578, %630 : vector<32x128xf32>
    %632 = arith.mulf %631, %631 : vector<32x128xf32>
    %633 = vector.extract_strided_slice %632 {offsets = [0, 0], sizes = [8, 128], strides = [1, 1]} : vector<32x128xf32> to vector<8x128xf32>
    %634 = vector.extract_strided_slice %632 {offsets = [8, 0], sizes = [8, 128], strides = [1, 1]} : vector<32x128xf32> to vector<8x128xf32>
    %635 = arith.addf %633, %634 : vector<8x128xf32>
    %636 = vector.extract_strided_slice %632 {offsets = [16, 0], sizes = [8, 128], strides = [1, 1]} : vector<32x128xf32> to vector<8x128xf32>
    %637 = arith.addf %635, %636 : vector<8x128xf32>
    %638 = vector.extract_strided_slice %632 {offsets = [24, 0], sizes = [8, 128], strides = [1, 1]} : vector<32x128xf32> to vector<8x128xf32>
    %639 = arith.addf %637, %638 : vector<8x128xf32>
    %640 = math.sqrt %639 : vector<8x128xf32>
    %cst_382 = arith.constant dense<0.000000e+00> : vector<128xf32>
    %641 = vector.multi_reduction <add>, %640, %cst_382 [0] : vector<8x128xf32> to vector<128xf32>
    %642 = vector.shape_cast %641 : vector<128xf32> to vector<1x128xf32>
    %cst_383 = arith.constant 1.250000e-01 : f32
    %643 = vector.broadcast %cst_383 : f32 to vector<1x128xf32>
    %644 = arith.mulf %642, %643 : vector<1x128xf32>
    %cst_384 = arith.constant -1.000000e-01 : f32
    %645 = vector.broadcast %cst_384 : f32 to vector<1x128xf32>
    %646 = arith.mulf %645, %644 : vector<1x128xf32>
    %647 = math.tanh %646 : vector<1x128xf32>
    %c3_385 = arith.constant 3 : index
    %c0_386 = arith.constant 0 : index
    %648 = vector.load %arg9[%c3_385, %c0_386] : memref<8x128xf32, #tpu.memory_space<vmem>>, vector<1x128xf32>
    %649 = arith.addf %648, %647 : vector<1x128xf32>
    %c3_387 = arith.constant 3 : index
    %c0_388 = arith.constant 0 : index
    %650 = vector.load %arg9[%c3_387, %c0_388] : memref<8x128xf32, #tpu.memory_space<vmem>>, vector<1x128xf32>
    tpu.vector_store %arg9[%c3_387, %c0_388], %649 {strides = array<i32>} : memref<8x128xf32, #tpu.memory_space<vmem>>, vector<1x128xf32>,
    %c6_389 = arith.constant 6 : index
    %c0_390 = arith.constant 0 : index
    %651 = vector.load %arg9[%c6_389, %c0_390] : memref<8x128xf32, #tpu.memory_space<vmem>>, vector<1x128xf32>
    %652 = arith.addf %651, %647 : vector<1x128xf32>
    %c6_391 = arith.constant 6 : index
    %c0_392 = arith.constant 0 : index
    %653 = vector.load %arg9[%c6_391, %c0_392] : memref<8x128xf32, #tpu.memory_space<vmem>>, vector<1x128xf32>
    tpu.vector_store %arg9[%c6_391, %c0_392], %652 {strides = array<i32>} : memref<8x128xf32, #tpu.memory_space<vmem>>, vector<1x128xf32>,
    %c7_393 = arith.constant 7 : index
    %c0_394 = arith.constant 0 : index
    %c0_395 = arith.constant 0 : index
    %654 = vector.load %arg8[%c7_393, %c0_394, %c0_395] : memref<8x32x128xf32, #tpu.memory_space<vmem>>, vector<1x32x128xf32>
    %655 = vector.shape_cast %654 : vector<1x32x128xf32> to vector<32x128xf32>
    %656 = arith.subf %578, %655 : vector<32x128xf32>
    %657 = arith.mulf %656, %656 : vector<32x128xf32>
    %658 = vector.extract_strided_slice %657 {offsets = [0, 0], sizes = [8, 128], strides = [1, 1]} : vector<32x128xf32> to vector<8x128xf32>
    %659 = vector.extract_strided_slice %657 {offsets = [8, 0], sizes = [8, 128], strides = [1, 1]} : vector<32x128xf32> to vector<8x128xf32>
    %660 = arith.addf %658, %659 : vector<8x128xf32>
    %661 = vector.extract_strided_slice %657 {offsets = [16, 0], sizes = [8, 128], strides = [1, 1]} : vector<32x128xf32> to vector<8x128xf32>
    %662 = arith.addf %660, %661 : vector<8x128xf32>
    %663 = vector.extract_strided_slice %657 {offsets = [24, 0], sizes = [8, 128], strides = [1, 1]} : vector<32x128xf32> to vector<8x128xf32>
    %664 = arith.addf %662, %663 : vector<8x128xf32>
    %665 = math.sqrt %664 : vector<8x128xf32>
    %cst_396 = arith.constant dense<0.000000e+00> : vector<128xf32>
    %666 = vector.multi_reduction <add>, %665, %cst_396 [0] : vector<8x128xf32> to vector<128xf32>
    %667 = vector.shape_cast %666 : vector<128xf32> to vector<1x128xf32>
    %cst_397 = arith.constant 1.250000e-01 : f32
    %668 = vector.broadcast %cst_397 : f32 to vector<1x128xf32>
    %669 = arith.mulf %667, %668 : vector<1x128xf32>
    %cst_398 = arith.constant -1.000000e-01 : f32
    %670 = vector.broadcast %cst_398 : f32 to vector<1x128xf32>
    %671 = arith.mulf %670, %669 : vector<1x128xf32>
    %672 = math.tanh %671 : vector<1x128xf32>
    %c3_399 = arith.constant 3 : index
    %c0_400 = arith.constant 0 : index
    %673 = vector.load %arg9[%c3_399, %c0_400] : memref<8x128xf32, #tpu.memory_space<vmem>>, vector<1x128xf32>
    %674 = arith.addf %673, %672 : vector<1x128xf32>
    %c3_401 = arith.constant 3 : index
    %c0_402 = arith.constant 0 : index
    %675 = vector.load %arg9[%c3_401, %c0_402] : memref<8x128xf32, #tpu.memory_space<vmem>>, vector<1x128xf32>
    tpu.vector_store %arg9[%c3_401, %c0_402], %674 {strides = array<i32>} : memref<8x128xf32, #tpu.memory_space<vmem>>, vector<1x128xf32>,
    %c7_403 = arith.constant 7 : index
    %c0_404 = arith.constant 0 : index
    %676 = vector.load %arg9[%c7_403, %c0_404] : memref<8x128xf32, #tpu.memory_space<vmem>>, vector<1x128xf32>
    %677 = arith.addf %676, %672 : vector<1x128xf32>
    %c7_405 = arith.constant 7 : index
    %c0_406 = arith.constant 0 : index
    %678 = vector.load %arg9[%c7_405, %c0_406] : memref<8x128xf32, #tpu.memory_space<vmem>>, vector<1x128xf32>
    tpu.vector_store %arg9[%c7_405, %c0_406], %677 {strides = array<i32>} : memref<8x128xf32, #tpu.memory_space<vmem>>, vector<1x128xf32>,
    %c4_407 = arith.constant 4 : index
    %c0_408 = arith.constant 0 : index
    %c0_409 = arith.constant 0 : index
    %679 = vector.load %arg8[%c4_407, %c0_408, %c0_409] : memref<8x32x128xf32, #tpu.memory_space<vmem>>, vector<1x32x128xf32>
    %680 = vector.shape_cast %679 : vector<1x32x128xf32> to vector<32x128xf32>
    %c5_410 = arith.constant 5 : index
    %c0_411 = arith.constant 0 : index
    %c0_412 = arith.constant 0 : index
    %681 = vector.load %arg8[%c5_410, %c0_411, %c0_412] : memref<8x32x128xf32, #tpu.memory_space<vmem>>, vector<1x32x128xf32>
    %682 = vector.shape_cast %681 : vector<1x32x128xf32> to vector<32x128xf32>
    %683 = arith.subf %680, %682 : vector<32x128xf32>
    %684 = arith.mulf %683, %683 : vector<32x128xf32>
    %685 = vector.extract_strided_slice %684 {offsets = [0, 0], sizes = [8, 128], strides = [1, 1]} : vector<32x128xf32> to vector<8x128xf32>
    %686 = vector.extract_strided_slice %684 {offsets = [8, 0], sizes = [8, 128], strides = [1, 1]} : vector<32x128xf32> to vector<8x128xf32>
    %687 = arith.addf %685, %686 : vector<8x128xf32>
    %688 = vector.extract_strided_slice %684 {offsets = [16, 0], sizes = [8, 128], strides = [1, 1]} : vector<32x128xf32> to vector<8x128xf32>
    %689 = arith.addf %687, %688 : vector<8x128xf32>
    %690 = vector.extract_strided_slice %684 {offsets = [24, 0], sizes = [8, 128], strides = [1, 1]} : vector<32x128xf32> to vector<8x128xf32>
    %691 = arith.addf %689, %690 : vector<8x128xf32>
    %692 = math.sqrt %691 : vector<8x128xf32>
    %cst_413 = arith.constant dense<0.000000e+00> : vector<128xf32>
    %693 = vector.multi_reduction <add>, %692, %cst_413 [0] : vector<8x128xf32> to vector<128xf32>
    %694 = vector.shape_cast %693 : vector<128xf32> to vector<1x128xf32>
    %cst_414 = arith.constant 1.250000e-01 : f32
    %695 = vector.broadcast %cst_414 : f32 to vector<1x128xf32>
    %696 = arith.mulf %694, %695 : vector<1x128xf32>
    %cst_415 = arith.constant -1.000000e-01 : f32
    %697 = vector.broadcast %cst_415 : f32 to vector<1x128xf32>
    %698 = arith.mulf %697, %696 : vector<1x128xf32>
    %699 = math.tanh %698 : vector<1x128xf32>
    %c4_416 = arith.constant 4 : index
    %c0_417 = arith.constant 0 : index
    %700 = vector.load %arg9[%c4_416, %c0_417] : memref<8x128xf32, #tpu.memory_space<vmem>>, vector<1x128xf32>
    %701 = arith.addf %700, %699 : vector<1x128xf32>
    %c4_418 = arith.constant 4 : index
    %c0_419 = arith.constant 0 : index
    %702 = vector.load %arg9[%c4_418, %c0_419] : memref<8x128xf32, #tpu.memory_space<vmem>>, vector<1x128xf32>
    tpu.vector_store %arg9[%c4_418, %c0_419], %701 {strides = array<i32>} : memref<8x128xf32, #tpu.memory_space<vmem>>, vector<1x128xf32>,
    %c5_420 = arith.constant 5 : index
    %c0_421 = arith.constant 0 : index
    %703 = vector.load %arg9[%c5_420, %c0_421] : memref<8x128xf32, #tpu.memory_space<vmem>>, vector<1x128xf32>
    %704 = arith.addf %703, %699 : vector<1x128xf32>
    %c5_422 = arith.constant 5 : index
    %c0_423 = arith.constant 0 : index
    %705 = vector.load %arg9[%c5_422, %c0_423] : memref<8x128xf32, #tpu.memory_space<vmem>>, vector<1x128xf32>
    tpu.vector_store %arg9[%c5_422, %c0_423], %704 {strides = array<i32>} : memref<8x128xf32, #tpu.memory_space<vmem>>, vector<1x128xf32>,
    %c6_424 = arith.constant 6 : index
    %c0_425 = arith.constant 0 : index
    %c0_426 = arith.constant 0 : index
    %706 = vector.load %arg8[%c6_424, %c0_425, %c0_426] : memref<8x32x128xf32, #tpu.memory_space<vmem>>, vector<1x32x128xf32>
    %707 = vector.shape_cast %706 : vector<1x32x128xf32> to vector<32x128xf32>
    %708 = arith.subf %680, %707 : vector<32x128xf32>
    %709 = arith.mulf %708, %708 : vector<32x128xf32>
    %710 = vector.extract_strided_slice %709 {offsets = [0, 0], sizes = [8, 128], strides = [1, 1]} : vector<32x128xf32> to vector<8x128xf32>
    %711 = vector.extract_strided_slice %709 {offsets = [8, 0], sizes = [8, 128], strides = [1, 1]} : vector<32x128xf32> to vector<8x128xf32>
    %712 = arith.addf %710, %711 : vector<8x128xf32>
    %713 = vector.extract_strided_slice %709 {offsets = [16, 0], sizes = [8, 128], strides = [1, 1]} : vector<32x128xf32> to vector<8x128xf32>
    %714 = arith.addf %712, %713 : vector<8x128xf32>
    %715 = vector.extract_strided_slice %709 {offsets = [24, 0], sizes = [8, 128], strides = [1, 1]} : vector<32x128xf32> to vector<8x128xf32>
    %716 = arith.addf %714, %715 : vector<8x128xf32>
    %717 = math.sqrt %716 : vector<8x128xf32>
    %cst_427 = arith.constant dense<0.000000e+00> : vector<128xf32>
    %718 = vector.multi_reduction <add>, %717, %cst_427 [0] : vector<8x128xf32> to vector<128xf32>
    %719 = vector.shape_cast %718 : vector<128xf32> to vector<1x128xf32>
    %cst_428 = arith.constant 1.250000e-01 : f32
    %720 = vector.broadcast %cst_428 : f32 to vector<1x128xf32>
    %721 = arith.mulf %719, %720 : vector<1x128xf32>
    %cst_429 = arith.constant -1.000000e-01 : f32
    %722 = vector.broadcast %cst_429 : f32 to vector<1x128xf32>
    %723 = arith.mulf %722, %721 : vector<1x128xf32>
    %724 = math.tanh %723 : vector<1x128xf32>
    %c4_430 = arith.constant 4 : index
    %c0_431 = arith.constant 0 : index
    %725 = vector.load %arg9[%c4_430, %c0_431] : memref<8x128xf32, #tpu.memory_space<vmem>>, vector<1x128xf32>
    %726 = arith.addf %725, %724 : vector<1x128xf32>
    %c4_432 = arith.constant 4 : index
    %c0_433 = arith.constant 0 : index
    %727 = vector.load %arg9[%c4_432, %c0_433] : memref<8x128xf32, #tpu.memory_space<vmem>>, vector<1x128xf32>
    tpu.vector_store %arg9[%c4_432, %c0_433], %726 {strides = array<i32>} : memref<8x128xf32, #tpu.memory_space<vmem>>, vector<1x128xf32>,
    %c6_434 = arith.constant 6 : index
    %c0_435 = arith.constant 0 : index
    %728 = vector.load %arg9[%c6_434, %c0_435] : memref<8x128xf32, #tpu.memory_space<vmem>>, vector<1x128xf32>
    %729 = arith.addf %728, %724 : vector<1x128xf32>
    %c6_436 = arith.constant 6 : index
    %c0_437 = arith.constant 0 : index
    %730 = vector.load %arg9[%c6_436, %c0_437] : memref<8x128xf32, #tpu.memory_space<vmem>>, vector<1x128xf32>
    tpu.vector_store %arg9[%c6_436, %c0_437], %729 {strides = array<i32>} : memref<8x128xf32, #tpu.memory_space<vmem>>, vector<1x128xf32>,
    %c7_438 = arith.constant 7 : index
    %c0_439 = arith.constant 0 : index
    %c0_440 = arith.constant 0 : index
    %731 = vector.load %arg8[%c7_438, %c0_439, %c0_440] : memref<8x32x128xf32, #tpu.memory_space<vmem>>, vector<1x32x128xf32>
    %732 = vector.shape_cast %731 : vector<1x32x128xf32> to vector<32x128xf32>
    %733 = arith.subf %680, %732 : vector<32x128xf32>
    %734 = arith.mulf %733, %733 : vector<32x128xf32>
    %735 = vector.extract_strided_slice %734 {offsets = [0, 0], sizes = [8, 128], strides = [1, 1]} : vector<32x128xf32> to vector<8x128xf32>
    %736 = vector.extract_strided_slice %734 {offsets = [8, 0], sizes = [8, 128], strides = [1, 1]} : vector<32x128xf32> to vector<8x128xf32>
    %737 = arith.addf %735, %736 : vector<8x128xf32>
    %738 = vector.extract_strided_slice %734 {offsets = [16, 0], sizes = [8, 128], strides = [1, 1]} : vector<32x128xf32> to vector<8x128xf32>
    %739 = arith.addf %737, %738 : vector<8x128xf32>
    %740 = vector.extract_strided_slice %734 {offsets = [24, 0], sizes = [8, 128], strides = [1, 1]} : vector<32x128xf32> to vector<8x128xf32>
    %741 = arith.addf %739, %740 : vector<8x128xf32>
    %742 = math.sqrt %741 : vector<8x128xf32>
    %cst_441 = arith.constant dense<0.000000e+00> : vector<128xf32>
    %743 = vector.multi_reduction <add>, %742, %cst_441 [0] : vector<8x128xf32> to vector<128xf32>
    %744 = vector.shape_cast %743 : vector<128xf32> to vector<1x128xf32>
    %cst_442 = arith.constant 1.250000e-01 : f32
    %745 = vector.broadcast %cst_442 : f32 to vector<1x128xf32>
    %746 = arith.mulf %744, %745 : vector<1x128xf32>
    %cst_443 = arith.constant -1.000000e-01 : f32
    %747 = vector.broadcast %cst_443 : f32 to vector<1x128xf32>
    %748 = arith.mulf %747, %746 : vector<1x128xf32>
    %749 = math.tanh %748 : vector<1x128xf32>
    %c4_444 = arith.constant 4 : index
    %c0_445 = arith.constant 0 : index
    %750 = vector.load %arg9[%c4_444, %c0_445] : memref<8x128xf32, #tpu.memory_space<vmem>>, vector<1x128xf32>
    %751 = arith.addf %750, %749 : vector<1x128xf32>
    %c4_446 = arith.constant 4 : index
    %c0_447 = arith.constant 0 : index
    %752 = vector.load %arg9[%c4_446, %c0_447] : memref<8x128xf32, #tpu.memory_space<vmem>>, vector<1x128xf32>
    tpu.vector_store %arg9[%c4_446, %c0_447], %751 {strides = array<i32>} : memref<8x128xf32, #tpu.memory_space<vmem>>, vector<1x128xf32>,
    %c7_448 = arith.constant 7 : index
    %c0_449 = arith.constant 0 : index
    %753 = vector.load %arg9[%c7_448, %c0_449] : memref<8x128xf32, #tpu.memory_space<vmem>>, vector<1x128xf32>
    %754 = arith.addf %753, %749 : vector<1x128xf32>
    %c7_450 = arith.constant 7 : index
    %c0_451 = arith.constant 0 : index
    %755 = vector.load %arg9[%c7_450, %c0_451] : memref<8x128xf32, #tpu.memory_space<vmem>>, vector<1x128xf32>
    tpu.vector_store %arg9[%c7_450, %c0_451], %754 {strides = array<i32>} : memref<8x128xf32, #tpu.memory_space<vmem>>, vector<1x128xf32>,
    %c5_452 = arith.constant 5 : index
    %c0_453 = arith.constant 0 : index
    %c0_454 = arith.constant 0 : index
    %756 = vector.load %arg8[%c5_452, %c0_453, %c0_454] : memref<8x32x128xf32, #tpu.memory_space<vmem>>, vector<1x32x128xf32>
    %757 = vector.shape_cast %756 : vector<1x32x128xf32> to vector<32x128xf32>
    %c6_455 = arith.constant 6 : index
    %c0_456 = arith.constant 0 : index
    %c0_457 = arith.constant 0 : index
    %758 = vector.load %arg8[%c6_455, %c0_456, %c0_457] : memref<8x32x128xf32, #tpu.memory_space<vmem>>, vector<1x32x128xf32>
    %759 = vector.shape_cast %758 : vector<1x32x128xf32> to vector<32x128xf32>
    %760 = arith.subf %757, %759 : vector<32x128xf32>
    %761 = arith.mulf %760, %760 : vector<32x128xf32>
    %762 = vector.extract_strided_slice %761 {offsets = [0, 0], sizes = [8, 128], strides = [1, 1]} : vector<32x128xf32> to vector<8x128xf32>
    %763 = vector.extract_strided_slice %761 {offsets = [8, 0], sizes = [8, 128], strides = [1, 1]} : vector<32x128xf32> to vector<8x128xf32>
    %764 = arith.addf %762, %763 : vector<8x128xf32>
    %765 = vector.extract_strided_slice %761 {offsets = [16, 0], sizes = [8, 128], strides = [1, 1]} : vector<32x128xf32> to vector<8x128xf32>
    %766 = arith.addf %764, %765 : vector<8x128xf32>
    %767 = vector.extract_strided_slice %761 {offsets = [24, 0], sizes = [8, 128], strides = [1, 1]} : vector<32x128xf32> to vector<8x128xf32>
    %768 = arith.addf %766, %767 : vector<8x128xf32>
    %769 = math.sqrt %768 : vector<8x128xf32>
    %cst_458 = arith.constant dense<0.000000e+00> : vector<128xf32>
    %770 = vector.multi_reduction <add>, %769, %cst_458 [0] : vector<8x128xf32> to vector<128xf32>
    %771 = vector.shape_cast %770 : vector<128xf32> to vector<1x128xf32>
    %cst_459 = arith.constant 1.250000e-01 : f32
    %772 = vector.broadcast %cst_459 : f32 to vector<1x128xf32>
    %773 = arith.mulf %771, %772 : vector<1x128xf32>
    %cst_460 = arith.constant -1.000000e-01 : f32
    %774 = vector.broadcast %cst_460 : f32 to vector<1x128xf32>
    %775 = arith.mulf %774, %773 : vector<1x128xf32>
    %776 = math.tanh %775 : vector<1x128xf32>
    %c5_461 = arith.constant 5 : index
    %c0_462 = arith.constant 0 : index
    %777 = vector.load %arg9[%c5_461, %c0_462] : memref<8x128xf32, #tpu.memory_space<vmem>>, vector<1x128xf32>
    %778 = arith.addf %777, %776 : vector<1x128xf32>
    %c5_463 = arith.constant 5 : index
    %c0_464 = arith.constant 0 : index
    %779 = vector.load %arg9[%c5_463, %c0_464] : memref<8x128xf32, #tpu.memory_space<vmem>>, vector<1x128xf32>
    tpu.vector_store %arg9[%c5_463, %c0_464], %778 {strides = array<i32>} : memref<8x128xf32, #tpu.memory_space<vmem>>, vector<1x128xf32>,
    %c6_465 = arith.constant 6 : index
    %c0_466 = arith.constant 0 : index
    %780 = vector.load %arg9[%c6_465, %c0_466] : memref<8x128xf32, #tpu.memory_space<vmem>>, vector<1x128xf32>
    %781 = arith.addf %780, %776 : vector<1x128xf32>
    %c6_467 = arith.constant 6 : index
    %c0_468 = arith.constant 0 : index
    %782 = vector.load %arg9[%c6_467, %c0_468] : memref<8x128xf32, #tpu.memory_space<vmem>>, vector<1x128xf32>
    tpu.vector_store %arg9[%c6_467, %c0_468], %781 {strides = array<i32>} : memref<8x128xf32, #tpu.memory_space<vmem>>, vector<1x128xf32>,
    %c7_469 = arith.constant 7 : index
    %c0_470 = arith.constant 0 : index
    %c0_471 = arith.constant 0 : index
    %783 = vector.load %arg8[%c7_469, %c0_470, %c0_471] : memref<8x32x128xf32, #tpu.memory_space<vmem>>, vector<1x32x128xf32>
    %784 = vector.shape_cast %783 : vector<1x32x128xf32> to vector<32x128xf32>
    %785 = arith.subf %757, %784 : vector<32x128xf32>
    %786 = arith.mulf %785, %785 : vector<32x128xf32>
    %787 = vector.extract_strided_slice %786 {offsets = [0, 0], sizes = [8, 128], strides = [1, 1]} : vector<32x128xf32> to vector<8x128xf32>
    %788 = vector.extract_strided_slice %786 {offsets = [8, 0], sizes = [8, 128], strides = [1, 1]} : vector<32x128xf32> to vector<8x128xf32>
    %789 = arith.addf %787, %788 : vector<8x128xf32>
    %790 = vector.extract_strided_slice %786 {offsets = [16, 0], sizes = [8, 128], strides = [1, 1]} : vector<32x128xf32> to vector<8x128xf32>
    %791 = arith.addf %789, %790 : vector<8x128xf32>
    %792 = vector.extract_strided_slice %786 {offsets = [24, 0], sizes = [8, 128], strides = [1, 1]} : vector<32x128xf32> to vector<8x128xf32>
    %793 = arith.addf %791, %792 : vector<8x128xf32>
    %794 = math.sqrt %793 : vector<8x128xf32>
    %cst_472 = arith.constant dense<0.000000e+00> : vector<128xf32>
    %795 = vector.multi_reduction <add>, %794, %cst_472 [0] : vector<8x128xf32> to vector<128xf32>
    %796 = vector.shape_cast %795 : vector<128xf32> to vector<1x128xf32>
    %cst_473 = arith.constant 1.250000e-01 : f32
    %797 = vector.broadcast %cst_473 : f32 to vector<1x128xf32>
    %798 = arith.mulf %796, %797 : vector<1x128xf32>
    %cst_474 = arith.constant -1.000000e-01 : f32
    %799 = vector.broadcast %cst_474 : f32 to vector<1x128xf32>
    %800 = arith.mulf %799, %798 : vector<1x128xf32>
    %801 = math.tanh %800 : vector<1x128xf32>
    %c5_475 = arith.constant 5 : index
    %c0_476 = arith.constant 0 : index
    %802 = vector.load %arg9[%c5_475, %c0_476] : memref<8x128xf32, #tpu.memory_space<vmem>>, vector<1x128xf32>
    %803 = arith.addf %802, %801 : vector<1x128xf32>
    %c5_477 = arith.constant 5 : index
    %c0_478 = arith.constant 0 : index
    %804 = vector.load %arg9[%c5_477, %c0_478] : memref<8x128xf32, #tpu.memory_space<vmem>>, vector<1x128xf32>
    tpu.vector_store %arg9[%c5_477, %c0_478], %803 {strides = array<i32>} : memref<8x128xf32, #tpu.memory_space<vmem>>, vector<1x128xf32>,
    %c7_479 = arith.constant 7 : index
    %c0_480 = arith.constant 0 : index
    %805 = vector.load %arg9[%c7_479, %c0_480] : memref<8x128xf32, #tpu.memory_space<vmem>>, vector<1x128xf32>
    %806 = arith.addf %805, %801 : vector<1x128xf32>
    %c7_481 = arith.constant 7 : index
    %c0_482 = arith.constant 0 : index
    %807 = vector.load %arg9[%c7_481, %c0_482] : memref<8x128xf32, #tpu.memory_space<vmem>>, vector<1x128xf32>
    tpu.vector_store %arg9[%c7_481, %c0_482], %806 {strides = array<i32>} : memref<8x128xf32, #tpu.memory_space<vmem>>, vector<1x128xf32>,
    %c6_483 = arith.constant 6 : index
    %c0_484 = arith.constant 0 : index
    %c0_485 = arith.constant 0 : index
    %808 = vector.load %arg8[%c6_483, %c0_484, %c0_485] : memref<8x32x128xf32, #tpu.memory_space<vmem>>, vector<1x32x128xf32>
    %809 = vector.shape_cast %808 : vector<1x32x128xf32> to vector<32x128xf32>
    %c7_486 = arith.constant 7 : index
    %c0_487 = arith.constant 0 : index
    %c0_488 = arith.constant 0 : index
    %810 = vector.load %arg8[%c7_486, %c0_487, %c0_488] : memref<8x32x128xf32, #tpu.memory_space<vmem>>, vector<1x32x128xf32>
    %811 = vector.shape_cast %810 : vector<1x32x128xf32> to vector<32x128xf32>
    %812 = arith.subf %809, %811 : vector<32x128xf32>
    %813 = arith.mulf %812, %812 : vector<32x128xf32>
    %814 = vector.extract_strided_slice %813 {offsets = [0, 0], sizes = [8, 128], strides = [1, 1]} : vector<32x128xf32> to vector<8x128xf32>
    %815 = vector.extract_strided_slice %813 {offsets = [8, 0], sizes = [8, 128], strides = [1, 1]} : vector<32x128xf32> to vector<8x128xf32>
    %816 = arith.addf %814, %815 : vector<8x128xf32>
    %817 = vector.extract_strided_slice %813 {offsets = [16, 0], sizes = [8, 128], strides = [1, 1]} : vector<32x128xf32> to vector<8x128xf32>
    %818 = arith.addf %816, %817 : vector<8x128xf32>
    %819 = vector.extract_strided_slice %813 {offsets = [24, 0], sizes = [8, 128], strides = [1, 1]} : vector<32x128xf32> to vector<8x128xf32>
    %820 = arith.addf %818, %819 : vector<8x128xf32>
    %821 = math.sqrt %820 : vector<8x128xf32>
    %cst_489 = arith.constant dense<0.000000e+00> : vector<128xf32>
    %822 = vector.multi_reduction <add>, %821, %cst_489 [0] : vector<8x128xf32> to vector<128xf32>
    %823 = vector.shape_cast %822 : vector<128xf32> to vector<1x128xf32>
    %cst_490 = arith.constant 1.250000e-01 : f32
    %824 = vector.broadcast %cst_490 : f32 to vector<1x128xf32>
    %825 = arith.mulf %823, %824 : vector<1x128xf32>
    %cst_491 = arith.constant -1.000000e-01 : f32
    %826 = vector.broadcast %cst_491 : f32 to vector<1x128xf32>
    %827 = arith.mulf %826, %825 : vector<1x128xf32>
    %828 = math.tanh %827 : vector<1x128xf32>
    %c6_492 = arith.constant 6 : index
    %c0_493 = arith.constant 0 : index
    %829 = vector.load %arg9[%c6_492, %c0_493] : memref<8x128xf32, #tpu.memory_space<vmem>>, vector<1x128xf32>
    %830 = arith.addf %829, %828 : vector<1x128xf32>
    %c6_494 = arith.constant 6 : index
    %c0_495 = arith.constant 0 : index
    %831 = vector.load %arg9[%c6_494, %c0_495] : memref<8x128xf32, #tpu.memory_space<vmem>>, vector<1x128xf32>
    tpu.vector_store %arg9[%c6_494, %c0_495], %830 {strides = array<i32>} : memref<8x128xf32, #tpu.memory_space<vmem>>, vector<1x128xf32>,
    %c7_496 = arith.constant 7 : index
    %c0_497 = arith.constant 0 : index
    %832 = vector.load %arg9[%c7_496, %c0_497] : memref<8x128xf32, #tpu.memory_space<vmem>>, vector<1x128xf32>
    %833 = arith.addf %832, %828 : vector<1x128xf32>
    %c7_498 = arith.constant 7 : index
    %c0_499 = arith.constant 0 : index
    %834 = vector.load %arg9[%c7_498, %c0_499] : memref<8x128xf32, #tpu.memory_space<vmem>>, vector<1x128xf32>
    tpu.vector_store %arg9[%c7_498, %c0_499], %833 {strides = array<i32>} : memref<8x128xf32, #tpu.memory_space<vmem>>, vector<1x128xf32>,
    %c0_500 = arith.constant 0 : index
    %c0_501 = arith.constant 0 : index
    %835 = vector.load %arg9[%c0_500, %c0_501] : memref<8x128xf32, #tpu.memory_space<vmem>>, vector<8x128xf32>
    %cst_502 = arith.constant 1.250000e-01 : f32
    %836 = vector.broadcast %cst_502 : f32 to vector<8x128xf32>
    %837 = arith.mulf %835, %836 : vector<8x128xf32>
    %c2_503 = arith.constant 2 : index
    %c0_504 = arith.constant 0 : index
    %c0_505 = arith.constant 0 : index
    %838 = vector.load %arg7[%c2_503, %c0_504, %c0_505] : memref<3x8x128xf32, #tpu.memory_space<vmem>>, vector<1x8x128xf32>
    %839 = vector.shape_cast %838 : vector<1x8x128xf32> to vector<8x128xf32>
    %840 = vector.shape_cast %837 : vector<8x128xf32> to vector<1x8x128xf32>
    tpu.vector_store %arg7[%c2_503, %c0_504, %c0_505], %840 {strides = array<i32>} : memref<3x8x128xf32, #tpu.memory_space<vmem>>, vector<1x8x128xf32>,
    return
  }
  func.func @transform_0(%arg0: i32) -> (i32, i32, i32) {
    %c0_i32 = arith.constant 0 : i32
    %c0_i32_0 = arith.constant 0 : i32
    %c0_i32_1 = arith.constant 0 : i32
    return %c0_i32, %c0_i32_0, %arg0 : i32, i32, i32
  }
  func.func @transform_1(%arg0: i32) -> (i32, i32) {
    %c0_i32 = arith.constant 0 : i32
    %c0_i32_0 = arith.constant 0 : i32
    return %c0_i32, %arg0 : i32, i32
  }
  func.func @transform_2(%arg0: i32) -> (i32, i32) {
    %c0_i32 = arith.constant 0 : i32
    %c0_i32_0 = arith.constant 0 : i32
    return %c0_i32, %arg0 : i32, i32
  }
  func.func @transform_3(%arg0: i32) -> (i32, i32) {
    %c0_i32 = arith.constant 0 : i32
    %c0_i32_0 = arith.constant 0 : i32
    %c0_i32_1 = arith.constant 0 : i32
    return %c0_i32, %c0_i32_0 : i32, i32
  }
  func.func @transform_4(%arg0: i32) -> (i32, i32) {
    %c0_i32 = arith.constant 0 : i32
    %c0_i32_0 = arith.constant 0 : i32
    %c0_i32_1 = arith.constant 0 : i32
    return %c0_i32, %c0_i32_0 : i32, i32
  }
  func.func @transform_5(%arg0: i32) -> (i32, i32) {
    %c0_i32 = arith.constant 0 : i32
    %c0_i32_0 = arith.constant 0 : i32
    %c0_i32_1 = arith.constant 0 : i32
    return %c0_i32, %c0_i32_0 : i32, i32
  }
  func.func @transform_6(%arg0: i32) -> (i32, i32, i32) {
    %c0_i32 = arith.constant 0 : i32
    %c0_i32_0 = arith.constant 0 : i32
    %c0_i32_1 = arith.constant 0 : i32
    return %c0_i32, %c0_i32_0, %arg0 : i32, i32, i32
  }
}

</mosaic_0001>

<bundles_post_ra>
// kernel: tpu_custom_call.1
= control target key start
LH: loop header
LB: loop body
LE: loop exit
PB: predicated region body
PF: predicated region fallthrough
CT: control target
= control target key end

     0   :  { %11 = vsyncpa [#allocation5], 0  ;;  %s4300_s0 = inlined_call_operand.hbm [shape: f32[8,32,128], index: 0, kind: input, shape index: {}]   ;;  %s4301_s1 = inlined_call_operand.vmem [shape: f32[32,128], index: 1, kind: input, shape index: {}]   ;;  %s4302_s2 = inlined_call_operand.vmem [shape: f32[32,128], index: 2, kind: input, shape index: {}]   ;;  %s4303_s3 = inlined_call_operand.vmem [shape: f32[32,1], index: 3, kind: input, shape index: {}]   ;;  %s4304_s4 = inlined_call_operand.vmem [shape: f32[32,1], index: 4, kind: input, shape index: {}]   ;;  %s4305_s5 = inlined_call_operand.hbm [shape: f32[32,32], index: 5, kind: input, shape index: {}]   ;;  %s4306_s6 = inlined_call_operand.hbm [shape: f32[3,8,128], index: 6, kind: output, shape index: {}]  }
   0x1   :  { %12 = vsyncpa [#allocation8], 0 }
   0x2   :  { %13 = vsyncpa [#allocation6], 0  ;;  %s2849_s21 = smov [#allocation4]   ;;  %s2777_s25 = scalar_lea.hbm %s4300_s0, 4096 }
   0x3   :  { %s19_s22 = sshll.u32 %s2849_s21, 4  ;;  %p2778_p0 = scmp.ne.s32.totalorder %s4300_s0, %s2777_s25  ;;  %s20_s22 = int_to_ptr.vmem [resolvable:$true] %s19_s22 }
   0x4   :  { %p2781_p1 = scmp.lt.u32.totalorder %s2777_s25, %s4300_s0 }
   0x6   :  { %p2783_p2 = pnand %p2781_p1, %p2778_p0 }
   0x8   :  { %2786 = shalt.err (!%p2783_p2)
}
   0x9   :  { %s2787_s30 = scalar_lea.vmem %s20_s22, 4096  ;;  %p2792_p4 = scmp.lt.s32.totalorder %s20_s22, %s20_s22 }
   0xa   :  { %p2788_p3 = scmp.ne.s32.totalorder %s20_s22, %s2787_s30  ;;  %p2793_p5 = scmp.lt.s32.totalorder %s2787_s30, %s2787_s30 }
   0xc   :  { %p2794_p6 = por %p2793_p5, %p2792_p4 }
   0xe   :  { %p2795_p7 = pnand %p2794_p6, %p2788_p3 }
  0x10   :  { %2798 = shalt.err (!%p2795_p7)
}
  0x11   :  { %s2850_s7 = smov 128   ;;  %s2851_s8 = smov 8  }
  0x12   :  { %25 = dma.hbm_to_vmem [thread:$0]  %s4300_s0, 4096, %s20_s22, [#allocation5], %s2850_s7, %s2850_s7, %s2851_s8  }
  0x13   :  { %s2852_s11 = smov [#allocation7]   ;;  %s2799_s15 = scalar_lea.hbm %s4305_s5, 512 }
  0x14   :  { %s39_s12 = sshll.u32 %s2852_s11, 4  ;;  %p2800_p8 = scmp.ne.s32.totalorder %s4305_s5, %s2799_s15  ;;  %s40_s12 = int_to_ptr.vmem [resolvable:$true] %s39_s12 }
  0x15   :  { %p2803_p9 = scmp.lt.u32.totalorder %s2799_s15, %s4305_s5 }
  0x17   :  { %p2805_p10 = pnand %p2803_p9, %p2800_p8 }
  0x19   :  { %2808 = shalt.err (!%p2805_p10)
}
  0x1a   :  { %s2809_s20 = scalar_lea.vmem %s40_s12, 512  ;;  %p2814_p12 = scmp.lt.s32.totalorder %s40_s12, %s40_s12 }
  0x1b   :  { %p2810_p11 = scmp.ne.s32.totalorder %s40_s12, %s2809_s20  ;;  %p2815_p13 = scmp.lt.s32.totalorder %s2809_s20, %s2809_s20 }
  0x1d   :  { %p2816_p0 = por %p2815_p13, %p2814_p12 }
  0x1f   :  { %p2817_p1 = pnand %p2816_p0, %p2810_p11 }
  0x21   :  { %2820 = shalt.err (!%p2817_p1)
}
  0x22   :  { %45 = dma.hbm_to_vmem [thread:$0]  %s4305_s5, 512, %s40_s12, [#allocation8], %s2850_s7, %s2850_s7, %s2851_s8  }
  0x23   :  { %2843 = dma.done.wait [#allocation5], 4096  }
  0x24   :  { %2844 = vsyncadd [#allocation5], 4294963200 }
  0x25   :  { %2845 = dma.done.wait [#allocation8], 512  }
  0x26   :  { %2846 = vsyncadd [#allocation8], 4294966784  ;;  %v2853_v0 = vmov 0   ;;  %v140_v1 = vld [vmem:[%s4304_s4] sm:$0xff]  ;;  %v141_v3 = vld [vmem:[%s4304_s4 + $0x8] sm:$0xff] }
  0x27   :  { %2660 = vset.pattern.permute.xlu1 %v2853_v0  ;;  %2659 = vset.pattern.permute.xlu0 %v2853_v0  ;;  %v84_v2 = vld [vmem:[%s4303_s3] sm:$0xff]  ;;  %v85_v4 = vld [vmem:[%s4303_s3 + $0x8] sm:$0xff]  ;;  %v87_v5 = vld [vmem:[%s4303_s3 + $0x18] sm:$0xff] }
  0x28   :  { %146 = vperm.xlu1 %2660, %v140_v1   ;;  %90 = vperm.xlu0 %2659, %v84_v2   ;;  %v86_v6 = vld [vmem:[%s4303_s3 + $0x10] sm:$0xff]  ;;  %v143_v7 = vld [vmem:[%s4304_s4 + $0x18] sm:$0xff]  ;;  %v52_v9 = vld [vmem:[#allocation4] sm:$0xff] }
  0x29   :  { %v142_v8 = vld [vmem:[%s4304_s4 + $0x10] sm:$0xff]  ;;  %v56_v10 = vld [vmem:[#allocation4 + $0x20] sm:$0xff] }
  0x2a   :  { %v60_v11 = vld [vmem:[#allocation4 + $0x40] sm:$0xff]  ;;  %v53_v51 = vld [vmem:[#allocation4 + $0x8] sm:$0xff] }
  0x2b   :  { %v64_v12 = vld [vmem:[#allocation4 + $0x60] sm:$0xff]  ;;  %v57_v52 = vld [vmem:[#allocation4 + $0x28] sm:$0xff] }
  0x2c   :  { %151 = vperm.xlu1 %2660, %v141_v3   ;;  %95 = vperm.xlu0 %2659, %v85_v4   ;;  %v68_v13 = vld [vmem:[#allocation4 + $0x80] sm:$0xff]  ;;  %v61_v58 = vld [vmem:[#allocation4 + $0x48] sm:$0xff] }
  0x2d   :  { %v72_v14 = vld [vmem:[#allocation4 + $0xa0] sm:$0xff]  ;;  %v65_v59 = vld [vmem:[#allocation4 + $0x68] sm:$0xff] }
  0x2e   :  { %v76_v15 = vld [vmem:[#allocation4 + $0xc0] sm:$0xff]  ;;  %v69_v60 = vld [vmem:[#allocation4 + $0x88] sm:$0xff] }
  0x2f   :  { %v80_v16 = vld [vmem:[#allocation4 + $0xe0] sm:$0xff]  ;;  %v73_v1 = vld [vmem:[#allocation4 + $0xa8] sm:$0xff] }
  0x30   :  { %105 = vperm.xlu1 %2660, %v87_v5   ;;  %100 = vperm.xlu0 %2659, %v86_v6   ;;  %v77_v2 = vld [vmem:[#allocation4 + $0xc8] sm:$0xff] }
  0x31   :  { %v81_v3 = vld [vmem:[#allocation4 + $0xe8] sm:$0xff] }
  0x34   :  { %161 = vperm.xlu1 %2660, %v143_v7   ;;  %156 = vperm.xlu0 %2659, %v142_v8  }
  0xa7   :  { %v91_v17 = vpop.permute.xlu0 %90  ;;  %v147_v22 = vpop.permute.xlu1 %146 }
  0xa8   :  { %v108_v18 = vmul.f32 %v91_v17, %v52_v9  ;;  %v112_v19 = vmul.f32 %v91_v17, %v56_v10  ;;  %v116_v20 = vmul.f32 %v91_v17, %v60_v11  ;;  %v120_v21 = vmul.f32 %v91_v17, %v64_v12 }
  0xa9   :  { %v124_v23 = vmul.f32 %v91_v17, %v68_v13  ;;  %v128_v24 = vmul.f32 %v91_v17, %v72_v14  ;;  %v132_v25 = vmul.f32 %v91_v17, %v76_v15  ;;  %v136_v26 = vmul.f32 %v91_v17, %v80_v16 }
  0xaa   :  { %v2945_v27 = vadd.f32 %v147_v22, %v108_v18  ;;  %v2947_v28 = vadd.f32 %v147_v22, %v112_v19  ;;  %v2949_v29 = vadd.f32 %v147_v22, %v116_v20  ;;  %v2951_v30 = vadd.f32 %v147_v22, %v120_v21 }
  0xab   :  { %v2953_v31 = vadd.f32 %v147_v22, %v124_v23  ;;  %v2955_v32 = vadd.f32 %v147_v22, %v128_v24  ;;  %v2957_v33 = vadd.f32 %v147_v22, %v132_v25  ;;  %v2959_v34 = vadd.f32 %v147_v22, %v136_v26  ;;  %v96_v57 = vpop.permute.xlu0 %95  ;;  %v152_v12 = vpop.permute.xlu1 %151 }
  0xac   :  { %4347 = vst [vmem:[#allocation13_spill] sm:$0xff] %v2949_v29  ;;  %4348 = vst [vmem:[#allocation14_spill] sm:$0xff] %v2951_v30  ;;  %v2963_v35 = vsub.f32 %v2945_v27, %v2947_v28  ;;  %v2967_v36 = vsub.f32 %v2945_v27, %v2949_v29  ;;  %v2971_v37 = vsub.f32 %v2945_v27, %v2951_v30 }
  0xad   :  { %4349 = vst [vmem:[#allocation15_spill] sm:$0xff] %v2953_v31  ;;  %4350 = vst [vmem:[#allocation16_spill] sm:$0xff] %v2955_v32  ;;  %v2975_v38 = vsub.f32 %v2945_v27, %v2953_v31  ;;  %v2979_v39 = vsub.f32 %v2945_v27, %v2955_v32  ;;  %v2983_v40 = vsub.f32 %v2945_v27, %v2957_v33 }
  0xae   :  { %4351 = vst [vmem:[#allocation17_spill] sm:$0xff] %v2957_v33  ;;  %4352 = vst [vmem:[#allocation18_spill] sm:$0xff] %v2959_v34  ;;  %v2987_v41 = vsub.f32 %v2945_v27, %v2959_v34  ;;  %v2991_v42 = vsub.f32 %v2947_v28, %v2949_v29  ;;  %v2995_v43 = vsub.f32 %v2947_v28, %v2951_v30 }
  0xaf   :  { %v2999_v44 = vsub.f32 %v2947_v28, %v2953_v31  ;;  %v3003_v45 = vsub.f32 %v2947_v28, %v2955_v32  ;;  %v3007_v46 = vsub.f32 %v2947_v28, %v2957_v33  ;;  %v3011_v47 = vsub.f32 %v2947_v28, %v2959_v34 }
  0xb0   :  { %v3015_v48 = vsub.f32 %v2949_v29, %v2951_v30  ;;  %v3019_v49 = vsub.f32 %v2949_v29, %v2953_v31  ;;  %v3023_v50 = vsub.f32 %v2949_v29, %v2955_v32  ;;  %v3027_v53 = vsub.f32 %v2949_v29, %v2957_v33 }
  0xb1   :  { %v3031_v54 = vsub.f32 %v2949_v29, %v2959_v34  ;;  %v3035_v55 = vsub.f32 %v2951_v30, %v2953_v31  ;;  %v3039_v56 = vsub.f32 %v2951_v30, %v2955_v32  ;;  %v3043_v61 = vsub.f32 %v2951_v30, %v2957_v33 }
  0xb2   :  { %4353 = vst [vmem:[#allocation19_spill] sm:$0xff] %v3019_v49  ;;  %4354 = vst [vmem:[#allocation20_spill] sm:$0xff] %v3023_v50  ;;  %v3047_v62 = vsub.f32 %v2951_v30, %v2959_v34  ;;  %v3051_v63 = vsub.f32 %v2953_v31, %v2955_v32  ;;  %v3055_v0 = vsub.f32 %v2953_v31, %v2957_v33 }
  0xb3   :  { %4355 = vst [vmem:[#allocation21_spill] sm:$0xff] %v3027_v53  ;;  %4356 = vst [vmem:[#allocation22_spill] sm:$0xff] %v3031_v54  ;;  %v3059_v4 = vsub.f32 %v2953_v31, %v2959_v34  ;;  %v3063_v5 = vsub.f32 %v2955_v32, %v2957_v33  ;;  %v3067_v6 = vsub.f32 %v2955_v32, %v2959_v34 }
  0xb4   :  { %4357 = vst [vmem:[#allocation23_spill] sm:$0xff] %v3035_v55  ;;  %4358 = vst [vmem:[#allocation24_spill] sm:$0xff] %v3039_v56  ;;  %v3071_v7 = vsub.f32 %v2957_v33, %v2959_v34  ;;  %v109_v8 = vmul.f32 %v96_v57, %v53_v51  ;;  %v113_v9 = vmul.f32 %v96_v57, %v57_v52 }
  0xb5   :  { %4359 = vst [vmem:[#allocation25_spill] sm:$0xff] %v3043_v61  ;;  %4360 = vst [vmem:[#allocation26_spill] sm:$0xff] %v3047_v62  ;;  %v117_v10 = vmul.f32 %v96_v57, %v61_v58  ;;  %v121_v11 = vmul.f32 %v96_v57, %v65_v59  ;;  %v125_v13 = vmul.f32 %v96_v57, %v69_v60  ;;  %v67_v62 = vld [vmem:[#allocation4 + $0x78] sm:$0xff] }
  0xb6   :  { %4361 = vst [vmem:[#allocation27_spill] sm:$0xff] %v3051_v63  ;;  %4362 = vst [vmem:[#allocation28_spill] sm:$0xff] %v3055_v0  ;;  %v129_v14 = vmul.f32 %v96_v57, %v73_v1  ;;  %v133_v15 = vmul.f32 %v96_v57, %v77_v2  ;;  %v137_v16 = vmul.f32 %v96_v57, %v81_v3  ;;  %v58_v63 = vld [vmem:[#allocation4 + $0x30] sm:$0xff] }
  0xb7   :  { %4363 = vst [vmem:[#allocation29_spill] sm:$0xff] %v3059_v4  ;;  %4364 = vst [vmem:[#allocation30_spill] sm:$0xff] %v3063_v5  ;;  %v165_v17 = vadd.f32 %v152_v12, %v109_v8  ;;  %v169_v18 = vadd.f32 %v152_v12, %v113_v9  ;;  %v3073_v19 = vadd.f32 %v152_v12, %v117_v10 }
  0xb8   :  { %4365 = vst [vmem:[#allocation31_spill] sm:$0xff] %v3067_v6  ;;  %4366 = vst [vmem:[#allocation32_spill] sm:$0xff] %v3071_v7  ;;  %v3075_v20 = vadd.f32 %v152_v12, %v121_v11  ;;  %v3077_v21 = vadd.f32 %v152_v12, %v125_v13  ;;  %v3079_v22 = vadd.f32 %v152_v12, %v129_v14 }
  0xb9   :  { %4367 = vst [vmem:[#allocation33_spill] sm:$0xff] %v3073_v19  ;;  %v3081_v23 = vadd.f32 %v152_v12, %v133_v15  ;;  %v3083_v24 = vadd.f32 %v152_v12, %v137_v16  ;;  %v3085_v25 = vsub.f32 %v165_v17, %v169_v18  ;;  %v3088_v26 = vsub.f32 %v165_v17, %v3073_v19 }
  0xba   :  { %4368 = vst [vmem:[#allocation34_spill] sm:$0xff] %v3075_v20  ;;  %4369 = vst [vmem:[#allocation35_spill] sm:$0xff] %v3077_v21  ;;  %v3091_v51 = vsub.f32 %v165_v17, %v3075_v20  ;;  %v3094_v52 = vsub.f32 %v165_v17, %v3077_v21  ;;  %v3097_v57 = vsub.f32 %v165_v17, %v3079_v22 }
  0xbb   :  { %4370 = vst [vmem:[#allocation36_spill] sm:$0xff] %v3079_v22  ;;  %4371 = vst [vmem:[#allocation37_spill] sm:$0xff] %v3081_v23  ;;  %v3100_v58 = vsub.f32 %v165_v17, %v3081_v23  ;;  %v3103_v59 = vsub.f32 %v165_v17, %v3083_v24  ;;  %v3106_v60 = vsub.f32 %v169_v18, %v3073_v19 }
  0xbc   :  { %4372 = vst [vmem:[#allocation38_spill] sm:$0xff] %v3083_v24  ;;  %v3109_v1 = vsub.f32 %v169_v18, %v3075_v20  ;;  %v3112_v2 = vsub.f32 %v169_v18, %v3077_v21  ;;  %v3115_v3 = vsub.f32 %v169_v18, %v3079_v22  ;;  %v3118_v8 = vsub.f32 %v169_v18, %v3081_v23 }
  0xbd   :  { %v3121_v9 = vsub.f32 %v169_v18, %v3083_v24  ;;  %v3125_v10 = vsub.f32 %v3073_v19, %v3075_v20  ;;  %v3129_v11 = vsub.f32 %v3073_v19, %v3077_v21  ;;  %v3133_v12 = vsub.f32 %v3073_v19, %v3079_v22 }
  0xbe   :  { %v3137_v13 = vsub.f32 %v3073_v19, %v3081_v23  ;;  %v3141_v14 = vsub.f32 %v3073_v19, %v3083_v24  ;;  %v3145_v15 = vsub.f32 %v3075_v20, %v3077_v21  ;;  %v3149_v16 = vsub.f32 %v3075_v20, %v3079_v22 }
  0xbf   :  { %4373 = vst [vmem:[#allocation39_spill] sm:$0xff] %v3129_v11  ;;  %4374 = vst [vmem:[#allocation40_spill] sm:$0xff] %v3133_v12  ;;  %v3153_v34 = vsub.f32 %v3075_v20, %v3081_v23  ;;  %v3157_v33 = vsub.f32 %v3075_v20, %v3083_v24  ;;  %v3161_v32 = vsub.f32 %v3077_v21, %v3079_v22  ;;  %v62_v11 = vld [vmem:[#allocation4 + $0x50] sm:$0xff] }
  0xc0   :  { %4375 = vst [vmem:[#allocation41_spill] sm:$0xff] %v3137_v13  ;;  %4376 = vst [vmem:[#allocation42_spill] sm:$0xff] %v3141_v14  ;;  %v3165_v31 = vsub.f32 %v3077_v21, %v3081_v23  ;;  %v3169_v7 = vsub.f32 %v3077_v21, %v3083_v24  ;;  %v3173_v6 = vsub.f32 %v3079_v22, %v3081_v23  ;;  %v3185_v21 = vpop.permute.xlu0 %100  ;;  %v79_v14 = vld [vmem:[#allocation4 + $0xd8] sm:$0xff] }
  0xc1   :  { %4377 = vst [vmem:[#allocation43_spill] sm:$0xff] %v3145_v15  ;;  %4378 = vst [vmem:[#allocation44_spill] sm:$0xff] %v3149_v16  ;;  %v3177_v5 = vsub.f32 %v3079_v22, %v3083_v24  ;;  %v3181_v4 = vsub.f32 %v3081_v23, %v3083_v24  ;;  %v2588_v0 = vpack.c.bf16 %v165_v17, %v2945_v27  ;;  %v228_v22 = vld [vmem:[%s4301_s1] sm:$0xff]  ;;  %v106_v24 = vpop.permute.xlu1 %105  ;;  %v54_v23 = vld [vmem:[#allocation4 + $0x10] sm:$0xff] }
  0xc2   :  { %4379 = vst [vmem:[#allocation45_spill] sm:$0xff] %v3153_v34  ;;  %4380 = vst [vmem:[#allocation46_spill] sm:$0xff] %v3157_v33  ;;  %v63_v33 = vld [vmem:[#allocation4 + $0x58] sm:$0xff]  ;;  %v240_v61 = vsub.f32 %v2949_v29, %v228_v22  ;;  %v3199_v16 = vsub.f32 %v2951_v30, %v228_v22  ;;  %v114_v54 = vmul.f32 %v3185_v21, %v58_v63 }
  0xc3   :  { %4381 = vst [vmem:[#allocation47_spill] sm:$0xff] %v3161_v32  ;;  %4382 = vst [vmem:[#allocation48_spill] sm:$0xff] %v3165_v31  ;;  %v2596_v31 = vpack.c.bf16 %v169_v18, %v2947_v28  ;;  %2589 = vmatprep.subr.bf16.mxu0 %v2588_v0  ;;  %v232_v32 = vsub.f32 %v2945_v27, %v228_v22  ;;  %v71_v27 = vld [vmem:[#allocation4 + $0x98] sm:$0xff]  ;;  %v119_v53 = vmul.f32 %v106_v24, %v63_v33 }
  0xc4   :  { %4383 = vst [vmem:[#allocation49_spill] sm:$0xff] %v3169_v7  ;;  %4384 = vst [vmem:[#allocation50_spill] sm:$0xff] %v3173_v6  ;;  %2591 = vmatpush3.bf16.msra.mxu0 %v2588_v0  ;;  %v229_v6 = vld [vmem:[%s4301_s1 + $0x8] sm:$0xff]  ;;  %v59_v7 = vld [vmem:[#allocation4 + $0x38] sm:$0xff]  ;;  %v3195_v34 = vpop.permute.xlu0 %156  ;;  %v123_v29 = vmul.f32 %v106_v24, %v67_v62  ;;  %v135_v63 = vmul.f32 %v106_v24, %v79_v14 }
  0xc5   :  { %4385 = vst [vmem:[#allocation51_spill] sm:$0xff] %v3177_v5  ;;  %4386 = vst [vmem:[#allocation52_spill] sm:$0xff] %v3181_v4  ;;  %2597 = vmatprep.subr.bf16.mxu1 %v2596_v31  ;;  %v233_v4 = vsub.f32 %v165_v17, %v229_v6  ;;  %v55_v5 = vld [vmem:[#allocation4 + $0x18] sm:$0xff]  ;;  %v237_v0 = vsub.f32 %v169_v18, %v229_v6  ;;  %v241_v56 = vsub.f32 %v3073_v19, %v229_v6  ;;  %v162_v30 = vpop.permute.xlu1 %161 }
  0xc6   :  { %2599 = vmatpush3.bf16.msra.mxu1 %v2596_v31  ;;  %v236_v31 = vsub.f32 %v2947_v28, %v228_v22  ;;  %4387 = vst [vmem:[#allocation53_spill] sm:$0xff] %v3199_v16  ;;  %v110_v17 = vmul.f32 %v3185_v21, %v54_v23  ;;  %v3204_v55 = vsub.f32 %v3075_v20, %v229_v6  ;;  %v75_v15 = vld [vmem:[#allocation4 + $0xb8] sm:$0xff] }
  0xc7   :  { %v111_v28 = vmul.f32 %v106_v24, %v55_v5  ;;  %v115_v18 = vmul.f32 %v106_v24, %v59_v7  ;;  %v83_v13 = vld [vmem:[#allocation4 + $0xf8] sm:$0xff]  ;;  %v265_v16 = vmul.f32 %v233_v4, %v233_v4  ;;  %v3211_v23 = vadd.f32 %v3195_v34, %v114_v54  ;;  %v66_v4 = vld [vmem:[#allocation4 + $0x70] sm:$0xff] }
  0xc8   :  { %4388 = vst [vmem:[#allocation54_spill] sm:$0xff] %v3204_v55  ;;  %v3208_v22 = vadd.f32 %v3195_v34, %v110_v17  ;;  %v264_v6 = vmul.f32 %v232_v32, %v232_v32  ;;  %v268_v55 = vmul.f32 %v236_v31, %v236_v31  ;;  %v269_v20 = vmul.f32 %v237_v0, %v237_v0 }
  0xc9   :  { %4390 = vst [vmem:[#allocation56_spill] sm:$0xff] %v3211_v23  ;;  %v127_v19 = vmul.f32 %v106_v24, %v71_v27  ;;  %v131_v5 = vmul.f32 %v106_v24, %v75_v15  ;;  %v272_v7 = vmul.f32 %v240_v61, %v240_v61  ;;  %v273_v50 = vmul.f32 %v241_v56, %v241_v56 }
  0xca   :  { %4389 = vst [vmem:[#allocation55_spill] sm:$0xff] %v3208_v22  ;;  %v139_v12 = vmul.f32 %v106_v24, %v83_v13  ;;  %v3213_v33 = vadd.f32 %v265_v16, %v264_v6  ;;  %v3215_v62 = vadd.f32 %v269_v20, %v268_v55  ;;  %v3217_v17 = vadd.f32 %v162_v30, %v111_v28 }
  0xcb   :  { %v3219_v49 = vadd.f32 %v273_v50, %v272_v7  ;;  %v1306_v32 = vmul.f32 %v2963_v35, %v2963_v35  ;;  %v1307_v54 = vmul.f32 %v3085_v25, %v3085_v25  ;;  %v3225_v61 = vadd.f32 %v162_v30, %v115_v18  ;;  %v231_v25 = vld [vmem:[%s4301_s1 + $0x18] sm:$0xff] }
  0xcc   :  { %4391 = vst [vmem:[#allocation57_spill] sm:$0xff] %v3217_v17  ;;  %v3227_v56 = vadd.f32 %v162_v30, %v119_v53  ;;  %v3229_v24 = vadd.f32 %v162_v30, %v123_v29  ;;  %v1304_v55 = vsub.f32 %v3208_v22, %v3211_v23  ;;  %v118_v20 = vmul.f32 %v3185_v21, %v62_v11 }
  0xcd   :  { %4392 = vst [vmem:[#allocation58_spill] sm:$0xff] %v3225_v61  ;;  %v1310_v13 = vadd.f32 %v1307_v54, %v1306_v32  ;;  %v1343_v50 = vmul.f32 %v2967_v36, %v2967_v36  ;;  %v1344_v35 = vmul.f32 %v3088_v26, %v3088_v26  ;;  %v3241_v53 = vadd.f32 %v162_v30, %v127_v19  ;;  %v70_v19 = vld [vmem:[#allocation4 + $0x90] sm:$0xff] }
  0xce   :  { %4393 = vst [vmem:[#allocation59_spill] sm:$0xff] %v3227_v56  ;;  %4394 = vst [vmem:[#allocation60_spill] sm:$0xff] %v3229_v24  ;;  %v3243_v29 = vadd.f32 %v162_v30, %v131_v5  ;;  %v3245_v14 = vadd.f32 %v162_v30, %v135_v63  ;;  %v122_v15 = vmul.f32 %v3185_v21, %v66_v4 }
  0xcf   :  { %4395 = vst [vmem:[#allocation61_spill] sm:$0xff] %v3241_v53  ;;  %v3249_v11 = vadd.f32 %v3195_v34, %v118_v20  ;;  %v1347_v16 = vadd.f32 %v1344_v35, %v1343_v50  ;;  %v1380_v36 = vmul.f32 %v2971_v37, %v2971_v37  ;;  %v1381_v26 = vmul.f32 %v3091_v51, %v3091_v51 }
  0xd0   :  { %4396 = vst [vmem:[#allocation62_spill] sm:$0xff] %v3243_v29  ;;  %4397 = vst [vmem:[#allocation63_spill] sm:$0xff] %v3245_v14  ;;  %v3255_v31 = vadd.f32 %v162_v30, %v139_v12  ;;  %v1308_v0 = vmul.f32 %v1304_v55, %v1304_v55  ;;  %v1417_v27 = vmul.f32 %v2975_v38, %v2975_v38 }
  0xd1   :  { %v1418_v28 = vmul.f32 %v3094_v52, %v3094_v52  ;;  %v235_v18 = vsub.f32 %v3217_v17, %v231_v25  ;;  %v239_v6 = vsub.f32 %v3225_v61, %v231_v25  ;;  %v3264_v5 = vadd.f32 %v3195_v34, %v122_v15 }
  0xd2   :  { %4398 = vst [vmem:[#allocation64_spill] sm:$0xff] %v3255_v31  ;;  %v1384_v37 = vadd.f32 %v1381_v26, %v1380_v36  ;;  %v1305_v30 = vsub.f32 %v3217_v17, %v3225_v61  ;;  %v1454_v12 = vmul.f32 %v2979_v39, %v2979_v39  ;;  %v1455_v38 = vmul.f32 %v3097_v57, %v3097_v57  ;;  %v74_v36 = vld [vmem:[#allocation4 + $0xb0] sm:$0xff] }
  0xd3   :  { %v3268_v51 = vadd.f32 %v1418_v28, %v1417_v27  ;;  %v243_v52 = vsub.f32 %v3227_v56, %v231_v25  ;;  %v247_v7 = vsub.f32 %v3229_v24, %v231_v25  ;;  %v126_v63 = vmul.f32 %v3185_v21, %v70_v19  ;;  %v78_v28 = vld [vmem:[#allocation4 + $0xd0] sm:$0xff] }
  0xd4   :  { %v1341_v4 = vsub.f32 %v3208_v22, %v3249_v11  ;;  %v3280_v32 = vsub.f32 %v3241_v53, %v231_v25  ;;  %v1342_v54 = vsub.f32 %v3217_v17, %v3227_v56  ;;  %v1311_v55 = vadd.f32 %v1310_v13, %v1308_v0 }
  0xd5   :  { %v3284_v39 = vadd.f32 %v1455_v38, %v1454_v12  ;;  %v3286_v20 = vmul.f32 %v235_v18, %v235_v18  ;;  %v3289_v57 = vadd.f32 %v3195_v34, %v126_v63  ;;  %v1378_v50 = vsub.f32 %v3208_v22, %v3264_v5 }
  0xd6   :  { %4399 = vst [vmem:[#allocation65_spill] sm:$0xff] %v3280_v32  ;;  %v1492_v35 = vmul.f32 %v3100_v58, %v3100_v58  ;;  %v1309_v15 = vmul.f32 %v1305_v30, %v1305_v30  ;;  %v1379_v25 = vsub.f32 %v3217_v17, %v3229_v24  ;;  %v1416_v13 = vsub.f32 %v3217_v17, %v3241_v53 }
  0xd7   :  { %4400 = vst [vmem:[#allocation66_spill] sm:$0xff] %v3286_v20  ;;  %v1491_v26 = vmul.f32 %v2983_v40, %v2983_v40  ;;  %v3301_v19 = vmul.f32 %v239_v6, %v239_v6  ;;  %v3303_v0 = vmul.f32 %v243_v52, %v243_v52  ;;  %v3305_v27 = vmul.f32 %v247_v7, %v247_v7 }
  0xd8   :  { %v1345_v18 = vmul.f32 %v1341_v4, %v1341_v4  ;;  %v1346_v58 = vmul.f32 %v1342_v54, %v1342_v54  ;;  %v3307_v30 = vadd.f32 %v1311_v55, %v1309_v15  ;;  %v1529_v38 = vmul.f32 %v3103_v59, %v3103_v59  ;;  %v82_v59 = vld [vmem:[#allocation4 + $0xf0] sm:$0xff] }
  0xd9   :  { %4401 = vst [vmem:[#allocation67_spill] sm:$0xff] %v3301_v19  ;;  %4402 = vst [vmem:[#allocation68_spill] sm:$0xff] %v3303_v0  ;;  %v3309_v12 = vadd.f32 %v1492_v35, %v1491_v26  ;;  %v130_v63 = vmul.f32 %v3185_v21, %v74_v36  ;;  %v1382_v32 = vmul.f32 %v1378_v50, %v1378_v50 }
  0xda   :  { %4403 = vst [vmem:[#allocation69_spill] sm:$0xff] %v3305_v27  ;;  %v1415_v40 = vsub.f32 %v3208_v22, %v3289_v57  ;;  %v1528_v6 = vmul.f32 %v2987_v41, %v2987_v41  ;;  %v1383_v52 = vmul.f32 %v1379_v25, %v1379_v25  ;;  %v1420_v7 = vmul.f32 %v1416_v13, %v1416_v13 }
  0xdb   :  { %v1453_v4 = vsub.f32 %v3217_v17, %v3243_v29  ;;  %v134_v54 = vmul.f32 %v3185_v21, %v78_v28  ;;  %v1490_v55 = vsub.f32 %v3217_v17, %v3245_v14  ;;  %v3324_v35 = vadd.f32 %v3195_v34, %v130_v63 }
  0xdc   :  { %v1348_v50 = vadd.f32 %v1347_v16, %v1345_v18  ;;  %v3326_v15 = vadd.f32 %v1529_v38, %v1528_v6  ;;  %v1527_v41 = vsub.f32 %v3217_v17, %v3255_v31  ;;  %2661 = vrsqrt.f32 %v3307_v30 }
  0xdd   :  { %v3331_v25 = vadd.f32 %v3195_v34, %v134_v54  ;;  %v1570_v13 = vmul.f32 %v3106_v60, %v3106_v60  ;;  %v1568_v36 = vsub.f32 %v3225_v61, %v3227_v56  ;;  %v1385_v26 = vadd.f32 %v1384_v37, %v1382_v32 }
  0xde   :  { %v1419_v28 = vmul.f32 %v1415_v40, %v1415_v40  ;;  %v1569_v16 = vmul.f32 %v2991_v42, %v2991_v42  ;;  %v1457_v18 = vmul.f32 %v1453_v4, %v1453_v4  ;;  %v1605_v38 = vsub.f32 %v3225_v61, %v3229_v24 }
  0xdf   :  { %v1642_v63 = vsub.f32 %v3225_v61, %v3241_v53  ;;  %v138_v6 = vmul.f32 %v3185_v21, %v82_v59  ;;  %v3345_v54 = vadd.f32 %v1348_v50, %v1346_v58  ;;  %v1452_v60 = vsub.f32 %v3208_v22, %v3324_v35 }
  0xe0   :  { %v3349_v27 = vadd.f32 %v1570_v13, %v1569_v16  ;;  %v1607_v37 = vmul.f32 %v3109_v1, %v3109_v1  ;;  %v1679_v42 = vsub.f32 %v3225_v61, %v3243_v29  ;;  %v1489_v40 = vsub.f32 %v3208_v22, %v3331_v25 }
  0xe1   :  { %v3356_v32 = vadd.f32 %v3195_v34, %v138_v6  ;;  %v1606_v21 = vmul.f32 %v2995_v43, %v2995_v43  ;;  %v1494_v58 = vmul.f32 %v1490_v55, %v1490_v55  ;;  %v3362_v4 = vmul.f32 %v1527_v41, %v1527_v41 }
  0xe2   :  { %v3364_v59 = vadd.f32 %v1385_v26, %v1383_v52  ;;  %v1422_v50 = vadd.f32 %v3268_v51, %v1419_v28  ;;  %v3367_v1 = vmul.f32 %v1568_v36, %v1568_v36  ;;  %v3369_v13 = vmul.f32 %v1605_v38, %v1605_v38 }
  0xe3   :  { %v1716_v34 = vsub.f32 %v3225_v61, %v3245_v14  ;;  %v3373_v16 = vadd.f32 %v1607_v37, %v1606_v21  ;;  %v1753_v6 = vsub.f32 %v3225_v61, %v3255_v31  ;;  %v1794_v43 = vsub.f32 %v3227_v56, %v3229_v24 }
  0xe4   :  { %2663 = vrsqrt.f32 %v3345_v54  ;;  %v1456_v52 = vmul.f32 %v1452_v60, %v1452_v60  ;;  %v1831_v51 = vsub.f32 %v3227_v56, %v3241_v53  ;;  %v1868_v55 = vsub.f32 %v3227_v56, %v3243_v29 }
  0xe5   :  { %v1493_v41 = vmul.f32 %v1489_v40, %v1489_v40  ;;  %v1526_v36 = vsub.f32 %v3208_v22, %v3356_v32  ;;  %v3386_v26 = vmul.f32 %v1642_v63, %v1642_v63  ;;  %v3388_v28 = vmul.f32 %v1679_v42, %v1679_v42 }
  0xe6   :  { %2665 = vrsqrt.f32 %v3364_v59  ;;  %v3391_v38 = vadd.f32 %v1422_v50, %v1420_v7  ;;  %v2662_v37 = vpop.eup %2661  ;;  %v3393_v60 = vmul.f32 %v1716_v34, %v1716_v34  ;;  %v1905_v21 = vsub.f32 %v3227_v56, %v3245_v14 }
  0xe7   :  { %v1942_v40 = vsub.f32 %v3227_v56, %v3255_v31  ;;  %v1983_v0 = vsub.f32 %v3229_v24, %v3241_v53  ;;  %v3401_v63 = vmul.f32 %v1753_v6, %v1753_v6  ;;  %v3403_v42 = vmul.f32 %v1794_v43, %v1794_v43 }
  0xe8   :  { %v2020_v7 = vsub.f32 %v3229_v24, %v3243_v29  ;;  %v1459_v50 = vadd.f32 %v3284_v39, %v1456_v52  ;;  %v3408_v34 = vmul.f32 %v1831_v51, %v1831_v51  ;;  %v3410_v61 = vmul.f32 %v1868_v55, %v1868_v55 }
  0xe9   :  { %v1496_v17 = vadd.f32 %v3309_v12, %v1493_v41  ;;  %v1530_v19 = vmul.f32 %v1526_v36, %v1526_v36  ;;  %v1314_v56 = vmul.f32 %v2662_v37, %v3307_v30  ;;  %2667 = vrsqrt.f32 %v3391_v38 }
  0xea   :  { %v1567_v6 = vsub.f32 %v3211_v23, %v3249_v11  ;;  %v1644_v43 = vmul.f32 %v3112_v2, %v3112_v2  ;;  %v3419_v20 = vmul.f32 %v1905_v21, %v1905_v21  ;;  %v3421_v39 = vmul.f32 %v1942_v40, %v1942_v40 }
  0xeb   :  { %v3423_v52 = vmul.f32 %v1983_v0, %v1983_v0  ;;  %v1604_v12 = vsub.f32 %v3211_v23, %v3264_v5  ;;  %v3427_v51 = vmul.f32 %v2020_v7, %v2020_v7  ;;  %v2057_v55 = vsub.f32 %v3229_v24, %v3245_v14 }
  0xec   :  { %4404 = vst [vmem:[#allocation70_spill] sm:$0xff] %v3421_v39  ;;  %v3431_v41 = vadd.f32 %v1459_v50, %v1457_v18  ;;  %v1643_v36 = vmul.f32 %v2999_v44, %v2999_v44  ;;  %v2094_v2 = vsub.f32 %v3229_v24, %v3255_v31  ;;  %v2135_v0 = vsub.f32 %v3241_v53, %v3243_v29 }
  0xed   :  { %4405 = vst [vmem:[#allocation71_spill] sm:$0xff] %v3423_v52  ;;  %4406 = vst [vmem:[#allocation72_spill] sm:$0xff] %v3427_v51  ;;  %vm1315_vm0 = vcmp.eq.f32.partialorder %v3307_v30, inf  ;;  %v3440_v37 = vadd.f32 %v1496_v17, %v1494_v58  ;;  %v1533_v7 = vadd.f32 %v3326_v15, %v1530_v19  ;;  %v1571_v18 = vmul.f32 %v1567_v6, %v1567_v6 }
  0xee   :  { %v2664_v21 = vpop.eup %2663  ;;  %v1316_v40 = vsel %vm1315_vm0, %v3307_v30, %v1314_v56  ;;  %v3444_v50 = vadd.f32 %v1644_v43, %v1643_v36  ;;  %v2172_v44 = vsub.f32 %v3241_v53, %v3245_v14  ;;  %v2209_v24 = vsub.f32 %v3241_v53, %v3255_v31 }
  0xef   :  { %v1318_v51 = vand.u32 2147483648, %v3307_v30  ;;  %v1608_v52 = vmul.f32 %v1604_v12, %v1604_v12  ;;  %v2250_v17 = vsub.f32 %v3243_v29, %v3245_v14  ;;  %v2287_v56 = vsub.f32 %v3243_v29, %v3255_v31  ;;  %v230_v12 = vld [vmem:[%s4301_s1 + $0x10] sm:$0xff] }
  0xf0   :  { %v2666_v39 = vpop.eup %2665  ;;  %vm1317_vm1 = vcmp.eq.f32.partialorder %v3307_v30, 0.0  ;;  %2669 = vrsqrt.f32 %v3431_v41  ;;  %v2328_v19 = vsub.f32 %v3245_v14, %v3255_v31  ;;  %v1351_v58 = vmul.f32 %v2664_v21, %v3345_v54 }
  0xf1   :  { %v1319_v15 = vsel %vm1317_vm1, %v1318_v51, %v1316_v40  ;;  %2671 = vrsqrt.f32 %v3440_v37  ;;  %v3461_v6 = vmul.f32 %v2057_v55, %v2057_v55  ;;  %v3463_v43 = vmul.f32 %v2094_v2, %v2094_v2 }
  0xf2   :  { %v3469_v30 = vadd.f32 %v1533_v7, %v3362_v4  ;;  %v1574_v36 = vadd.f32 %v3349_v27, %v1571_v18  ;;  %v3472_v29 = vmul.f32 %v2135_v0, %v2135_v0  ;;  %v3474_v51 = vmul.f32 %v2172_v44, %v2172_v44 }
  0xf3   :  { %v1388_v21 = vmul.f32 %v2666_v39, %v3364_v59  ;;  %v1611_v55 = vadd.f32 %v3373_v16, %v1608_v52  ;;  %v2668_v40 = vpop.eup %2667  ;;  %v3478_v2 = vmul.f32 %v2209_v24, %v2209_v24  ;;  %v3480_v31 = vmul.f32 %v2250_v17, %v2250_v17 }
  0xf4   :  { %4407 = vst [vmem:[#allocation73_spill] sm:$0xff] %v3474_v51  ;;  %v1320_v14 = vrot.slane %v1319_v15, 4  ;;  %vm1352_vm2 = vcmp.eq.f32.partialorder %v3345_v54, inf  ;;  %v3483_v4 = vmul.f32 %v2287_v56, %v2287_v56  ;;  %v3485_v7 = vmul.f32 %v2328_v19, %v2328_v19 }
  0xf5   :  { %4408 = vst [vmem:[#allocation74_spill] sm:$0xff] %v3478_v2  ;;  %4409 = vst [vmem:[#allocation75_spill] sm:$0xff] %v3480_v31  ;;  %v234_v27 = vsub.f32 %v3208_v22, %v230_v12  ;;  %v1353_v0 = vsel %vm1352_vm2, %v3345_v54, %v1351_v58  ;;  %v1355_v39 = vand.u32 2147483648, %v3345_v54  ;;  %vm1389_vm3 = vcmp.eq.f32.partialorder %v3364_v59, inf }
  0xf6   :  { %4410 = vst [vmem:[#allocation76_spill] sm:$0xff] %v3483_v4  ;;  %4411 = vst [vmem:[#allocation77_spill] sm:$0xff] %v3485_v7  ;;  %2673 = vrsqrt.f32 %v3469_v30  ;;  %v3493_v24 = vadd.f32 %v1574_v36, %v3367_v1  ;;  %vm1354_vm4 = vcmp.eq.f32.partialorder %v3345_v54, 0.0  ;;  %v1390_v16 = vsel %vm1389_vm3, %v3364_v59, %v1388_v21 }
  0xf7   :  { %v1425_v52 = vmul.f32 %v2668_v40, %v3391_v38  ;;  %v3499_v18 = vadd.f32 %v1611_v55, %v3369_v13  ;;  %v3502_v44 = vsub.f32 %v3211_v23, %v230_v12  ;;  %v1321_v17 = vadd.f32 %v1320_v14, %v1319_v15 }
  0xf8   :  { %v1356_v56 = vsel %vm1354_vm4, %v1355_v39, %v1353_v0  ;;  %v1392_v19 = vand.u32 2147483648, %v3364_v59  ;;  %v3506_v58 = vsub.f32 %v3249_v11, %v230_v12  ;;  %v3509_v1 = vsub.f32 %v3264_v5, %v230_v12 }
  0xf9   :  { %vm1391_vm5 = vcmp.eq.f32.partialorder %v3364_v59, 0.0  ;;  %v1641_v54 = vsub.f32 %v3211_v23, %v3289_v57  ;;  %v3515_v36 = vsub.f32 %v3289_v57, %v230_v12  ;;  %vm1426_vm6 = vcmp.eq.f32.partialorder %v3391_v38, inf }
  0xfa   :  { %v2670_v13 = vpop.eup %2669  ;;  %v1393_v21 = vsel %vm1391_vm5, %v1392_v19, %v1390_v16  ;;  %2675 = vrsqrt.f32 %v3493_v24  ;;  %v3520_v15 = vsub.f32 %v3324_v35, %v230_v12  ;;  %v1357_v55 = vrot.slane %v1356_v56, 4 }
  0xfb   :  { %v2672_v14 = vpop.eup %2671  ;;  %v1427_v40 = vsel %vm1426_vm6, %v3391_v38, %v1425_v52  ;;  %2677 = vrsqrt.f32 %v3499_v18  ;;  %v3524_v59 = vmul.f32 %v234_v27, %v234_v27  ;;  %v1322_v0 = vrot.slane %v1321_v17, 2 }
  0xfc   :  { %4412 = vst [vmem:[#allocation78_spill] sm:$0xff] %v3520_v15  ;;  %vm1428_vm7 = vcmp.eq.f32.partialorder %v3391_v38, 0.0  ;;  %v1429_v39 = vand.u32 2147483648, %v3391_v38  ;;  %v1394_v16 = vrot.slane %v1393_v21, 4  ;;  %vm1463_vm8 = vcmp.eq.f32.partialorder %v3431_v41, inf }
  0xfd   :  { %v1645_v19 = vmul.f32 %v1641_v54, %v1641_v54  ;;  %v1681_v12 = vmul.f32 %v3115_v3, %v3115_v3  ;;  %v1462_v15 = vmul.f32 %v2670_v13, %v3431_v41  ;;  %vm1465_vm9 = vcmp.eq.f32.partialorder %v3431_v41, 0.0 }
  0xfe   :  { %v1430_v7 = vsel %vm1428_vm7, %v1429_v39, %v1427_v40  ;;  %v1499_v27 = vmul.f32 %v2672_v14, %v3440_v37  ;;  %v1358_v52 = vadd.f32 %v1357_v55, %v1356_v56  ;;  %v1466_v4 = vand.u32 2147483648, %v3431_v41 }
  0xff   :  { %vm1500_vm10 = vcmp.eq.f32.partialorder %v3440_v37, inf  ;;  %v1680_v38 = vmul.f32 %v3003_v45, %v3003_v45  ;;  %v1323_v54 = vadd.f32 %v1322_v0, %v1321_v17  ;;  %vm1502_vm11 = vcmp.eq.f32.partialorder %v3440_v37, 0.0 }
 0x100   :  { %v2674_v31 = vpop.eup %2673  ;;  %v1503_v3 = vand.u32 2147483648, %v3440_v37  ;;  %vm1537_vm12 = vcmp.eq.f32.partialorder %v3469_v30, inf  ;;  %v1395_v13 = vadd.f32 %v1394_v16, %v1393_v21  ;;  %v1431_v40 = vrot.slane %v1430_v7, 4 }
 0x101   :  { %vm1539_vm13 = vcmp.eq.f32.partialorder %v3469_v30, 0.0  ;;  %v1648_v56 = vadd.f32 %v3444_v50, %v1645_v19  ;;  %v1684_v14 = vadd.f32 %v1681_v12, %v1680_v38  ;;  %v1464_v55 = vsel %vm1463_vm8, %v3431_v41, %v1462_v15 }
 0x102   :  { %v1501_v45 = vsel %vm1500_vm10, %v3440_v37, %v1499_v27  ;;  %v1717_v17 = vmul.f32 %v3007_v46, %v3007_v46  ;;  %v1718_v0 = vmul.f32 %v3118_v8, %v3118_v8  ;;  %v1359_v39 = vrot.slane %v1358_v52, 2 }
 0x103   :  { %v1536_v21 = vmul.f32 %v2674_v31, %v3469_v30  ;;  %v1540_v16 = vand.u32 2147483648, %v3469_v30  ;;  %vm1578_vm14 = vcmp.eq.f32.partialorder %v3493_v24, inf  ;;  %v1324_v19 = vrot.slane %v1323_v54, 1 }
 0x104   :  { %v2676_v50 = vpop.eup %2675  ;;  %v1721_v12 = vadd.f32 %v1718_v0, %v1717_v17  ;;  %v1754_v15 = vmul.f32 %v3011_v47, %v3011_v47  ;;  %v1755_v27 = vmul.f32 %v3121_v9, %v3121_v9  ;;  %v1432_v38 = vadd.f32 %v1431_v40, %v1430_v7 }
 0x105   :  { %v2678_v46 = vpop.eup %2677  ;;  %v1467_v8 = vsel %vm1465_vm9, %v1466_v4, %v1464_v55  ;;  %v1504_v31 = vsel %vm1502_vm11, %v1503_v3, %v1501_v45  ;;  %vm1580_vm15 = vcmp.eq.f32.partialorder %v3493_v24, 0.0  ;;  %v3564_v53 = vadd.f32 %v1648_v56, %v3386_v26 }
 0x106   :  { %v1396_v17 = vrot.slane %v1395_v13, 2  ;;  %v1581_v0 = vand.u32 2147483648, %v3493_v24  ;;  %v1678_v47 = vsub.f32 %v3211_v23, %v3324_v35  ;;  %v1758_v9 = vadd.f32 %v1755_v27, %v1754_v15 }
 0x107   :  { %v1360_v2 = vadd.f32 %v1359_v39, %v1358_v52  ;;  %v1538_v41 = vsel %vm1537_vm12, %v3469_v30, %v1536_v21  ;;  %v1577_v37 = vmul.f32 %v2676_v50, %v3493_v24  ;;  %v1715_v4 = vsub.f32 %v3211_v23, %v3331_v25 }
 0x108   :  { %v1325_v7 = vadd.f32 %v1324_v19, %v1323_v54  ;;  %v1468_v26 = vrot.slane %v1467_v8, 4  ;;  %v1505_v3 = vrot.slane %v1504_v31, 4  ;;  %v1614_v40 = vmul.f32 %v2678_v46, %v3499_v18 }
 0x109   :  { %v1433_v56 = vrot.slane %v1432_v38, 2  ;;  %2679 = vrsqrt.f32 %v3564_v53  ;;  %v1795_v52 = vmul.f32 %v3015_v48, %v3015_v48  ;;  %v1796_v55 = vmul.f32 %v3125_v10, %v3125_v10 }
 0x10a   :  { %v1397_v45 = vadd.f32 %v1396_v17, %v1395_v13  ;;  %v1541_v39 = vsel %vm1539_vm13, %v1540_v16, %v1538_v41  ;;  %vm1615_vm0 = vcmp.eq.f32.partialorder %v3499_v18, inf  ;;  %v1682_v54 = vmul.f32 %v1678_v47, %v1678_v47  ;;  %v4413_v41 = vld [vmem:[#allocation19_spill] sm:$0xff] }
 0x10b   :  { %v1579_v21 = vsel %vm1578_vm14, %v3493_v24, %v1577_v37  ;;  %v1719_v50 = vmul.f32 %v1715_v4, %v1715_v4  ;;  %v1752_v19 = vsub.f32 %v3211_v23, %v3356_v32  ;;  %v3589_v15 = vadd.f32 %v1796_v55, %v1795_v52  ;;  %v4414_v4 = vld [vmem:[#allocation39_spill] sm:$0xff]  ;;  %v4415_v55 = vld [vmem:[#allocation40_spill] sm:$0xff]  ;;  %v4418_v23 = vld [vmem:[#allocation41_spill] sm:$0xff] }
 0x10c   :  { %v1361_v48 = vrot.slane %v1360_v2, 1  ;;  %v1469_v27 = vadd.f32 %v1468_v26, %v1467_v8  ;;  %v1506_v10 = vadd.f32 %v1505_v3, %v1504_v31  ;;  %v1616_v13 = vsel %vm1615_vm0, %v3499_v18, %v1614_v40 }
 0x10d   :  { %v1434_v30 = vadd.f32 %v1433_v56, %v1432_v38  ;;  %v1542_v16 = vrot.slane %v1541_v39, 4  ;;  %vm1617_vm1 = vcmp.eq.f32.partialorder %v3499_v18, 0.0  ;;  %v1618_v46 = vand.u32 2147483648, %v3499_v18 }
 0x10e   :  { %v1582_v17 = vsel %vm1580_vm15, %v1581_v0, %v1579_v21  ;;  %v1685_v47 = vadd.f32 %v1684_v14, %v1682_v54  ;;  %v1832_v37 = vmul.f32 %v4413_v41, %v4413_v41  ;;  %v1833_v52 = vmul.f32 %v4414_v4, %v4414_v4  ;;  %v4416_v54 = vld [vmem:[#allocation20_spill] sm:$0xff] }
 0x10f   :  { %v1398_v8 = vrot.slane %v1397_v45, 1  ;;  %v1619_v31 = vsel %vm1617_vm1, %v1618_v46, %v1616_v13  ;;  %v1722_v26 = vadd.f32 %v1721_v12, %v1719_v50  ;;  %v1756_v3 = vmul.f32 %v1752_v19, %v1752_v19 }
 0x110   :  { %v1470_v38 = vrot.slane %v1469_v27, 2  ;;  %v1507_v40 = vrot.slane %v1506_v10, 2  ;;  %v3600_v56 = vadd.f32 %v1833_v52, %v1832_v37  ;;  %v1870_v18 = vmul.f32 %v4415_v55, %v4415_v55  ;;  %v4417_v55 = vld [vmem:[#allocation21_spill] sm:$0xff] }
 0x111   :  { %v1435_v24 = vrot.slane %v1434_v30, 1  ;;  %v1543_v0 = vadd.f32 %v1542_v16, %v1541_v39  ;;  %v1583_v14 = vrot.slane %v1582_v17, 4  ;;  %v1869_v21 = vmul.f32 %v4416_v54, %v4416_v54 }
 0x112   :  { %v270_v41 = vmul.f32 %v3502_v44, %v3502_v44  ;;  %v1326_v4 = vmul.f32 0.125, %v1325_v7  ;;  %v1620_v13 = vrot.slane %v1619_v31, 4  ;;  %v3609_v12 = vadd.f32 %v1685_v47, %v3388_v28 }
 0x113   :  { %v2680_v50 = vpop.eup %2679  ;;  %v1362_v19 = vadd.f32 %v1361_v48, %v1360_v2  ;;  %v3612_v46 = vadd.f32 %v1722_v26, %v3393_v60  ;;  %v1759_v37 = vadd.f32 %v1758_v9, %v1756_v3  ;;  %v3614_v52 = vadd.f32 %v1870_v18, %v1869_v21 }
 0x114   :  { %v1471_v39 = vadd.f32 %v1470_v38, %v1469_v27  ;;  %v1508_v16 = vadd.f32 %v1507_v40, %v1506_v10  ;;  %v1906_v54 = vmul.f32 %v4417_v55, %v4417_v55  ;;  %v1907_v44 = vmul.f32 %v4418_v23, %v4418_v23 }
 0x115   :  { %v1399_v7 = vadd.f32 %v1398_v8, %v1397_v45  ;;  %v1436_v22 = vadd.f32 %v1435_v24, %v1434_v30  ;;  %v1544_v28 = vrot.slane %v1543_v0, 2  ;;  %v1584_v47 = vadd.f32 %v1583_v14, %v1582_v17 }
 0x116   :  { %v1621_v51 = vadd.f32 %v1620_v13, %v1619_v31  ;;  %v1651_v2 = vmul.f32 %v2680_v50, %v3564_v53  ;;  %2681 = vrsqrt.f32 %v3609_v12  ;;  %v3622_v60 = vadd.f32 %v1907_v44, %v1906_v54 }
 0x117   :  { %v274_v9 = vmul.f32 %v3506_v58, %v3506_v58  ;;  %2683 = vrsqrt.f32 %v3612_v46  ;;  %v3628_v48 = vadd.f32 %v1759_v37, %v3401_v63  ;;  %v1793_v23 = vsub.f32 %v3249_v11, %v3264_v5 }
 0x118   :  { %v3634_v45 = vmul.f32 %v3509_v1, %v3509_v1  ;;  %v1363_v27 = vmul.f32 0.125, %v1362_v19  ;;  %v1472_v10 = vrot.slane %v1471_v39, 1  ;;  %v1509_v30 = vrot.slane %v1508_v16, 1  ;;  %v4419_v1 = vld [vmem:[#allocation42_spill] sm:$0xff] }
 0x119   :  { %v1327_v17 = vmul.f32 -0.1, %v1326_v4  ;;  %v1545_v8 = vadd.f32 %v1544_v28, %v1543_v0  ;;  %v1585_v31 = vrot.slane %v1584_v47, 2  ;;  %vm1652_vm2 = vcmp.eq.f32.partialorder %v3564_v53, inf }
 0x11a   :  { %v1400_v58 = vmul.f32 0.125, %v1399_v7  ;;  %v1437_v26 = vmul.f32 0.125, %v1436_v22  ;;  %v1622_v3 = vrot.slane %v1621_v51, 2  ;;  %v1653_v63 = vsel %vm1652_vm2, %v3564_v53, %v1651_v2  ;;  %v4420_v22 = vld [vmem:[#allocation22_spill] sm:$0xff] }
 0x11b   :  { %v1655_v38 = vand.u32 2147483648, %v3564_v53  ;;  %2685 = vrsqrt.f32 %v3628_v48  ;;  %v1797_v40 = vmul.f32 %v1793_v23, %v1793_v23  ;;  %v1944_v18 = vmul.f32 %v4419_v1, %v4419_v1  ;;  %v4421_v1 = vld [vmem:[#allocation43_spill] sm:$0xff] }
 0x11c   :  { %v1364_v24 = vmul.f32 -0.1, %v1363_v27  ;;  %v1473_v14 = vadd.f32 %v1472_v10, %v1471_v39  ;;  %v1510_v21 = vadd.f32 %v1509_v30, %v1508_v16  ;;  %vm1654_vm3 = vcmp.eq.f32.partialorder %v3564_v53, 0.0 }
 0x11d   :  { %v1546_v0 = vrot.slane %v1545_v8, 1  ;;  %v1586_v4 = vadd.f32 %v1585_v31, %v1584_v47  ;;  %v1656_v13 = vsel %vm1654_vm3, %v1655_v38, %v1653_v63  ;;  %v1943_v50 = vmul.f32 %v4420_v22, %v4420_v22 }
 0x11e   :  { %v3647_v19 = vmul.f32 %v3515_v36, %v3515_v36  ;;  %v1401_v37 = vmul.f32 -0.1, %v1400_v58  ;;  %v1623_v55 = vadd.f32 %v1622_v3, %v1621_v51  ;;  %v1830_v54 = vsub.f32 %v3249_v11, %v3289_v57 }
 0x11f   :  { %v3653_v39 = vadd.f32 %v3213_v33, %v3524_v59  ;;  %v1438_v53 = vmul.f32 -0.1, %v1437_v26  ;;  %v1800_v16 = vadd.f32 %v3589_v15, %v1797_v40  ;;  %v3656_v44 = vadd.f32 %v1944_v18, %v1943_v50 }
 0x120   :  { %v2682_v7 = vpop.eup %2681  ;;  %v3659_v28 = vadd.f32 %v3215_v62, %v270_v41  ;;  %2687 = vtanh.f32 %v1327_v17  ;;  %v1474_v36 = vmul.f32 0.125, %v1473_v14  ;;  %v1657_v47 = vrot.slane %v1656_v13, 4 }
 0x121   :  { %v2684_v51 = vpop.eup %2683  ;;  %2689 = vtanh.f32 %v1364_v24  ;;  %v1511_v2 = vmul.f32 0.125, %v1510_v21  ;;  %v1547_v23 = vadd.f32 %v1546_v0, %v1545_v8  ;;  %v1587_v27 = vrot.slane %v1586_v4, 1 }
 0x122   :  { %v3662_v33 = vadd.f32 %v3219_v49, %v274_v9  ;;  %2691 = vtanh.f32 %v1401_v37  ;;  %v1624_v59 = vrot.slane %v1623_v55, 1  ;;  %v1834_v15 = vmul.f32 %v1830_v54, %v1830_v54 }
 0x123   :  { %2693 = vtanh.f32 %v1438_v53  ;;  %v1688_v10 = vmul.f32 %v2682_v7, %v3609_v12  ;;  %v3666_v62 = vadd.f32 %v1800_v16, %v3403_v42  ;;  %v1867_v41 = vsub.f32 %v3249_v11, %v3324_v35 }
 0x124   :  { %v1475_v30 = vmul.f32 -0.1, %v1474_v36  ;;  %v1658_v17 = vadd.f32 %v1657_v47, %v1656_v13  ;;  %v1725_v8 = vmul.f32 %v2684_v51, %v3612_v46  ;;  %v1904_v49 = vsub.f32 %v3249_v11, %v3331_v25 }
 0x125   :  { %v2686_v9 = vpop.eup %2685  ;;  %v1512_v31 = vmul.f32 -0.1, %v1511_v2  ;;  %v1548_v58 = vmul.f32 0.125, %v1547_v23  ;;  %v1588_v26 = vadd.f32 %v1587_v27, %v1586_v4  ;;  %vm1689_vm4 = vcmp.eq.f32.partialorder %v3609_v12, inf }
 0x126   :  { %v1625_v3 = vadd.f32 %v1624_v59, %v1623_v55  ;;  %v1692_v42 = vand.u32 2147483648, %v3609_v12  ;;  %vm1726_vm5 = vcmp.eq.f32.partialorder %v3612_v46, inf  ;;  %v1837_v63 = vadd.f32 %v3600_v56, %v1834_v15  ;;  %v4422_v56 = vld [vmem:[#allocation23_spill] sm:$0xff]  ;;  %v4423_v59 = vld [vmem:[#allocation24_spill] sm:$0xff] }
 0x127   :  { %v1690_v38 = vsel %vm1689_vm4, %v3609_v12, %v1688_v10  ;;  %2695 = vrsqrt.f32 %v3666_v62  ;;  %v1871_v40 = vmul.f32 %v1867_v41, %v1867_v41  ;;  %v1985_v18 = vmul.f32 %v4421_v1, %v4421_v1  ;;  %v4424_v15 = vld [vmem:[#allocation44_spill] sm:$0xff] }
 0x128   :  { %v1659_v24 = vrot.slane %v1658_v17, 2  ;;  %v1727_v14 = vsel %vm1726_vm5, %v3612_v46, %v1725_v8  ;;  %v1762_v21 = vmul.f32 %v2686_v9, %v3628_v48  ;;  %v1908_v0 = vmul.f32 %v1904_v49, %v1904_v49 }
 0x129   :  { %v1589_v4 = vmul.f32 0.125, %v1588_v26  ;;  %vm1691_vm6 = vcmp.eq.f32.partialorder %v3609_v12, 0.0  ;;  %v1729_v13 = vand.u32 2147483648, %v3612_v46  ;;  %v1984_v22 = vmul.f32 %v4422_v56, %v4422_v56 }
 0x12a   :  { %v3687_v50 = vpop.eup %2687  ;;  %v1693_v37 = vsel %vm1691_vm6, %v1692_v42, %v1690_v38  ;;  %vm1728_vm7 = vcmp.eq.f32.partialorder %v3612_v46, 0.0  ;;  %vm1763_vm8 = vcmp.eq.f32.partialorder %v3628_v48, inf  ;;  %v3692_v55 = vadd.f32 %v1837_v63, %v3408_v34 }
 0x12b   :  { %v3694_v54 = vpop.eup %2689  ;;  %v1730_v53 = vsel %vm1728_vm7, %v1729_v13, %v1727_v14  ;;  %v1874_v12 = vadd.f32 %v3614_v52, %v1871_v40  ;;  %v1941_v16 = vsub.f32 %v3249_v11, %v3356_v32  ;;  %v1988_v7 = vadd.f32 %v1985_v18, %v1984_v22  ;;  %v4425_v14 = vld [vmem:[#allocation25_spill] sm:$0xff] }
 0x12c   :  { %v3699_v36 = vpop.eup %2691  ;;  %v1626_v47 = vmul.f32 0.125, %v1625_v3  ;;  %v1660_v51 = vadd.f32 %v1659_v24, %v1658_v17  ;;  %v1764_v46 = vsel %vm1763_vm8, %v3628_v48, %v1762_v21  ;;  %v1911_v2 = vadd.f32 %v3622_v60, %v1908_v0  ;;  %v4426_v21 = vld [vmem:[#allocation45_spill] sm:$0xff] }
 0x12d   :  { %v3703_v23 = vpop.eup %2693  ;;  %v1694_v34 = vrot.slane %v1693_v37, 4  ;;  %v1766_v27 = vand.u32 2147483648, %v3628_v48  ;;  %v2021_v52 = vmul.f32 %v4423_v59, %v4423_v59  ;;  %v2022_v10 = vmul.f32 %v4424_v15, %v4424_v15  ;;  %v4430_v15 = vld [vmem:[#allocation46_spill] sm:$0xff] }
 0x12e   :  { %v1731_v41 = vrot.slane %v1730_v53, 4  ;;  %vm1765_vm9 = vcmp.eq.f32.partialorder %v3628_v48, 0.0  ;;  %2697 = vrsqrt.f32 %v3692_v55  ;;  %v1982_v17 = vsub.f32 %v3264_v5, %v3289_v57 }
 0x12f   :  { %v1767_v60 = vsel %vm1765_vm9, %v1766_v27, %v1764_v46  ;;  %v3715_v8 = vadd.f32 %v1874_v12, %v3410_v61  ;;  %v1945_v49 = vmul.f32 %v1941_v16, %v1941_v16  ;;  %v2025_v9 = vadd.f32 %v2022_v10, %v2021_v52  ;;  %v4428_v16 = vld [vmem:[#allocation70_spill] sm:$0xff] }
 0x130   :  { %2699 = vtanh.f32 %v1475_v30  ;;  %v1661_v26 = vrot.slane %v1660_v51, 1  ;;  %v3718_v3 = vadd.f32 %v1911_v2, %v3419_v20  ;;  %v2019_v42 = vsub.f32 %v3264_v5, %v3324_v35 }
 0x131   :  { %v2696_v48 = vpop.eup %2695  ;;  %2701 = vtanh.f32 %v1512_v31  ;;  %v1549_v63 = vmul.f32 -0.1, %v1548_v58  ;;  %v1590_v38 = vmul.f32 -0.1, %v1589_v4  ;;  %v1695_v40 = vadd.f32 %v1694_v34, %v1693_v37  ;;  %v4427_v4 = vld [vmem:[#allocation66_spill] sm:$0xff] }
 0x132   :  { %v1627_v1 = vmul.f32 -0.1, %v1626_v47  ;;  %v1732_v18 = vadd.f32 %v1731_v41, %v1730_v53  ;;  %v1768_v24 = vrot.slane %v1767_v60, 4  ;;  %v1986_v61 = vmul.f32 %v1982_v17, %v1982_v17 }
 0x133   :  { %2703 = vrsqrt.f32 %v3715_v8  ;;  %v1948_v30 = vadd.f32 %v3656_v44, %v1945_v49  ;;  %v2058_v20 = vmul.f32 %v4425_v14, %v4425_v14  ;;  %v2059_v0 = vmul.f32 %v4426_v21, %v4426_v21  ;;  %v4431_v49 = vld [vmem:[#allocation71_spill] sm:$0xff] }
 0x134   :  { %v1662_v13 = vadd.f32 %v1661_v26, %v1660_v51  ;;  %v1803_v31 = vmul.f32 %v2696_v48, %v3666_v62  ;;  %2705 = vrsqrt.f32 %v3718_v3  ;;  %v2023_v58 = vmul.f32 %v2019_v42, %v2019_v42 }
 0x135   :  { %v3732_v56 = vadd.f32 %v3653_v39, %v4427_v4  ;;  %2707 = vtanh.f32 %v1549_v63  ;;  %v1696_v22 = vrot.slane %v1695_v40, 2  ;;  %v2062_v37 = vadd.f32 %v2059_v0, %v2058_v20 }
 0x136   :  { %2709 = vtanh.f32 %v1590_v38  ;;  %v1733_v44 = vrot.slane %v1732_v18, 2  ;;  %v1769_v53 = vadd.f32 %v1768_v24, %v1767_v60  ;;  %v1989_v12 = vadd.f32 %v1988_v7, %v1986_v61  ;;  %v4429_v7 = vld [vmem:[#allocation26_spill] sm:$0xff]  ;;  %v4433_v38 = vld [vmem:[#allocation47_spill] sm:$0xff] }
 0x137   :  { %2711 = vtanh.f32 %v1627_v1  ;;  %vm1804_vm10 = vcmp.eq.f32.partialorder %v3666_v62, inf  ;;  %vm1806_vm11 = vcmp.eq.f32.partialorder %v3666_v62, 0.0  ;;  %v3737_v47 = vadd.f32 %v1948_v30, %v4428_v16  ;;  %v4435_v61 = vld [vmem:[#allocation27_spill] sm:$0xff] }
 0x138   :  { %v2698_v51 = vpop.eup %2697  ;;  %v1663_v46 = vmul.f32 0.125, %v1662_v13  ;;  %v1805_v39 = vsel %vm1804_vm10, %v3666_v62, %v1803_v31  ;;  %v1807_v2 = vand.u32 2147483648, %v3666_v62  ;;  %v2026_v34 = vadd.f32 %v2025_v9, %v2023_v58 }
 0x139   :  { %v1697_v27 = vadd.f32 %v1696_v22, %v1695_v40  ;;  %v2056_v59 = vsub.f32 %v3264_v5, %v3331_v25  ;;  %v2095_v52 = vmul.f32 %v4429_v7, %v4429_v7  ;;  %v2096_v10 = vmul.f32 %v4430_v15, %v4430_v15 }
 0x13a   :  { %v3747_v41 = vpop.eup %2699  ;;  %v1734_v17 = vadd.f32 %v1733_v44, %v1732_v18  ;;  %v1770_v60 = vrot.slane %v1769_v53, 2  ;;  %v3750_v26 = vadd.f32 %v1989_v12, %v4431_v49  ;;  %v2093_v9 = vsub.f32 %v3264_v5, %v3356_v32  ;;  %v4434_v18 = vld [vmem:[#allocation72_spill] sm:$0xff] }
 0x13b   :  { %v3754_v42 = vpop.eup %2701  ;;  %v1808_v48 = vsel %vm1806_vm11, %v1807_v2, %v1805_v39  ;;  %2713 = vrsqrt.f32 %v3737_v47  ;;  %v2099_v63 = vadd.f32 %v2096_v10, %v2095_v52  ;;  %v2137_v40 = vmul.f32 %v4433_v38, %v4433_v38  ;;  %v4438_v2 = vld [vmem:[#allocation48_spill] sm:$0xff] }
 0x13c   :  { %4432 = vst [vmem:[#allocation19_spill] sm:$0xff] %v3754_v42  ;;  %v1840_v1 = vmul.f32 %v2698_v51, %v3692_v55  ;;  %vm1841_vm12 = vcmp.eq.f32.partialorder %v3692_v55, inf  ;;  %v3764_v24 = vadd.f32 %v2026_v34, %v4434_v18  ;;  %v2136_v30 = vmul.f32 %v4435_v61, %v4435_v61  ;;  %v4440_v52 = vld [vmem:[#allocation28_spill] sm:$0xff] }
 0x13d   :  { %v2704_v14 = vpop.eup %2703  ;;  %v1698_v20 = vrot.slane %v1697_v27, 1  ;;  %vm1843_vm13 = vcmp.eq.f32.partialorder %v3692_v55, 0.0  ;;  %v1844_v62 = vand.u32 2147483648, %v3692_v55  ;;  %v2060_v21 = vmul.f32 %v2056_v59, %v2056_v59 }
 0x13e   :  { %v2706_v0 = vpop.eup %2705  ;;  %v1809_v13 = vrot.slane %v1808_v48, 4  ;;  %2715 = vrsqrt.f32 %v3750_v26  ;;  %v2097_v31 = vmul.f32 %v2093_v9, %v2093_v9  ;;  %v2140_v58 = vadd.f32 %v2137_v40, %v2136_v30 }
 0x13f   :  { %v3771_v4 = vpop.eup %2707  ;;  %v1664_v22 = vmul.f32 -0.1, %v1663_v46  ;;  %v1735_v44 = vrot.slane %v1734_v17, 1  ;;  %v1771_v12 = vadd.f32 %v1770_v60, %v1769_v53  ;;  %vm1878_vm14 = vcmp.eq.f32.partialorder %v3715_v8, inf }
 0x140   :  { %4436 = vst [vmem:[#allocation39_spill] sm:$0xff] %v3771_v4  ;;  %v3774_v16 = vpop.eup %2709  ;;  %v1842_v51 = vsel %vm1841_vm12, %v3692_v55, %v1840_v1  ;;  %v1877_v39 = vmul.f32 %v2704_v14, %v3715_v8  ;;  %2717 = vrsqrt.f32 %v3764_v24  ;;  %v2174_v34 = vmul.f32 %v4438_v2, %v4438_v2 }
 0x141   :  { %4437 = vst [vmem:[#allocation40_spill] sm:$0xff] %v3774_v16  ;;  %v3783_v59 = vpop.eup %2711  ;;  %v1914_v46 = vmul.f32 %v2706_v0, %v3718_v3  ;;  %v2063_v53 = vadd.f32 %v2062_v37, %v2060_v21  ;;  %v2134_v7 = vsub.f32 %v3289_v57, %v3324_v35  ;;  %v2173_v15 = vmul.f32 %v4440_v52, %v4440_v52  ;;  %v4441_v21 = vld [vmem:[#allocation29_spill] sm:$0xff] }
 0x142   :  { %4439 = vst [vmem:[#allocation20_spill] sm:$0xff] %v3783_v59  ;;  %v1699_v10 = vadd.f32 %v1698_v20, %v1697_v27  ;;  %v1810_v60 = vadd.f32 %v1809_v13, %v1808_v48  ;;  %vm1880_vm15 = vcmp.eq.f32.partialorder %v3715_v8, 0.0  ;;  %v2100_v49 = vadd.f32 %v2099_v63, %v2097_v31  ;;  %v4442_v13 = vld [vmem:[#allocation49_spill] sm:$0xff] }
 0x143   :  { %2719 = vtanh.f32 %v1664_v22  ;;  %v1736_v9 = vadd.f32 %v1735_v44, %v1734_v17  ;;  %v1881_v38 = vand.u32 2147483648, %v3715_v8  ;;  %v3792_v40 = vadd.f32 %v2174_v34, %v2173_v15  ;;  %v4443_v34 = vld [vmem:[#allocation50_spill] sm:$0xff] }
 0x144   :  { %v1772_v1 = vrot.slane %v1771_v12, 1  ;;  %v1845_v37 = vsel %vm1843_vm13, %v1844_v62, %v1842_v51  ;;  %vm1915_vm0 = vcmp.eq.f32.partialorder %v3718_v3, inf  ;;  %vm1917_vm1 = vcmp.eq.f32.partialorder %v3718_v3, 0.0 }
 0x145   :  { %v2714_v18 = vpop.eup %2713  ;;  %v1879_v27 = vsel %vm1878_vm14, %v3715_v8, %v1877_v39  ;;  %v1916_v48 = vsel %vm1915_vm0, %v3718_v3, %v1914_v46  ;;  %v3803_v17 = vadd.f32 %v2063_v53, %v3461_v6  ;;  %v2138_v63 = vmul.f32 %v2134_v7, %v2134_v7 }
 0x146   :  { %v1700_v61 = vmul.f32 0.125, %v1699_v10  ;;  %v1811_v30 = vrot.slane %v1810_v60, 2  ;;  %v1918_v55 = vand.u32 2147483648, %v3718_v3  ;;  %v3807_v14 = vadd.f32 %v2100_v49, %v3463_v43  ;;  %v4444_v10 = vld [vmem:[#allocation30_spill] sm:$0xff] }
 0x147   :  { %v1737_v20 = vmul.f32 0.125, %v1736_v9  ;;  %v1846_v62 = vrot.slane %v1845_v37, 4  ;;  %v2210_v0 = vmul.f32 %v4441_v21, %v4441_v21  ;;  %v2211_v31 = vmul.f32 %v4442_v13, %v4442_v13 }
 0x148   :  { %v2716_v22 = vpop.eup %2715  ;;  %v1773_v44 = vadd.f32 %v1772_v1, %v1771_v12  ;;  %v1882_v6 = vsel %vm1880_vm15, %v1881_v38, %v1879_v27  ;;  %v1919_v51 = vsel %vm1917_vm1, %v1918_v55, %v1916_v48  ;;  %v1951_v39 = vmul.f32 %v2714_v18, %v3737_v47 }
 0x149   :  { %2721 = vrsqrt.f32 %v3803_v17  ;;  %v2141_v43 = vadd.f32 %v2140_v58, %v2138_v63  ;;  %v3819_v2 = vadd.f32 %v2211_v31, %v2210_v0  ;;  %v2252_v46 = vmul.f32 %v4443_v34, %v4443_v34 }
 0x14a   :  { %v2718_v53 = vpop.eup %2717  ;;  %v1701_v7 = vmul.f32 -0.1, %v1700_v61  ;;  %v1812_v52 = vadd.f32 %v1811_v30, %v1810_v60  ;;  %2723 = vrsqrt.f32 %v3807_v14  ;;  %v2171_v8 = vsub.f32 %v3289_v57, %v3331_v25 }
 0x14b   :  { %v1847_v3 = vadd.f32 %v1846_v62, %v1845_v37  ;;  %v1883_v12 = vrot.slane %v1882_v6, 4  ;;  %v1992_v15 = vmul.f32 %v2716_v22, %v3750_v26  ;;  %v2251_v58 = vmul.f32 %v4444_v10, %v4444_v10 }
 0x14c   :  { %v1738_v49 = vmul.f32 -0.1, %v1737_v20  ;;  %v1774_v9 = vmul.f32 0.125, %v1773_v44  ;;  %v1920_v38 = vrot.slane %v1919_v51, 4  ;;  %vm1952_vm2 = vcmp.eq.f32.partialorder %v3737_v47, inf }
 0x14d   :  { %v3830_v1 = vpop.eup %2719  ;;  %v1953_v60 = vsel %vm1952_vm2, %v3737_v47, %v1951_v39  ;;  %v2029_v18 = vmul.f32 %v2718_v53, %v3764_v24  ;;  %v3835_v27 = vadd.f32 %v2141_v43, %v3472_v29  ;;  %v3837_v37 = vadd.f32 %v2252_v46, %v2251_v58  ;;  %v4446_v43 = vld [vmem:[#allocation51_spill] sm:$0xff]  ;;  %v4449_v58 = vld [vmem:[#allocation73_spill] sm:$0xff] }
 0x14e   :  { %4445 = vst [vmem:[#allocation21_spill] sm:$0xff] %v3830_v1  ;;  %v1813_v48 = vrot.slane %v1812_v52, 1  ;;  %v1955_v63 = vand.u32 2147483648, %v3737_v47  ;;  %vm1993_vm3 = vcmp.eq.f32.partialorder %v3750_v26, inf  ;;  %v2175_v61 = vmul.f32 %v2171_v8, %v2171_v8 }
 0x14f   :  { %v1848_v30 = vrot.slane %v1847_v3, 2  ;;  %v1884_v55 = vadd.f32 %v1883_v12, %v1882_v6  ;;  %vm1954_vm4 = vcmp.eq.f32.partialorder %v3737_v47, 0.0  ;;  %v1994_v20 = vsel %vm1993_vm3, %v3750_v26, %v1992_v15  ;;  %v4447_v12 = vld [vmem:[#allocation31_spill] sm:$0xff] }
 0x150   :  { %v1921_v62 = vadd.f32 %v1920_v38, %v1919_v51  ;;  %v1956_v21 = vsel %vm1954_vm4, %v1955_v63, %v1953_v60  ;;  %v1996_v0 = vand.u32 2147483648, %v3750_v26  ;;  %vm2030_vm5 = vcmp.eq.f32.partialorder %v3764_v24, inf  ;;  %v4448_v15 = vld [vmem:[#allocation67_spill] sm:$0xff] }
 0x151   :  { %vm1995_vm6 = vcmp.eq.f32.partialorder %v3750_v26, 0.0  ;;  %v2031_v29 = vsel %vm2030_vm5, %v3764_v24, %v2029_v18  ;;  %2725 = vrsqrt.f32 %v3835_v27  ;;  %v2208_v13 = vsub.f32 %v3289_v57, %v3356_v32 }
 0x152   :  { %v1814_v31 = vadd.f32 %v1813_v48, %v1812_v52  ;;  %v1997_v22 = vsel %vm1995_vm6, %v1996_v0, %v1994_v20  ;;  %v2033_v47 = vand.u32 2147483648, %v3764_v24  ;;  %v2178_v44 = vadd.f32 %v3792_v40, %v2175_v61 }
 0x153   :  { %v2722_v6 = vpop.eup %2721  ;;  %v1849_v51 = vadd.f32 %v1848_v30, %v1847_v3  ;;  %v1957_v39 = vrot.slane %v1956_v21, 4  ;;  %vm2032_vm7 = vcmp.eq.f32.partialorder %v3764_v24, 0.0  ;;  %v2289_v26 = vmul.f32 %v4446_v43, %v4446_v43  ;;  %v4453_v43 = vld [vmem:[#allocation57_spill] sm:$0xff] }
 0x154   :  { %v2724_v34 = vpop.eup %2723  ;;  %v1885_v46 = vrot.slane %v1884_v55, 2  ;;  %v1922_v53 = vrot.slane %v1921_v62, 2  ;;  %v2034_v8 = vsel %vm2032_vm7, %v2033_v47, %v2031_v29  ;;  %v2288_v52 = vmul.f32 %v4447_v12, %v4447_v12  ;;  %v4456_v12 = vld [vmem:[#allocation58_spill] sm:$0xff] }
 0x155   :  { %v3859_v10 = vadd.f32 %v3659_v28, %v4448_v15  ;;  %2727 = vtanh.f32 %v1701_v7  ;;  %v1998_v40 = vrot.slane %v1997_v22, 4  ;;  %v2212_v3 = vmul.f32 %v2208_v13, %v2208_v13  ;;  %v4451_v13 = vld [vmem:[#allocation52_spill] sm:$0xff] }
 0x156   :  { %2729 = vtanh.f32 %v1738_v49  ;;  %v2066_v24 = vmul.f32 %v2722_v6, %v3803_v17  ;;  %v3863_v38 = vadd.f32 %v2178_v44, %v4449_v58  ;;  %v3865_v60 = vadd.f32 %v2289_v26, %v2288_v52 }
 0x157   :  { %v3867_v18 = vmul.f32 -0.1, %v1774_v9  ;;  %v1958_v48 = vadd.f32 %v1957_v39, %v1956_v21  ;;  %v2035_v63 = vrot.slane %v2034_v8, 4  ;;  %v2103_v61 = vmul.f32 %v2724_v34, %v3807_v14  ;;  %v4450_v9 = vld [vmem:[#allocation32_spill] sm:$0xff]  ;;  %v4452_v39 = vld [vmem:[#allocation55_spill] sm:$0xff] }
 0x158   :  { %v1815_v30 = vmul.f32 0.125, %v1814_v31  ;;  %v1850_v28 = vrot.slane %v1849_v51, 1  ;;  %v1886_v20 = vadd.f32 %v1885_v46, %v1884_v55  ;;  %v1923_v7 = vadd.f32 %v1922_v53, %v1921_v62  ;;  %v4454_v46 = vld [vmem:[#allocation74_spill] sm:$0xff] }
 0x159   :  { %v1999_v0 = vadd.f32 %v1998_v40, %v1997_v22  ;;  %vm2067_vm8 = vcmp.eq.f32.partialorder %v3803_v17, inf  ;;  %vm2104_vm9 = vcmp.eq.f32.partialorder %v3807_v14, inf  ;;  %v2215_v49 = vadd.f32 %v3819_v2, %v2212_v3 }
 0x15a   :  { %v2068_v29 = vsel %vm2067_vm8, %v3803_v17, %v2066_v24  ;;  %2731 = vrsqrt.f32 %v3863_v38  ;;  %v2329_v21 = vmul.f32 %v4450_v9, %v4450_v9  ;;  %v2330_v31 = vmul.f32 %v4451_v13, %v4451_v13  ;;  %v4460_v13 = vld [vmem:[#allocation33_spill] sm:$0xff] }
 0x15b   :  { %v2726_v47 = vpop.eup %2725  ;;  %v1959_v55 = vrot.slane %v1958_v48, 2  ;;  %v2036_v62 = vadd.f32 %v2035_v63, %v2034_v8  ;;  %v2070_v22 = vand.u32 2147483648, %v3803_v17  ;;  %v2105_v44 = vsel %vm2104_vm9, %v3807_v14, %v2103_v61  ;;  %v4455_v8 = vld [vmem:[#allocation56_spill] sm:$0xff] }
 0x15c   :  { %vm2069_vm10 = vcmp.eq.f32.partialorder %v3803_v17, 0.0  ;;  %v2107_v2 = vand.u32 2147483648, %v3807_v14  ;;  %v3883_v6 = vadd.f32 %v2330_v31, %v2329_v21  ;;  %v2592_v26 = vpack.c.bf16 %v4453_v43, %v4452_v39  ;;  %v4459_v21 = vld [vmem:[#allocation13_spill] sm:$0xff] }
 0x15d   :  { %v2071_v34 = vsel %vm2069_vm10, %v2070_v22, %v2068_v29  ;;  %vm2106_vm11 = vcmp.eq.f32.partialorder %v3807_v14, 0.0  ;;  %v3889_v53 = vadd.f32 %v2215_v49, %v4454_v46  ;;  %v2600_v52 = vpack.c.bf16 %v4456_v12, %v4455_v8 }
 0x15e   :  { %v1816_v15 = vmul.f32 -0.1, %v1815_v30  ;;  %v2000_v40 = vrot.slane %v1999_v0, 2  ;;  %v2108_v3 = vsel %vm2106_vm11, %v2107_v2, %v2105_v44  ;;  %v2144_v17 = vmul.f32 %v2726_v47, %v3835_v27  ;;  %2593 = vmatprep.subr.bf16.mxu0 %v2592_v26  ;;  %v3902_v47 = vld [vmem:[#allocation7] sm:$0xff]  ;;  %v3908_v2 = vld [vmem:[#allocation7 + $0x8] sm:$0xff] }
 0x15f   :  { %v3894_v24 = vpop.eup %2727  ;;  %v1851_v58 = vadd.f32 %v1850_v28, %v1849_v51  ;;  %v1887_v63 = vrot.slane %v1886_v20, 1  ;;  %v1924_v61 = vrot.slane %v1923_v7, 1  ;;  %v2037_v29 = vrot.slane %v2036_v62, 2  ;;  %2601 = vmatprep.subr.bf16.mxu1 %v2600_v52  ;;  %2595 = vmatpush3.bf16.msra.mxu0 %v2592_v26  ;;  %v4461_v51 = vld [vmem:[#allocation14_spill] sm:$0xff] }
 0x160   :  { %4457 = vst [vmem:[#allocation41_spill] sm:$0xff] %v3894_v24  ;;  %v3896_v14 = vpop.eup %2729  ;;  %v1960_v49 = vadd.f32 %v1959_v55, %v1958_v48  ;;  %v2072_v9 = vrot.slane %v2071_v34, 4  ;;  %v2249_v30 = vsub.f32 %v3324_v35, %v3331_v25  ;;  %2603 = vmatpush3.bf16.msra.mxu1 %v2600_v52  ;;  %v2604_v31 = vpack.c.bf16 %v4460_v13, %v4459_v21  ;;  %v4462_v28 = vld [vmem:[#allocation34_spill] sm:$0xff]  ;;  %v4467_v13 = vld [vmem:[#allocation16_spill] sm:$0xff] }
 0x161   :  { %4458 = vst [vmem:[#allocation42_spill] sm:$0xff] %v3896_v14  ;;  %v2109_v22 = vrot.slane %v2108_v3, 4  ;;  %vm2145_vm12 = vcmp.eq.f32.partialorder %v3835_v27, inf  ;;  %2733 = vrsqrt.f32 %v3889_v53  ;;  %v2612_v44 = vpack.c.bf16 %v4462_v28, %v4461_v51  ;;  %v4468_v51 = vld [vmem:[#allocation36_spill] sm:$0xff]  ;;  %v4470_v28 = vld [vmem:[#allocation37_spill] sm:$0xff] }
 0x162   :  { %v2001_v48 = vadd.f32 %v2000_v40, %v1999_v0  ;;  %v2146_v55 = vsel %vm2145_vm12, %v3835_v27, %v2144_v17  ;;  %v2286_v39 = vsub.f32 %v3324_v35, %v3356_v32  ;;  %2605 = vmatprep.subr.bf16.mxu0 %v2604_v31  ;;  %vm412_vm13 = vcmask 261120  }
 0x163   :  { %v1888_v43 = vadd.f32 %v1887_v63, %v1886_v20  ;;  %v1925_v26 = vadd.f32 %v1924_v61, %v1923_v7  ;;  %v2038_v46 = vadd.f32 %v2037_v29, %v2036_v62  ;;  %v2148_v8 = vand.u32 2147483648, %v3835_v27  ;;  %2613 = vmatprep.subr.bf16.mxu1 %v2612_v44  ;;  %2484 = vmatprep.mubr.msk.f32.mxu0 %vm412_vm13, %v3902_v47  ;;  %v4463_v20 = vld [vmem:[#allocation59_spill] sm:$0xff]  ;;  %v3923_v62 = vld [vmem:[#allocation7 + $0x10] sm:$0xff]  ;;  %v3929_v61 = vld [vmem:[#allocation7 + $0x18] sm:$0xff] }
 0x164   :  { %v2732_v12 = vpop.eup %2731  ;;  %v2073_v52 = vadd.f32 %v2072_v9, %v2071_v34  ;;  %vm2147_vm14 = vcmp.eq.f32.partialorder %v3835_v27, 0.0  ;;  %v2253_v0 = vmul.f32 %v2249_v30, %v2249_v30  ;;  %2498 = vmatprep.mubr.msk.f32.mxu1 %vm412_vm13, %v3902_v47  ;;  %2485 = vmatmul.mubr.msk.f32.vlgmr.msra.gmra.mrb[0].mxu0 %vm412_vm13, %v3908_v2  ;;  %v2608_v7 = vpack.c.bf16 %v4463_v20, %v3249_v11  ;;  %v4464_v27 = vld [vmem:[#allocation60_spill] sm:$0xff]  ;;  %v4465_v30 = vld [vmem:[#allocation15_spill] sm:$0xff] }
 0x165   :  { %v1961_v40 = vrot.slane %v1960_v49, 1  ;;  %v2110_v17 = vadd.f32 %v2109_v22, %v2108_v3  ;;  %v2149_v63 = vsel %vm2147_vm14, %v2148_v8, %v2146_v55  ;;  %2499 = vmatmul.mubr.msk.f32.vlgmr.msra.gmra.mrb[0].mxu1 %vm412_vm13, %v3908_v2  ;;  %2607 = vmatpush3.bf16.msra.mxu0 %v2604_v31  ;;  %v2616_v34 = vpack.c.bf16 %v4464_v27, %v3264_v5  ;;  %v4466_v11 = vld [vmem:[#allocation35_spill] sm:$0xff]  ;;  %v4469_v5 = vld [vmem:[#allocation17_spill] sm:$0xff]  ;;  %v4472_v8 = vld [vmem:[#allocation38_spill] sm:$0xff] }
 0x166   :  { %v2002_v29 = vrot.slane %v2001_v48, 1  ;;  %v2290_v9 = vmul.f32 %v2286_v39, %v2286_v39  ;;  %2615 = vmatpush3.bf16.msra.mxu1 %v2612_v44  ;;  %2609 = vmatprep.subr.bf16.mxu0 %v2608_v7  ;;  %v2620_v21 = vpack.c.bf16 %v4466_v11, %v4465_v30  ;;  %v2628_v3 = vpack.c.bf16 %v4468_v51, %v4467_v13 }
 0x167   :  { %2735 = vtanh.f32 %v3867_v18  ;;  %v2181_v22 = vmul.f32 %v2732_v12, %v3863_v38  ;;  %v2327_v31 = vsub.f32 %v3331_v25, %v3356_v32  ;;  %2617 = vmatprep.subr.bf16.mxu1 %v2616_v34  ;;  %2487 = vmatprep.mubr.msk.f32.mxu0 %vm412_vm13, %v3923_v62  ;;  %v3943_v44 = vpack.c.bf16 %v4470_v28, %v4469_v5  ;;  %v4471_v18 = vld [vmem:[#allocation18_spill] sm:$0xff] }
 0x168   :  { %2737 = vtanh.f32 %v1816_v15  ;;  %v2039_v55 = vrot.slane %v2038_v46, 1  ;;  %v2074_v39 = vrot.slane %v2073_v52, 2  ;;  %2501 = vmatprep.mubr.msk.f32.mxu1 %vm412_vm13, %v3923_v62  ;;  %2488 = vmatmul.mubr.msk.f32.gmra.mrb[2].mxu0 %vm412_vm13, %v3929_v61  ;;  %v3951_v12 = vpack.c.bf16 %v4472_v8, %v4471_v18 }
 0x169   :  { %v1852_v20 = vmul.f32 0.125, %v1851_v58  ;;  %v1889_v27 = vmul.f32 0.125, %v1888_v43  ;;  %v2150_v14 = vrot.slane %v2149_v63, 4  ;;  %v2256_v24 = vadd.f32 %v3837_v37, %v2253_v0  ;;  %2502 = vmatmul.mubr.msk.f32.gmra.mrb[2].mxu1 %vm412_vm13, %v3929_v61  ;;  %2611 = vmatpush3.bf16.msra.mxu0 %v2608_v7  ;;  %v4474_v7 = vld [vmem:[#allocation75_spill] sm:$0xff] }
 0x16a   :  { %v1962_v15 = vadd.f32 %v1961_v40, %v1960_v49  ;;  %v2003_v1 = vadd.f32 %v2002_v29, %v2001_v48  ;;  %v2111_v59 = vrot.slane %v2110_v17, 2  ;;  %vm2182_vm15 = vcmp.eq.f32.partialorder %v3863_v38, inf  ;;  %2619 = vmatpush3.bf16.msra.mxu1 %v2616_v34  ;;  %2621 = vmatprep.subr.bf16.mxu0 %v2620_v21  ;;  %v4473_v48 = vld [vmem:[#allocation61_spill] sm:$0xff] }
 0x16b   :  { %v2734_v16 = vpop.eup %2733  ;;  %v1926_v4 = vmul.f32 0.125, %v1925_v26  ;;  %v2183_v42 = vsel %vm2182_vm15, %v3863_v38, %v2181_v22  ;;  %v2293_v58 = vadd.f32 %v3865_v60, %v2290_v9  ;;  %v2331_v43 = vmul.f32 %v2327_v31, %v2327_v31  ;;  %2629 = vmatprep.subr.bf16.mxu1 %v2628_v3  ;;  %2512 = vmatprep.mubr.msk.f32.mxu0 %vm412_vm13, %v3902_v47 }
 0x16c   :  { %v2040_v37 = vadd.f32 %v2039_v55, %v2038_v46  ;;  %v3961_v0 = vadd.f32 %v2074_v39, %v2073_v52  ;;  %v2185_v49 = vand.u32 2147483648, %v3863_v38  ;;  %2526 = vmatprep.mubr.msk.f32.mxu1 %vm412_vm13, %v3902_v47  ;;  %2513 = vmatmul.mubr.msk.f32.vlgmr.msra.gmra.mrb[4].mxu0 %vm412_vm13, %v3908_v2  ;;  %v2624_v26 = vpack.c.bf16 %v4473_v48, %v3289_v57  ;;  %v4475_v46 = vld [vmem:[#allocation62_spill] sm:$0xff]  ;;  %v4479_v48 = vld [vmem:[#allocation53_spill] sm:$0xff] }
 0x16d   :  { %v3970_v60 = vadd.f32 %v2150_v14, %v2149_v63  ;;  %vm2184_vm0 = vcmp.eq.f32.partialorder %v3863_v38, 0.0  ;;  %v3974_v40 = vadd.f32 %v2256_v24, %v4474_v7  ;;  %2527 = vmatmul.mubr.msk.f32.vlgmr.msra.gmra.mrb[4].mxu1 %vm412_vm13, %v3908_v2  ;;  %2623 = vmatpush3.bf16.msra.mxu0 %v2620_v21  ;;  %v2632_v52 = vpack.c.bf16 %v4475_v46, %v3324_v35  ;;  %v4476_v24 = vld [vmem:[#allocation76_spill] sm:$0xff]  ;;  %v4477_v35 = vld [vmem:[#allocation63_spill] sm:$0xff] }
 0x16e   :  { %v3980_v34 = vmul.f32 -0.1, %v1852_v20  ;;  %v3982_v29 = vadd.f32 %v2111_v59, %v2110_v17  ;;  %v3984_v9 = vsel %vm2184_vm0, %v2185_v49, %v2183_v42  ;;  %v3987_v57 = vmul.f32 %v2734_v16, %v3889_v53  ;;  %2631 = vmatpush3.bf16.msra.mxu1 %v2628_v3  ;;  %2625 = vmatprep.subr.bf16.mxu0 %v2624_v26  ;;  %v4478_v59 = vld [vmem:[#allocation64_spill] sm:$0xff]  ;;  %v2773_v17 = vld [vmem:[%s4301_s1] sm:$0xff] }
 0x16f   :  { %v3989_v38 = vmul.f32 -0.1, %v1889_v27  ;;  %v3992_v14 = vadd.f32 %v2293_v58, %v4476_v24  ;;  %v3995_v63 = vadd.f32 %v3883_v6, %v2331_v43  ;;  %2633 = vmatprep.subr.bf16.mxu1 %v2632_v52  ;;  %2515 = vmatprep.mubr.msk.f32.mxu0 %vm412_vm13, %v3923_v62  ;;  %v4001_v42 = vpack.c.bf16 %v4477_v35, %v3331_v25 }
 0x170   :  { %v4003_v16 = vmul.f32 -0.1, %v1926_v4  ;;  %2529 = vmatprep.mubr.msk.f32.mxu1 %vm412_vm13, %v3923_v62  ;;  %2516 = vmatmul.mubr.msk.f32.gmra.mrb[6].mxu0 %vm412_vm13, %v3929_v61  ;;  %v4011_v6 = vpack.c.bf16 %v4478_v59, %v3356_v32  ;;  %v248_v21 = vsub.f32 %v4465_v30, %v2773_v17  ;;  %v2774_v4 = vld [vmem:[%s4301_s1 + $0x8] sm:$0xff]  ;;  %v4023_v31 = vmul.f32 0.125, %v1962_v15  ;;  %v2775_v30 = vld [vmem:[%s4301_s1 + $0x18] sm:$0xff] }
 0x171   :  { %v249_v3 = vsub.f32 %v4466_v11, %v2774_v4  ;;  %v4021_v22 = vpop.eup %2735  ;;  %2530 = vmatmul.mubr.msk.f32.gmra.mrb[6].mxu1 %vm412_vm13, %v3929_v61  ;;  %2627 = vmatpush3.bf16.msra.mxu0 %v2624_v26  ;;  %v252_v55 = vsub.f32 %v4467_v13, %v2773_v17  ;;  %v253_v39 = vsub.f32 %v4468_v51, %v2774_v4  ;;  %v4035_v11 = vmul.f32 0.125, %v2003_v1  ;;  %v2776_v13 = vld [vmem:[%s4301_s1 + $0x10] sm:$0xff] }
 0x172   :  { %v255_v20 = vsub.f32 %v4475_v46, %v2775_v30  ;;  %v4033_v27 = vpop.eup %2737  ;;  %2635 = vmatpush3.bf16.msra.mxu1 %v2632_v52  ;;  %2637 = vmatprep.subr.bf16.mxu0 %v3943_v44  ;;  %v256_v15 = vsub.f32 %v4469_v5, %v2773_v17  ;;  %v257_v58 = vsub.f32 %v4470_v28, %v2774_v4  ;;  %v299_v28 = vrot.slane %v3732_v56, 4 }
 0x173   :  { %v258_v51 = vsub.f32 %v3331_v25, %v2776_v13  ;;  %2645 = vmatprep.subr.bf16.mxu1 %v3951_v12  ;;  %2540 = vmatprep.mubr.msk.f32.mxu0 %vm412_vm13, %v3902_v47  ;;  %v4048_v1 = vsub.f32 %v4477_v35, %v2775_v30  ;;  %v260_v43 = vsub.f32 %v4471_v18, %v2773_v17  ;;  %v308_v18 = vrot.slane %v3859_v10, 4  ;;  %v4481_v35 = vld [vmem:[#allocation65_spill] sm:$0xff] }
 0x174   :  { %v261_v5 = vsub.f32 %v4472_v8, %v2774_v4  ;;  %2554 = vmatprep.mubr.msk.f32.mxu1 %vm412_vm13, %v3902_v47  ;;  %2541 = vmatmul.mubr.msk.f32.vlgmr.msra.gmra.mrb[8].mxu0 %vm412_vm13, %v3908_v2  ;;  %v262_v25 = vsub.f32 %v3356_v32, %v2776_v13  ;;  %v4059_v49 = vsub.f32 %v4478_v59, %v2775_v30  ;;  %v4064_v7 = vmul.f32 0.125, %v2040_v37  ;;  %v4480_v8 = vld [vmem:[#allocation54_spill] sm:$0xff] }
 0x175   :  { %v276_v26 = vmul.f32 %v4479_v48, %v4479_v48  ;;  %2555 = vmatmul.mubr.msk.f32.vlgmr.msra.gmra.mrb[8].mxu1 %vm412_vm13, %v3908_v2  ;;  %2639 = vmatpush3.bf16.msra.mxu0 %v3943_v44  ;;  %v277_v46 = vmul.f32 %v4480_v8, %v4480_v8  ;;  %v280_v52 = vmul.f32 %v248_v21, %v248_v21  ;;  %v2222_v24 = vand.u32 2147483648, %v3889_v53  ;;  %v4482_v44 = vld [vmem:[#allocation78_spill] sm:$0xff] }
 0x176   :  { %v281_v32 = vmul.f32 %v249_v3, %v249_v3  ;;  %2647 = vmatpush3.bf16.msra.mxu1 %v3951_v12  ;;  %2641 = vmatprep.subr.bf16.mxu0 %v4001_v42  ;;  %v283_v37 = vmul.f32 %v4481_v35, %v4481_v35  ;;  %v284_v59 = vmul.f32 %v252_v55, %v252_v55  ;;  %v2076_v4 = vrot.slane %v3961_v0, 1 }
 0x177   :  { %v285_v17 = vmul.f32 %v253_v39, %v253_v39  ;;  %2649 = vmatprep.subr.bf16.mxu1 %v4011_v6  ;;  %2543 = vmatprep.mubr.msk.f32.mxu0 %vm412_vm13, %v3923_v62  ;;  %v286_v21 = vmul.f32 %v4482_v44, %v4482_v44  ;;  %v287_v3 = vmul.f32 %v255_v20, %v255_v20  ;;  %2739 = vrsqrt.f32 %v3974_v40  ;;  %v4483_v39 = vld [vmem:[#allocation68_spill] sm:$0xff] }
 0x178   :  { %v288_v30 = vmul.f32 %v256_v15, %v256_v15  ;;  %2557 = vmatprep.mubr.msk.f32.mxu1 %vm412_vm13, %v3923_v62  ;;  %2544 = vmatmul.mubr.msk.f32.gmra.mrb[10].mxu0 %vm412_vm13, %v3929_v61  ;;  %v300_v12 = vadd.f32 %v299_v28, %v3732_v56  ;;  %v309_v55 = vadd.f32 %v308_v18, %v3859_v10  ;;  %2741 = vrsqrt.f32 %v3992_v14 }
 0x179   :  { %v316_v13 = vadd.f32 %v3662_v33, %v4483_v39  ;;  %2558 = vmatmul.mubr.msk.f32.gmra.mrb[10].mxu1 %vm412_vm13, %v3929_v61  ;;  %2643 = vmatpush3.bf16.msra.mxu0 %v4001_v42  ;;  %v289_v20 = vmul.f32 %v257_v58, %v257_v58  ;;  %v323_v15 = vadd.f32 %v277_v46, %v276_v26  ;;  %vm384_vm1 = vcmask 1041409  }
 0x17a   :  { %v332_v48 = vadd.f32 %v281_v32, %v280_v52  ;;  %2651 = vmatpush3.bf16.msra.mxu1 %v4011_v6  ;;  %2568 = vmatprep.mubr.msk.f32.mxu0 %vm412_vm13, %v3902_v47  ;;  %v301_v56 = vrot.slane %v300_v12, 2  ;;  %v310_v10 = vrot.slane %v309_v55, 2  ;;  %v341_v18 = vadd.f32 %v285_v17, %v284_v59 }
 0x17b   :  { %v317_v28 = vrot.slane %v316_v13, 4  ;;  %2582 = vmatprep.mubr.msk.f32.mxu1 %vm412_vm13, %v3902_v47  ;;  %v290_v33 = vmul.f32 %v258_v51, %v258_v51  ;;  %v292_v8 = vmul.f32 %v260_v43, %v260_v43  ;;  %v324_v35 = vadd.f32 %v323_v15, %v3634_v45  ;;  %v4484_v51 = vld [vmem:[#allocation69_spill] sm:$0xff] }
 0x17c   :  { %v333_v42 = vadd.f32 %v332_v48, %v3647_v19  ;;  %2569 = vmatmul.mubr.msk.f32.vlgmr.msra.gmra.mrb[12].mxu0 %vm412_vm13, %v3908_v2  ;;  %v302_v6 = vadd.f32 %v301_v56, %v300_v12  ;;  %v311_v58 = vadd.f32 %v310_v10, %v309_v55  ;;  %v342_v46 = vadd.f32 %v341_v18, %v286_v21 }
 0x17d   :  { %v318_v26 = vadd.f32 %v317_v28, %v316_v13  ;;  %2583 = vmatmul.mubr.msk.f32.vlgmr.msra.gmra.mrb[12].mxu1 %vm412_vm13, %v3908_v2  ;;  %2571 = vmatprep.mubr.msk.f32.mxu0 %vm412_vm13, %v3923_v62  ;;  %v293_v47 = vmul.f32 %v261_v5, %v261_v5  ;;  %v325_v43 = vadd.f32 %v324_v35, %v4484_v51  ;;  %vm2219_vm2 = vcmp.eq.f32.partialorder %v3889_v53, inf }
 0x17e   :  { %v334_v52 = vadd.f32 %v333_v42, %v283_v37  ;;  %2585 = vmatprep.mubr.msk.f32.mxu1 %vm412_vm13, %v3923_v62  ;;  %v303_v45 = vrot.slane %v302_v6, 1  ;;  %v312_v19 = vrot.slane %v311_v58, 1  ;;  %v343_v59 = vadd.f32 %v342_v46, %v287_v3 }
 0x17f   :  { %v319_v32 = vrot.slane %v318_v26, 2  ;;  %v294_v17 = vmul.f32 %v262_v25, %v262_v25  ;;  %v326_v44 = vrot.slane %v325_v43, 4  ;;  %v350_v21 = vadd.f32 %v289_v20, %v288_v30 }
 0x180   :  { %v335_v2 = vrot.slane %v334_v52, 4  ;;  %2572 = vmatmul.mubr.msk.f32.gmra.mrb[14].mxu0 %vm412_vm13, %v3929_v61  ;;  %v304_v5 = vadd.f32 %v303_v45, %v302_v6  ;;  %v313_v12 = vadd.f32 %v312_v19, %v311_v58  ;;  %v344_v55 = vrot.slane %v343_v59, 4 }
 0x181   :  { %v320_v37 = vadd.f32 %v319_v32, %v318_v26  ;;  %2586 = vmatmul.mubr.msk.f32.gmra.mrb[14].mxu1 %vm412_vm13, %v3929_v61  ;;  %v291_v62 = vmul.f32 %v4048_v1, %v4048_v1  ;;  %v327_v3 = vadd.f32 %v326_v44, %v325_v43  ;;  %v351_v13 = vadd.f32 %v350_v21, %v290_v33  ;;  %v4118_v25 = vpop.eup %2739  ;;  %v4485_v44 = vld [vmem:[#allocation77_spill] sm:$0xff] }
 0x182   :  { %v336_v39 = vadd.f32 %v335_v2, %v334_v52  ;;  %vm2221_vm3 = vcmp.eq.f32.partialorder %v3889_v53, 0.0  ;;  %v345_v20 = vadd.f32 %v344_v55, %v343_v59  ;;  %v359_v15 = vadd.f32 %v293_v47, %v292_v8  ;;  %v2742_v56 = vpop.eup %2741 }
 0x183   :  { %v321_v30 = vrot.slane %v320_v37, 1  ;;  %v368_v48 = vmul.f32 0.03125, %v304_v5  ;;  %v295_v10 = vmul.f32 %v4059_v49, %v4059_v49  ;;  %v328_v28 = vrot.slane %v327_v3, 2 }
 0x184   :  { %v337_v61 = vrot.slane %v336_v39, 2  ;;  %v352_v18 = vadd.f32 %v351_v13, %v291_v62  ;;  %v346_v1 = vrot.slane %v345_v20, 2  ;;  %v360_v42 = vadd.f32 %v359_v15, %v294_v17 }
 0x185   :  { %v322_v35 = vadd.f32 %v321_v30, %v320_v37  ;;  %v369_v6 = vmul.f32 0.03125, %v313_v12  ;;  %v329_v33 = vadd.f32 %v328_v28, %v327_v3  ;;  %vm386_vm4 = vcmask 1042434  }
 0x186   :  { %v338_v58 = vadd.f32 %v337_v61, %v336_v39  ;;  %v353_v26 = vrot.slane %v352_v18, 4  ;;  %v347_v46 = vadd.f32 %v346_v1, %v345_v20  ;;  %v361_v51 = vadd.f32 %v360_v42, %v295_v10 }
 0x187   :  { %v370_v43 = vmul.f32 0.03125, %v322_v35  ;;  %v385_v8 = vsel %vm384_vm1, %v369_v6, %v368_v48  ;;  %v2187_v47 = vrot.slane %v3984_v9, 4  ;;  %v330_v52 = vrot.slane %v329_v33, 1 }
 0x188   :  { %v339_v49 = vrot.slane %v338_v58, 1  ;;  %v354_v45 = vadd.f32 %v353_v26, %v352_v18  ;;  %v2220_v19 = vsel %vm2219_vm2, %v3889_v53, %v3987_v57  ;;  %v348_v32 = vrot.slane %v347_v46, 1 }
 0x189   :  { %v362_v59 = vrot.slane %v361_v51, 4  ;;  %v387_v17 = vsel %vm386_vm4, %v370_v43, %v385_v8  ;;  %v4131_v2 = vadd.f32 %v3995_v63, %v4485_v44  ;;  %v331_v21 = vadd.f32 %v330_v52, %v329_v33 }
 0x18a   :  { %v340_v5 = vadd.f32 %v339_v49, %v338_v58  ;;  %v355_v12 = vrot.slane %v354_v45, 2  ;;  %v349_v37 = vadd.f32 %v348_v32, %v347_v46  ;;  %vm388_vm5 = vcmask 1043459  }
 0x18b   :  { %v363_v55 = vadd.f32 %v362_v59, %v361_v51  ;;  %v2223_v62 = vsel %vm2221_vm3, %v2222_v24, %v2220_v19  ;;  %v371_v57 = vmul.f32 0.03125, %v331_v21  ;;  %vm390_vm6 = vcmask 1044484  }
 0x18c   :  { %v356_v3 = vadd.f32 %v355_v12, %v354_v45  ;;  %v2854_v39 = vmov 0.0   ;;  %v2188_v13 = vadd.f32 %v2187_v47, %v3984_v9  ;;  %v372_v30 = vmul.f32 0.03125, %v340_v5  ;;  %v4486_v5 = vld [vmem:[#allocation19_spill] sm:$0xff] }
 0x18d   :  { %1293 = vst [vmem:[#allocation3] sm:$0xff] %v2854_v39  ;;  %v364_v63 = vrot.slane %v363_v55, 2  ;;  %vm392_vm7 = vcmask 1045509   ;;  %v2152_v20 = vrot.slane %v3970_v60, 2  ;;  %v373_v48 = vmul.f32 0.03125, %v349_v37  ;;  %v4487_v37 = vld [vmem:[#allocation39_spill] sm:$0xff] }
 0x18e   :  { %v357_v15 = vrot.slane %v356_v3, 1  ;;  %v389_v10 = vsel %vm388_vm5, %v371_v57, %v387_v17  ;;  %v2224_v28 = vrot.slane %v2223_v62, 4  ;;  %2743 = vrsqrt.f32 %v4131_v2 }
 0x18f   :  { %v365_v53 = vadd.f32 %v364_v63, %v363_v55  ;;  %v391_v24 = vsel %vm390_vm6, %v372_v30, %v389_v10  ;;  %v2113_v61 = vrot.slane %v3982_v29, 1  ;;  %vm2260_vm8 = vcmp.eq.f32.partialorder %v3974_v40, inf }
 0x190   :  { %v358_v18 = vadd.f32 %v357_v15, %v356_v3  ;;  %v393_v35 = vsel %vm392_vm7, %v373_v48, %v391_v24  ;;  %v2189_v9 = vrot.slane %v2188_v13, 2  ;;  %vm2297_vm9 = vcmp.eq.f32.partialorder %v3992_v14, inf }
 0x191   :  { %v366_v1 = vrot.slane %v365_v53, 1  ;;  %vm394_vm10 = vcmask 1046534   ;;  %v2259_v42 = vmul.f32 %v4118_v25, %v3974_v40  ;;  %v2296_v6 = vmul.f32 %v2742_v56, %v3992_v14 }
 0x192   :  { %v374_v33 = vmul.f32 0.03125, %v358_v18  ;;  %vm396_vm11 = vcmask 1047559   ;;  %v2077_v58 = vadd.f32 %v2076_v4, %v3961_v0  ;;  %v4150_v26 = vadd.f32 %v2152_v20, %v3970_v60 }
 0x193   :  { %v2225_v46 = vadd.f32 %v2224_v28, %v2223_v62  ;;  %v367_v51 = vadd.f32 %v366_v1, %v365_v53  ;;  %v2261_v21 = vsel %vm2260_vm8, %v3974_v40, %v2259_v42  ;;  %v2114_v62 = vadd.f32 %v2113_v61, %v3982_v29 }
 0x194   :  { %v1329_v43 = vld [vmem:[#allocation3] sm:$0x1]  ;;  %v1332_v8 = vld [vmem:[#allocation3 + $0x1] sm:$0x1]  ;;  %v1369_v47 = vld [vmem:[#allocation3 + $0x2] sm:$0x1]  ;;  %v395_v52 = vsel %vm394_vm10, %v374_v33, %v393_v35  ;;  %2745 = vtanh.f32 %v3980_v34  ;;  %v2190_v63 = vadd.f32 %v2189_v9, %v2188_v13 }
 0x195   :  { %v1330_v49 = vadd.f32 %v3687_v50, %v1329_v43  ;;  %v1333_v25 = vadd.f32 %v3687_v50, %v1332_v8  ;;  %v1370_v56 = vadd.f32 %v3694_v54, %v1369_v47  ;;  %v1406_v45 = vld [vmem:[#allocation3 + $0x3] sm:$0x1]  ;;  %v1443_v19 = vld [vmem:[#allocation3 + $0x4] sm:$0x1]  ;;  %v1480_v32 = vld [vmem:[#allocation3 + $0x5] sm:$0x1]  ;;  %v2298_v50 = vsel %vm2297_vm9, %v3992_v14, %v2296_v6 }
 0x196   :  { %v375_v59 = vmul.f32 0.03125, %v367_v51  ;;  %v1407_v0 = vadd.f32 %v3699_v36, %v1406_v45  ;;  %v1444_v60 = vadd.f32 %v3703_v23, %v1443_v19  ;;  %v1481_v4 = vadd.f32 %v3747_v41, %v1480_v32  ;;  %v1517_v17 = vld [vmem:[#allocation3 + $0x6] sm:$0x1]  ;;  %v1554_v44 = vld [vmem:[#allocation3 + $0x7] sm:$0x1]  ;;  %v4489_v33 = vld [vmem:[#allocation20_spill] sm:$0xff] }
 0x197   :  { %1331 = vst [vmem:[#allocation3] sm:$0x1] %v1330_v49  ;;  %1334 = vst [vmem:[#allocation3 + $0x1] sm:$0x1] %v1333_v25  ;;  %v1518_v12 = vadd.f32 %v4486_v5, %v1517_v17  ;;  %v1555_v55 = vadd.f32 %v4487_v37, %v1554_v44  ;;  %v2263_v3 = vand.u32 2147483648, %v3974_v40  ;;  %v2300_v57 = vand.u32 2147483648, %v3992_v14 }
 0x198   :  { %1371 = vst [vmem:[#allocation3 + $0x2] sm:$0x1] %v1370_v56  ;;  %v397_v39 = vsel %vm396_vm11, %v375_v59, %v395_v52  ;;  %1408 = vst [vmem:[#allocation3 + $0x3] sm:$0x1] %v1407_v0  ;;  %vm2262_vm12 = vcmp.eq.f32.partialorder %v3974_v40, 0.0  ;;  %vm2299_vm13 = vcmp.eq.f32.partialorder %v3992_v14, 0.0  ;;  %v2744_v29 = vpop.eup %2743  ;;  %2747 = vtanh.f32 %v3989_v38 }
 0x199   :  { %1445 = vst [vmem:[#allocation3 + $0x4] sm:$0x1] %v1444_v60  ;;  %1482 = vst [vmem:[#allocation3 + $0x5] sm:$0x1] %v1481_v4  ;;  %v1964_v30 = vmul.f32 -0.1, %v4023_v31  ;;  %v2264_v20 = vsel %vm2262_vm12, %v2263_v3, %v2261_v21  ;;  %v2301_v15 = vsel %vm2299_vm13, %v2300_v57, %v2298_v50  ;;  %2749 = vtanh.f32 %v4003_v16 }
 0x19a   :  { %399 = vst [vmem:[#allocation9] sm:$0xff] %v397_v39  ;;  %1519 = vst [vmem:[#allocation3 + $0x6] sm:$0x1] %v1518_v12  ;;  %v2005_v48 = vmul.f32 -0.1, %v4035_v11  ;;  %v2226_v34 = vrot.slane %v2225_v46, 2  ;;  %v2337_v38 = vmul.f32 %v2744_v29, %v4131_v2 }
 0x19b   :  { %1556 = vst [vmem:[#allocation3 + $0x7] sm:$0x1] %v1555_v55  ;;  %v2042_v13 = vmul.f32 -0.1, %v4064_v7  ;;  %v2078_v40 = vmul.f32 0.125, %v2077_v58  ;;  %v2115_v10 = vmul.f32 0.125, %v2114_v62  ;;  %2751 = vtanh.f32 %v1964_v30 }
 0x19c   :  { %v2154_v14 = vrot.slane %v4150_v26, 1  ;;  %v2191_v28 = vrot.slane %v2190_v63, 1  ;;  %v2265_v53 = vrot.slane %v2264_v20, 4  ;;  %v2302_v24 = vrot.slane %v2301_v15, 4  ;;  %v4488_v11 = vld [vmem:[#allocation40_spill] sm:$0xff]  ;;  %v4490_v51 = vld [vmem:[#allocation21_spill] sm:$0xff] }
 0x19d   :  { %v2227_v35 = vadd.f32 %v2226_v34, %v2225_v46  ;;  %vm2338_vm14 = vcmp.eq.f32.partialorder %v4131_v2, inf  ;;  %v4491_v8 = vld [vmem:[#allocation41_spill] sm:$0xff]  ;;  %v4492_v25 = vld [vmem:[#allocation42_spill] sm:$0xff]  ;;  %v2079_v19 = vmul.f32 -0.1, %v2078_v40  ;;  %v2341_v59 = vand.u32 2147483648, %v4131_v2 }
 0x19e   :  { %v1366_v31 = vld [vmem:[#allocation3] sm:$0x1]  ;;  %v1592_v61 = vld [vmem:[#allocation3 + $0x1] sm:$0x1]  ;;  %v2266_v46 = vadd.f32 %v2265_v53, %v2264_v20  ;;  %v2303_v32 = vadd.f32 %v2302_v24, %v2301_v15  ;;  %v4191_v0 = vpop.eup %2745  ;;  %v2155_v60 = vadd.f32 %v2154_v14, %v4150_v26  ;;  %v2192_v4 = vadd.f32 %v2191_v28, %v2190_v63 }
 0x19f   :  { %v1595_v18 = vld [vmem:[#allocation3 + $0x2] sm:$0x1]  ;;  %v1367_v16 = vadd.f32 %v3694_v54, %v1366_v31  ;;  %v1593_v9 = vadd.f32 %v4488_v11, %v1592_v61  ;;  %v1632_v1 = vld [vmem:[#allocation3 + $0x3] sm:$0x1]  ;;  %v2339_v54 = vsel %vm2338_vm14, %v4131_v2, %v2337_v38  ;;  %v2228_v17 = vrot.slane %v2227_v35, 1 }
 0x1a0   :  { %v1596_v7 = vadd.f32 %v4488_v11, %v1595_v18  ;;  %v1669_v42 = vld [vmem:[#allocation3 + $0x4] sm:$0x1]  ;;  %v1706_v6 = vld [vmem:[#allocation3 + $0x5] sm:$0x1]  ;;  %v1633_v58 = vadd.f32 %v4489_v33, %v1632_v1  ;;  %vm2340_vm15 = vcmp.eq.f32.partialorder %v4131_v2, 0.0  ;;  %2753 = vtanh.f32 %v2005_v48 }
 0x1a1   :  { %v1670_v43 = vadd.f32 %v4490_v51, %v1669_v42  ;;  %v1707_v47 = vadd.f32 %v4491_v8, %v1706_v6  ;;  %v1743_v52 = vld [vmem:[#allocation3 + $0x6] sm:$0x1]  ;;  %1368 = vst [vmem:[#allocation3] sm:$0x1] %v1367_v16  ;;  %1594 = vst [vmem:[#allocation3 + $0x1] sm:$0x1] %v1593_v9  ;;  %v2342_v50 = vsel %vm2340_vm15, %v2341_v59, %v2339_v54  ;;  %2755 = vtanh.f32 %v2042_v13 }
 0x1a2   :  { %v1780_v49 = vld [vmem:[#allocation3 + $0x7] sm:$0x1]  ;;  %1597 = vst [vmem:[#allocation3 + $0x2] sm:$0x1] %v1596_v7  ;;  %v1744_v56 = vadd.f32 %v4492_v25, %v1743_v52  ;;  %1634 = vst [vmem:[#allocation3 + $0x3] sm:$0x1] %v1633_v58  ;;  %v4195_v44 = vpop.eup %2747  ;;  %2757 = vtanh.f32 %v2079_v19  ;;  %v2229_v26 = vadd.f32 %v2228_v17, %v2227_v35 }
 0x1a3   :  { %v1781_v45 = vadd.f32 %v4021_v22, %v1780_v49  ;;  %1671 = vst [vmem:[#allocation3 + $0x4] sm:$0x1] %v1670_v43  ;;  %1708 = vst [vmem:[#allocation3 + $0x5] sm:$0x1] %v1707_v47  ;;  %v2116_v21 = vmul.f32 -0.1, %v2115_v10  ;;  %v4197_v12 = vpop.eup %2749 }
 0x1a4   :  { %1745 = vst [vmem:[#allocation3 + $0x6] sm:$0x1] %v1744_v56  ;;  %v2267_v55 = vrot.slane %v2266_v46, 2  ;;  %v2304_v62 = vrot.slane %v2303_v32, 2  ;;  %v2156_v3 = vmul.f32 0.125, %v2155_v60  ;;  %v2193_v57 = vmul.f32 0.125, %v2192_v4 }
 0x1a5   :  { %1782 = vst [vmem:[#allocation3 + $0x7] sm:$0x1] %v1781_v45  ;;  %v2343_v39 = vrot.slane %v2342_v50, 4  ;;  %v4199_v63 = vpop.eup %2751  ;;  %2759 = vtanh.f32 %v2116_v21  ;;  %v2230_v61 = vmul.f32 0.125, %v2229_v26 }
 0x1a6   :  { %v2268_v20 = vadd.f32 %v2267_v55, %v2266_v46  ;;  %v2305_v14 = vadd.f32 %v2304_v62, %v2303_v32  ;;  %v2157_v16 = vmul.f32 -0.1, %v2156_v3  ;;  %v2194_v9 = vmul.f32 -0.1, %v2193_v57 }
 0x1a7   :  { %v2344_v35 = vadd.f32 %v2343_v39, %v2342_v50  ;;  %v2231_v42 = vmul.f32 -0.1, %v2230_v61 }
 0x1a8   :  { %v1403_v2 = vld [vmem:[#allocation3] sm:$0x1]  ;;  %v1629_v29 = vld [vmem:[#allocation3 + $0x1] sm:$0x1]  ;;  %v2306_v7 = vrot.slane %v2305_v14, 1  ;;  %2761 = vtanh.f32 %v2157_v16 }
 0x1a9   :  { %v1818_v30 = vld [vmem:[#allocation3 + $0x2] sm:$0x1]  ;;  %v1404_v15 = vadd.f32 %v3699_v36, %v1403_v2  ;;  %v1630_v48 = vadd.f32 %v4489_v33, %v1629_v29  ;;  %v1821_v13 = vld [vmem:[#allocation3 + $0x3] sm:$0x1]  ;;  %v2345_v33 = vrot.slane %v2344_v35, 2  ;;  %2763 = vtanh.f32 %v2194_v9 }
 0x1aa   :  { %v1819_v34 = vadd.f32 %v4033_v27, %v1818_v30  ;;  %v1858_v40 = vld [vmem:[#allocation3 + $0x4] sm:$0x1]  ;;  %v1895_v10 = vld [vmem:[#allocation3 + $0x5] sm:$0x1]  ;;  %v1822_v28 = vadd.f32 %v4033_v27, %v1821_v13  ;;  %v2269_v27 = vrot.slane %v2268_v20, 1  ;;  %v2754_v11 = vpop.eup %2753  ;;  %v2307_v47 = vadd.f32 %v2306_v7, %v2305_v14 }
 0x1ab   :  { %v1859_v53 = vadd.f32 %v4191_v0, %v1858_v40  ;;  %v1896_v24 = vadd.f32 %v4195_v44, %v1895_v10  ;;  %v1932_v38 = vld [vmem:[#allocation3 + $0x6] sm:$0x1]  ;;  %1405 = vst [vmem:[#allocation3] sm:$0x1] %v1404_v15  ;;  %1631 = vst [vmem:[#allocation3 + $0x1] sm:$0x1] %v1630_v48  ;;  %v2756_v1 = vpop.eup %2755  ;;  %2765 = vtanh.f32 %v2231_v42  ;;  %v2346_v60 = vadd.f32 %v2345_v33, %v2344_v35 }
 0x1ac   :  { %v1969_v31 = vld [vmem:[#allocation3 + $0x7] sm:$0x1]  ;;  %1820 = vst [vmem:[#allocation3 + $0x2] sm:$0x1] %v1819_v34  ;;  %v1933_v36 = vadd.f32 %v4197_v12, %v1932_v38  ;;  %1823 = vst [vmem:[#allocation3 + $0x3] sm:$0x1] %v1822_v28  ;;  %v4209_v6 = vpop.eup %2757  ;;  %v2270_v58 = vadd.f32 %v2269_v27, %v2268_v20 }
 0x1ad   :  { %v1970_v18 = vadd.f32 %v4199_v63, %v1969_v31  ;;  %1860 = vst [vmem:[#allocation3 + $0x4] sm:$0x1] %v1859_v53  ;;  %1897 = vst [vmem:[#allocation3 + $0x5] sm:$0x1] %v1896_v24 }
 0x1ae   :  { %1934 = vst [vmem:[#allocation3 + $0x6] sm:$0x1] %v1933_v36  ;;  %v2271_v62 = vmul.f32 0.125, %v2270_v58 }
 0x1af   :  { %1971 = vst [vmem:[#allocation3 + $0x7] sm:$0x1] %v1970_v18  ;;  %v4211_v43 = vpop.eup %2759 }
 0x1b0   :  { %v2272_v57 = vmul.f32 -0.1, %v2271_v62 }
 0x1b2   :  { %v1440_v52 = vld [vmem:[#allocation3] sm:$0x1]  ;;  %v1666_v49 = vld [vmem:[#allocation3 + $0x1] sm:$0x1]  ;;  %v2762_v39 = vpop.eup %2761  ;;  %2767 = vtanh.f32 %v2272_v57 }
 0x1b3   :  { %v1855_v46 = vld [vmem:[#allocation3 + $0x2] sm:$0x1]  ;;  %v1441_v54 = vadd.f32 %v3703_v23, %v1440_v52  ;;  %v1667_v56 = vadd.f32 %v4490_v51, %v1666_v49  ;;  %v2007_v19 = vld [vmem:[#allocation3 + $0x3] sm:$0x1]  ;;  %v2308_v51 = vmul.f32 0.125, %v2307_v47  ;;  %v2764_v2 = vpop.eup %2763 }
 0x1b4   :  { %v1856_v45 = vadd.f32 %v4191_v0, %v1855_v46  ;;  %v2010_v32 = vld [vmem:[#allocation3 + $0x4] sm:$0x1]  ;;  %v2047_v59 = vld [vmem:[#allocation3 + $0x5] sm:$0x1]  ;;  %v2008_v4 = vadd.f32 %v2754_v11, %v2007_v19  ;;  %v2347_v0 = vrot.slane %v2346_v60, 1 }
 0x1b5   :  { %v2011_v17 = vadd.f32 %v2754_v11, %v2010_v32  ;;  %v2048_v21 = vadd.f32 %v2756_v1, %v2047_v59  ;;  %v2084_v50 = vld [vmem:[#allocation3 + $0x6] sm:$0x1]  ;;  %1442 = vst [vmem:[#allocation3] sm:$0x1] %v1441_v54  ;;  %1668 = vst [vmem:[#allocation3 + $0x1] sm:$0x1] %v1667_v56  ;;  %v4218_v48 = vpop.eup %2765 }
 0x1b6   :  { %v2121_v55 = vld [vmem:[#allocation3 + $0x7] sm:$0x1]  ;;  %1857 = vst [vmem:[#allocation3 + $0x2] sm:$0x1] %v1856_v45  ;;  %v2085_v3 = vadd.f32 %v4209_v6, %v2084_v50  ;;  %2009 = vst [vmem:[#allocation3 + $0x3] sm:$0x1] %v2008_v4  ;;  %v2348_v29 = vadd.f32 %v2347_v0, %v2346_v60 }
 0x1b7   :  { %v2122_v23 = vadd.f32 %v4211_v43, %v2121_v55  ;;  %2012 = vst [vmem:[#allocation3 + $0x4] sm:$0x1] %v2011_v17  ;;  %2049 = vst [vmem:[#allocation3 + $0x5] sm:$0x1] %v2048_v21  ;;  %v2309_v26 = vmul.f32 -0.1, %v2308_v51 }
 0x1b8   :  { %2086 = vst [vmem:[#allocation3 + $0x6] sm:$0x1] %v2085_v3  ;;  %v4241_v51 = vld [vmem:[%s4302_s2] sm:$0xff] }
 0x1b9   :  { %2123 = vst [vmem:[#allocation3 + $0x7] sm:$0x1] %v2122_v23  ;;  %2769 = vtanh.f32 %v2309_v26 }
 0x1bc   :  { %v1477_v30 = vld [vmem:[#allocation3] sm:$0x1]  ;;  %v1703_v20 = vld [vmem:[#allocation3 + $0x1] sm:$0x1]  ;;  %v2768_v27 = vpop.eup %2767 }
 0x1bd   :  { %v1892_v15 = vld [vmem:[#allocation3 + $0x2] sm:$0x1]  ;;  %v1478_v34 = vadd.f32 %v3747_v41, %v1477_v30  ;;  %v1704_v13 = vadd.f32 %v4491_v8, %v1703_v20  ;;  %v2044_v10 = vld [vmem:[#allocation3 + $0x3] sm:$0x1]  ;;  %v2349_v41 = vmul.f32 0.125, %v2348_v29 }
 0x1be   :  { %v1893_v40 = vadd.f32 %v4195_v44, %v1892_v15  ;;  %v2159_v14 = vld [vmem:[#allocation3 + $0x4] sm:$0x1]  ;;  %v2045_v28 = vadd.f32 %v2756_v1, %v2044_v10  ;;  %v2162_v24 = vld [vmem:[#allocation3 + $0x5] sm:$0x1] }
 0x1bf   :  { %v2160_v53 = vadd.f32 %v2762_v39, %v2159_v14  ;;  %v2199_v38 = vld [vmem:[#allocation3 + $0x6] sm:$0x1]  ;;  %1479 = vst [vmem:[#allocation3] sm:$0x1] %v1478_v34  ;;  %1705 = vst [vmem:[#allocation3 + $0x1] sm:$0x1] %v1704_v13  ;;  %v2163_v61 = vadd.f32 %v2762_v39, %v2162_v24 }
 0x1c0   :  { %v2236_v31 = vld [vmem:[#allocation3 + $0x7] sm:$0x1]  ;;  %1894 = vst [vmem:[#allocation3 + $0x2] sm:$0x1] %v1893_v40  ;;  %v2200_v36 = vadd.f32 %v2764_v2, %v2199_v38  ;;  %2046 = vst [vmem:[#allocation3 + $0x3] sm:$0x1] %v2045_v28 }
 0x1c1   :  { %v2237_v18 = vadd.f32 %v4218_v48, %v2236_v31  ;;  %2161 = vst [vmem:[#allocation3 + $0x4] sm:$0x1] %v2160_v53  ;;  %2164 = vst [vmem:[#allocation3 + $0x5] sm:$0x1] %v2163_v61  ;;  %v2350_v8 = vmul.f32 -0.1, %v2349_v41 }
 0x1c2   :  { %2201 = vst [vmem:[#allocation3 + $0x6] sm:$0x1] %v2200_v36  ;;  %v4255_v34 = vld [vmem:[%s4302_s2 + $0x10] sm:$0xff] }
 0x1c3   :  { %2238 = vst [vmem:[#allocation3 + $0x7] sm:$0x1] %v2237_v18  ;;  %v2770_v33 = vpop.eup %2769  ;;  %2771 = vtanh.f32 %v2350_v8 }
 0x1c6   :  { %v1514_v44 = vld [vmem:[#allocation3] sm:$0x1]  ;;  %v1740_v35 = vld [vmem:[#allocation3 + $0x1] sm:$0x1] }
 0x1c7   :  { %v1929_v16 = vld [vmem:[#allocation3 + $0x2] sm:$0x1]  ;;  %v1515_v11 = vadd.f32 %v4486_v5, %v1514_v44  ;;  %v1741_v9 = vadd.f32 %v4492_v25, %v1740_v35  ;;  %v2081_v1 = vld [vmem:[#allocation3 + $0x3] sm:$0x1] }
 0x1c8   :  { %v1930_v7 = vadd.f32 %v4197_v12, %v1929_v16  ;;  %v2196_v42 = vld [vmem:[#allocation3 + $0x4] sm:$0x1]  ;;  %v2082_v58 = vadd.f32 %v4209_v6, %v2081_v1  ;;  %v2274_v52 = vld [vmem:[#allocation3 + $0x5] sm:$0x1] }
 0x1c9   :  { %v2197_v47 = vadd.f32 %v2764_v2, %v2196_v42  ;;  %v2277_v49 = vld [vmem:[#allocation3 + $0x6] sm:$0x1]  ;;  %1516 = vst [vmem:[#allocation3] sm:$0x1] %v1515_v11  ;;  %1742 = vst [vmem:[#allocation3 + $0x1] sm:$0x1] %v1741_v9  ;;  %v2275_v54 = vadd.f32 %v2768_v27, %v2274_v52 }
 0x1ca   :  { %v2314_v46 = vld [vmem:[#allocation3 + $0x7] sm:$0x1]  ;;  %1931 = vst [vmem:[#allocation3 + $0x2] sm:$0x1] %v1930_v7  ;;  %v2278_v56 = vadd.f32 %v2768_v27, %v2277_v49  ;;  %2083 = vst [vmem:[#allocation3 + $0x3] sm:$0x1] %v2082_v58 }
 0x1cb   :  { %v2315_v5 = vadd.f32 %v2770_v33, %v2314_v46  ;;  %2198 = vst [vmem:[#allocation3 + $0x4] sm:$0x1] %v2197_v47  ;;  %2276 = vst [vmem:[#allocation3 + $0x5] sm:$0x1] %v2275_v54 }
 0x1cc   :  { %2279 = vst [vmem:[#allocation3 + $0x6] sm:$0x1] %v2278_v56 }
 0x1cd   :  { %2316 = vst [vmem:[#allocation3 + $0x7] sm:$0x1] %v2315_v5  ;;  %v2772_v4 = vpop.eup %2771 }
 0x1d0   :  { %v1551_v25 = vld [vmem:[#allocation3] sm:$0x1]  ;;  %v1777_v12 = vld [vmem:[#allocation3 + $0x1] sm:$0x1] }
 0x1d1   :  { %v1966_v45 = vld [vmem:[#allocation3 + $0x2] sm:$0x1]  ;;  %v1552_v6 = vadd.f32 %v4487_v37, %v1551_v25  ;;  %v1778_v19 = vadd.f32 %v4021_v22, %v1777_v12  ;;  %v2118_v59 = vld [vmem:[#allocation3 + $0x3] sm:$0x1] }
 0x1d2   :  { %v1967_v32 = vadd.f32 %v4199_v63, %v1966_v45  ;;  %v2233_v60 = vld [vmem:[#allocation3 + $0x4] sm:$0x1]  ;;  %v2119_v17 = vadd.f32 %v4211_v43, %v2118_v59  ;;  %v2311_v50 = vld [vmem:[#allocation3 + $0x5] sm:$0x1]  ;;  %v4236_v43 = vld [vmem:[%s4302_s2 + $0x8] sm:$0xff] }
 0x1d3   :  { %v2234_v21 = vadd.f32 %v4218_v48, %v2233_v60  ;;  %v2352_v55 = vld [vmem:[#allocation3 + $0x6] sm:$0x1]  ;;  %1553 = vst [vmem:[#allocation3] sm:$0x1] %v1552_v6  ;;  %1779 = vst [vmem:[#allocation3 + $0x1] sm:$0x1] %v1778_v19  ;;  %v2312_v3 = vadd.f32 %v2770_v33, %v2311_v50 }
 0x1d4   :  { %v2355_v62 = vld [vmem:[#allocation3 + $0x7] sm:$0x1]  ;;  %1968 = vst [vmem:[#allocation3 + $0x2] sm:$0x1] %v1967_v32  ;;  %v2353_v23 = vadd.f32 %v2772_v4, %v2352_v55  ;;  %2120 = vst [vmem:[#allocation3 + $0x3] sm:$0x1] %v2119_v17 }
 0x1d5   :  { %v2356_v37 = vadd.f32 %v2772_v4, %v2355_v62  ;;  %2235 = vst [vmem:[#allocation3 + $0x4] sm:$0x1] %v2234_v21  ;;  %2313 = vst [vmem:[#allocation3 + $0x5] sm:$0x1] %v2312_v3  ;;  %v4250_v48 = vld [vmem:[%s4302_s2 + $0x18] sm:$0xff]  ;;  %s2855_s2 = smov [#allocation9]  }
 0x1d6   :  { %2354 = vst [vmem:[#allocation3 + $0x6] sm:$0x1] %v2353_v23  ;;  %s2367_s12 = sshll.u32 %s2855_s2, 4  ;;  %s2368_s12 = int_to_ptr.vmem [resolvable:$true] %s2367_s12 }
 0x1d7   :  { %2357 = vst [vmem:[#allocation3 + $0x7] sm:$0x1] %v2356_v37  ;;  %s2821_s13 = scalar_lea.vmem %s2368_s12, 384  ;;  %p2826_p3 = scmp.lt.s32.totalorder %s2368_s12, %s2368_s12 }
 0x1d8   :  { %p2822_p2 = scmp.ne.s32.totalorder %s2368_s12, %s2821_s13  ;;  %p2827_p4 = scmp.lt.s32.totalorder %s2821_s13, %s2821_s13 }
 0x1da   :  { %p2828_p5 = por %p2827_p4, %p2826_p3 }
 0x1dc   :  { %p2829_p6 = pnand %p2828_p5, %p2822_p2 }
 0x1de   :  { %v2358_v22 = vld [vmem:[#allocation3] sm:$0xff] }
 0x1df   :  { %v2359_v63 = vmul.f32 0.125, %v2358_v22 }
 0x1e1   :  { %2361 = vst [vmem:[#allocation9 + $0x10] sm:$0xff] %v2359_v63 }
 0x237   :  { %v2486_v0 = vpop.f32.mrb[0].mxu0 }
 0x238   :  { %v511_v57 = vsub.f32 %v2486_v0, %v4236_v43  ;;  %v2500_v26 = vpop.f32.mrb[0].mxu1  ;;  %v491_v39 = vpop.f32.mrb[1].mxu0 }
 0x239   :  { %v621_v2 = vsub.f32 %v2500_v26, %v4236_v43  ;;  %v510_v29 = vsub.f32 %v491_v39, %v4241_v51  ;;  %v601_v30 = vpop.f32.mrb[1].mxu1 }
 0x23a   :  { %v515_v20 = vmul.f32 %v511_v57, %v511_v57  ;;  %v620_v15 = vsub.f32 %v601_v30, %v4241_v51 }
 0x23b   :  { %v625_v13 = vmul.f32 %v621_v2, %v621_v2  ;;  %v514_v40 = vmul.f32 %v510_v29, %v510_v29  ;;  %v2489_v10 = vpop.f32.mrb[2].mxu0 }
 0x23c   :  { %v624_v14 = vmul.f32 %v620_v15, %v620_v15  ;;  %v2503_v28 = vpop.f32.mrb[2].mxu1  ;;  %v501_v53 = vpop.f32.mrb[3].mxu0  ;;  %v513_v38 = vsub.f32 %v2489_v10, %v4250_v48 }
 0x23d   :  { %v518_v24 = vadd.f32 %v515_v20, %v514_v40  ;;  %v512_v31 = vsub.f32 %v501_v53, %v4255_v34  ;;  %v611_v61 = vpop.f32.mrb[3].mxu1  ;;  %v623_v18 = vsub.f32 %v2503_v28, %v4250_v48 }
 0x23e   :  { %v628_v36 = vadd.f32 %v625_v13, %v624_v14  ;;  %v622_v41 = vsub.f32 %v611_v61, %v4255_v34  ;;  %v517_v9 = vmul.f32 %v513_v38, %v513_v38 }
 0x23f   :  { %v516_v8 = vmul.f32 %v512_v31, %v512_v31  ;;  %v2514_v44 = vpop.f32.mrb[4].mxu0  ;;  %v627_v58 = vmul.f32 %v623_v18, %v623_v18 }
 0x240   :  { %v626_v35 = vmul.f32 %v622_v41, %v622_v41  ;;  %v730_v16 = vsub.f32 %v2514_v44, %v4236_v43  ;;  %v2528_v27 = vpop.f32.mrb[4].mxu1  ;;  %v710_v11 = vpop.f32.mrb[5].mxu0 }
 0x241   :  { %v519_v7 = vadd.f32 %v518_v24, %v516_v8  ;;  %v839_v1 = vsub.f32 %v2528_v27, %v4236_v43  ;;  %v729_v42 = vsub.f32 %v710_v11, %v4241_v51  ;;  %v819_v33 = vpop.f32.mrb[5].mxu1 }
 0x242   :  { %v629_v47 = vadd.f32 %v628_v36, %v626_v35  ;;  %v734_v52 = vmul.f32 %v730_v16, %v730_v16  ;;  %v838_v49 = vsub.f32 %v819_v33, %v4241_v51 }
 0x243   :  { %v520_v46 = vadd.f32 %v519_v7, %v517_v9  ;;  %v843_v54 = vmul.f32 %v839_v1, %v839_v1  ;;  %v733_v56 = vmul.f32 %v729_v42, %v729_v42  ;;  %v2517_v5 = vpop.f32.mrb[6].mxu0 }
 0x244   :  { %v630_v25 = vadd.f32 %v629_v47, %v627_v58  ;;  %v842_v12 = vmul.f32 %v838_v49, %v838_v49  ;;  %v732_v45 = vsub.f32 %v2517_v5, %v4250_v48  ;;  %v2531_v6 = vpop.f32.mrb[6].mxu1  ;;  %v720_v19 = vpop.f32.mrb[7].mxu0 }
 0x245   :  { %v521_v32 = vrot.slane %v520_v46, 4  ;;  %v737_v59 = vadd.f32 %v734_v52, %v733_v56  ;;  %v841_v60 = vsub.f32 %v2531_v6, %v4250_v48  ;;  %v731_v4 = vsub.f32 %v720_v19, %v4255_v34  ;;  %v829_v17 = vpop.f32.mrb[7].mxu1 }
 0x246   :  { %v631_v21 = vrot.slane %v630_v25, 4  ;;  %v846_v50 = vadd.f32 %v843_v54, %v842_v12  ;;  %v840_v55 = vsub.f32 %v829_v17, %v4255_v34  ;;  %v736_v3 = vmul.f32 %v732_v45, %v732_v45 }
 0x247   :  { %v522_v62 = vadd.f32 %v521_v32, %v520_v46  ;;  %v735_v23 = vmul.f32 %v731_v4, %v731_v4  ;;  %v2542_v37 = vpop.f32.mrb[8].mxu0  ;;  %v845_v63 = vmul.f32 %v841_v60, %v841_v60 }
 0x248   :  { %v632_v22 = vadd.f32 %v631_v21, %v630_v25  ;;  %v844_v0 = vmul.f32 %v840_v55, %v840_v55  ;;  %v948_v57 = vsub.f32 %v2542_v37, %v4236_v43  ;;  %v2556_v26 = vpop.f32.mrb[8].mxu1  ;;  %v928_v39 = vpop.f32.mrb[9].mxu0 }
 0x249   :  { %v523_v2 = vrot.slane %v522_v62, 2  ;;  %v738_v29 = vadd.f32 %v737_v59, %v735_v23  ;;  %v1057_v30 = vsub.f32 %v2556_v26, %v4236_v43  ;;  %v947_v20 = vsub.f32 %v928_v39, %v4241_v51  ;;  %v1037_v15 = vpop.f32.mrb[9].mxu1 }
 0x24a   :  { %v633_v13 = vrot.slane %v632_v22, 2  ;;  %v847_v40 = vadd.f32 %v846_v50, %v844_v0  ;;  %v952_v10 = vmul.f32 %v948_v57, %v948_v57  ;;  %v1056_v14 = vsub.f32 %v1037_v15, %v4241_v51 }
 0x24b   :  { %v524_v28 = vadd.f32 %v523_v2, %v522_v62  ;;  %v739_v53 = vadd.f32 %v738_v29, %v736_v3  ;;  %v1061_v24 = vmul.f32 %v1057_v30, %v1057_v30  ;;  %v951_v38 = vmul.f32 %v947_v20, %v947_v20  ;;  %v2545_v31 = vpop.f32.mrb[10].mxu0 }
 0x24c   :  { %v634_v61 = vadd.f32 %v633_v13, %v632_v22  ;;  %v848_v36 = vadd.f32 %v847_v40, %v845_v63  ;;  %v1060_v18 = vmul.f32 %v1056_v14, %v1056_v14  ;;  %v950_v41 = vsub.f32 %v2545_v31, %v4250_v48  ;;  %v2559_v8 = vpop.f32.mrb[10].mxu1  ;;  %v938_v44 = vpop.f32.mrb[11].mxu0 }
 0x24d   :  { %v525_v35 = vrot.slane %v524_v28, 1  ;;  %v740_v16 = vrot.slane %v739_v53, 4  ;;  %v955_v27 = vadd.f32 %v952_v10, %v951_v38  ;;  %v1047_v11 = vpop.f32.mrb[11].mxu1  ;;  %v1059_v42 = vsub.f32 %v2559_v8, %v4250_v48 }
 0x24e   :  { %v635_v9 = vrot.slane %v634_v61, 1  ;;  %v849_v7 = vrot.slane %v848_v36, 4  ;;  %v1064_v1 = vadd.f32 %v1061_v24, %v1060_v18  ;;  %v954_v47 = vmul.f32 %v950_v41, %v950_v41 }
 0x24f   :  { %v526_v33 = vadd.f32 %v525_v35, %v524_v28  ;;  %v741_v58 = vadd.f32 %v740_v16, %v739_v53  ;;  %v949_v52 = vsub.f32 %v938_v44, %v4255_v34  ;;  %v2570_v49 = vpop.f32.mrb[12].mxu0  ;;  %v1058_v56 = vsub.f32 %v1047_v11, %v4255_v34 }
 0x250   :  { %v636_v46 = vadd.f32 %v635_v9, %v634_v61  ;;  %v850_v54 = vadd.f32 %v849_v7, %v848_v36  ;;  %v1166_v5 = vsub.f32 %v2570_v49, %v4236_v43  ;;  %v2584_v25 = vpop.f32.mrb[12].mxu1  ;;  %v1146_v12 = vpop.f32.mrb[13].mxu0  ;;  %v1063_v17 = vmul.f32 %v1059_v42, %v1059_v42 }
 0x251   :  { %v527_v45 = vmul.f32 0.03125, %v526_v33  ;;  %v742_v6 = vrot.slane %v741_v58, 2  ;;  %v953_v19 = vmul.f32 %v949_v52, %v949_v52  ;;  %v1275_v32 = vsub.f32 %v2584_v25, %v4236_v43  ;;  %v1255_v59 = vpop.f32.mrb[13].mxu1 }
 0x252   :  { %v637_v60 = vmul.f32 0.03125, %v636_v46  ;;  %v851_v4 = vrot.slane %v850_v54, 2  ;;  %v1062_v21 = vmul.f32 %v1058_v56, %v1058_v56  ;;  %v1170_v62 = vmul.f32 %v1166_v5, %v1166_v5 }
 0x253   :  { %529 = vst [vmem:[#allocation9 + $0x8] sm:$0x1] %v527_v45  ;;  %v743_v50 = vadd.f32 %v742_v6, %v741_v58  ;;  %v956_v55 = vadd.f32 %v955_v27, %v953_v19  ;;  %v1165_v3 = vsub.f32 %v1146_v12, %v4241_v51  ;;  %v2573_v23 = vpop.f32.mrb[14].mxu0  ;;  %v1279_v63 = vmul.f32 %v1275_v32, %v1275_v32 }
 0x254   :  { %638 = vst [vmem:[#allocation9 + $0x9] sm:$0x1] %v637_v60  ;;  %v852_v37 = vadd.f32 %v851_v4, %v850_v54  ;;  %v1065_v22 = vadd.f32 %v1064_v1, %v1062_v21  ;;  %v1274_v0 = vsub.f32 %v1255_v59, %v4241_v51  ;;  %v2587_v57 = vpop.f32.mrb[14].mxu1  ;;  %v1156_v43 = vpop.f32.mrb[15].mxu0  ;;  %v1168_v14 = vsub.f32 %v2573_v23, %v4250_v48 }
 0x255   :  { %v744_v26 = vrot.slane %v743_v50, 1  ;;  %v957_v39 = vadd.f32 %v956_v55, %v954_v47  ;;  %v1169_v2 = vmul.f32 %v1165_v3, %v1165_v3  ;;  %v1265_v29 = vpop.f32.mrb[15].mxu1  ;;  %v1167_v38 = vsub.f32 %v1156_v43, %v4255_v34 }
 0x256   :  { %v853_v30 = vrot.slane %v852_v37, 1  ;;  %v1066_v20 = vadd.f32 %v1065_v22, %v1063_v17  ;;  %v1278_v15 = vmul.f32 %v1274_v0, %v1274_v0  ;;  %v1277_v61 = vsub.f32 %v2587_v57, %v4250_v48 }
 0x257   :  { %v745_v13 = vadd.f32 %v744_v26, %v743_v50  ;;  %v958_v40 = vrot.slane %v957_v39, 4  ;;  %v1173_v10 = vadd.f32 %v1170_v62, %v1169_v2  ;;  %v1276_v36 = vsub.f32 %v1265_v29, %v4255_v34 }
 0x258   :  { %v854_v28 = vadd.f32 %v853_v30, %v852_v37  ;;  %v1067_v53 = vrot.slane %v1066_v20, 4  ;;  %v1282_v24 = vadd.f32 %v1279_v63, %v1278_v15  ;;  %v1171_v8 = vmul.f32 %v1167_v38, %v1167_v38 }
 0x259   :  { %v746_v51 = vmul.f32 0.03125, %v745_v13  ;;  %v959_v31 = vadd.f32 %v958_v40, %v957_v39  ;;  %v1280_v35 = vmul.f32 %v1276_v36, %v1276_v36  ;;  %v1172_v27 = vmul.f32 %v1168_v14, %v1168_v14 }
 0x25a   :  { %v855_v18 = vmul.f32 0.03125, %v854_v28  ;;  %v1068_v41 = vadd.f32 %v1067_v53, %v1066_v20  ;;  %v1174_v11 = vadd.f32 %v1173_v10, %v1171_v8  ;;  %v1281_v7 = vmul.f32 %v1277_v61, %v1277_v61 }
 0x25b   :  { %747 = vst [vmem:[#allocation9 + $0xa] sm:$0x1] %v746_v51  ;;  %v960_v44 = vrot.slane %v959_v31, 2  ;;  %v1283_v1 = vadd.f32 %v1282_v24, %v1280_v35 }
 0x25c   :  { %856 = vst [vmem:[#allocation9 + $0xb] sm:$0x1] %v855_v18  ;;  %v1069_v16 = vrot.slane %v1068_v41, 2  ;;  %v1175_v33 = vadd.f32 %v1174_v11, %v1172_v27 }
 0x25d   :  { %v961_v9 = vadd.f32 %v960_v44, %v959_v31  ;;  %v1284_v47 = vadd.f32 %v1283_v1, %v1281_v7 }
 0x25e   :  { %v1070_v42 = vadd.f32 %v1069_v16, %v1068_v41  ;;  %v1176_v52 = vrot.slane %v1175_v33, 4 }
 0x25f   :  { %v962_v58 = vrot.slane %v961_v9, 1  ;;  %v1285_v49 = vrot.slane %v1284_v47, 4 }
 0x260   :  { %v1071_v48 = vrot.slane %v1070_v42, 1  ;;  %v1177_v54 = vadd.f32 %v1176_v52, %v1175_v33 }
 0x261   :  { %v963_v34 = vadd.f32 %v962_v58, %v961_v9  ;;  %v1286_v5 = vadd.f32 %v1285_v49, %v1284_v47 }
 0x262   :  { %v1072_v46 = vadd.f32 %v1071_v48, %v1070_v42  ;;  %v1178_v12 = vrot.slane %v1177_v54, 2 }
 0x263   :  { %v964_v56 = vmul.f32 0.03125, %v963_v34  ;;  %v1287_v45 = vrot.slane %v1286_v5, 2 }
 0x264   :  { %v1073_v25 = vmul.f32 0.03125, %v1072_v46  ;;  %v1179_v6 = vadd.f32 %v1178_v12, %v1177_v54 }
 0x265   :  { %965 = vst [vmem:[#allocation9 + $0xc] sm:$0x1] %v964_v56  ;;  %v1288_v19 = vadd.f32 %v1287_v45, %v1286_v5 }
 0x266   :  { %1074 = vst [vmem:[#allocation9 + $0xd] sm:$0x1] %v1073_v25  ;;  %v1180_v32 = vrot.slane %v1179_v6, 1 }
 0x267   :  { %v1289_v59 = vrot.slane %v1288_v19, 1 }
 0x268   :  { %v1181_v60 = vadd.f32 %v1180_v32, %v1179_v6 }
 0x269   :  { %v1290_v4 = vadd.f32 %v1289_v59, %v1288_v19 }
 0x26a   :  { %v1182_v17 = vmul.f32 0.03125, %v1181_v60 }
 0x26b   :  { %v1291_v21 = vmul.f32 0.03125, %v1290_v4 }
 0x26c   :  { %1183 = vst [vmem:[#allocation9 + $0xe] sm:$0x1] %v1182_v17 }
 0x26d   :  { %1292 = vst [vmem:[#allocation9 + $0xf] sm:$0x1] %v1291_v21 }
 0x26e   :  { %2832 = shalt.err (!%p2829_p6)
}
 0x26f   :  { %s2833_s4 = scalar_lea.hbm %s4306_s6, 384 }
 0x270   :  { %p2834_p7 = scmp.ne.s32.totalorder %s4306_s6, %s2833_s4  ;;  %p2837_p8 = scmp.lt.u32.totalorder %s2833_s4, %s4306_s6 }
 0x272   :  { %p2839_p9 = pnand %p2837_p8, %p2834_p7 }
 0x274   :  { %2842 = shalt.err (!%p2839_p9)
}
 0x275   :  { %2373 = dma.vmem_to_hbm [thread:$0]  %s2368_s12, 384, %s4306_s6, [#allocation6], %s2850_s7, %s2850_s7, %s2851_s8  }
 0x276   :  { %2847 = dma.done.wait [#allocation6], 384  }
 0x277   :  { %2848 = vsyncadd [#allocation6], 4294966912 }
 0x278   :  { %2377 = vsyncpa [#allocation5], 1 }
 0x279   :  { %2378 = vsyncpa [#allocation8], 1 }
 0x27a   :  { %2379 = vsyncpa [#allocation6], 1 }

</bundles_post_ra>
